<compile_context>
chip_gen: v6e
topology: v6e:2x2x1
jax: 0.10.0
libtpu: 0.0.40
codegen_flags: <defaults>
</compile_context>

<pallas_src>
import jax
import jax.numpy as jnp
from jax.experimental import pallas as pl
from jax.experimental.pallas import tpu as pltpu

# ----------------------------- configuration (small ViT) ----------------------
PATCH = 8
IMG = 16                 # H = W = 16  ->  2 x 2 = 4 patches
IN_CH = 3
EMBED = 32
HEADS = 4
HEAD_DIM = EMBED // HEADS
DEPTH = 2
MLP_HIDDEN = 4 * EMBED
NUM_CLASSES = 10
BATCH = 2
EPS = 1e-6               # timm/DINO ViT LayerNorm eps
LOGIT_PAD = 128          # lane-dense classifier output width


def _layer_norm(x, g, b):
    mu = jnp.mean(x, axis=-1, keepdims=True)
    var = jnp.mean((x - mu) ** 2, axis=-1, keepdims=True)
    return (x - mu) * jax.lax.rsqrt(var + EPS) * g + b


# ----------------------------- fused Pallas kernel -----------------------------
def fused_vit_kernel(
    # inputs
    patches_ref,          # (B*N, C*p*p)  bf16   (cls rows are zero rows)
    patch_w_ref,          # (C*p*p, D)    bf16
    pos_add_ref,          # (B*N, D)      f32    cls_token/conv-bias/pos folded
    ln1g_ref, ln1b_ref,   # (DEPTH, 1, D)        f32
    wqkv_ref,             # (DEPTH, D, 3D)       bf16
    bqkv_ref,             # (DEPTH, 1, 3D)       f32
    wproj_ref,            # (DEPTH, D, D)        bf16
    bproj_ref,            # (DEPTH, 1, D)        f32
    ln2g_ref, ln2b_ref,   # (DEPTH, 1, D)        f32
    w1_ref,               # (DEPTH, D, HID)      bf16
    b1_ref,               # (DEPTH, 1, HID)      f32
    w2_ref,               # (DEPTH, HID, D)      bf16
    b2_ref,               # (DEPTH, 1, D)        f32
    normg_ref, normb_ref, # (1, D)               f32
    headw_ref,            # (D, LOGIT_PAD)       bf16 (zero-padded past classes)
    headb_ref,            # (1, LOGIT_PAD)       f32
    # outputs
    logits_ref,           # (B*N, LOGIT_PAD)     f32  (lane-dense slab)
    attn_ref,             # (B, N, N)            f32  head-mean, last block
    # scratch
    qkv_ref,              # VMEM (B*N, 3D)       f32
    ao_ref,               # VMEM (B*N, D)        f32  (head-concat attn output)
):
    bf = jnp.bfloat16
    f32 = jnp.float32
    bsz, n_tok, _ = attn_ref.shape
    depth, d_model, _ = wqkv_ref.shape
    n_heads = HEADS
    k_dim = d_model // n_heads
    scale = k_dim ** -0.5

    # ---- patch embedding + cls token + positional embedding: ONE matmul ----
    # cls rows of `patches` are zero, so x = patches @ W + pos_add directly
    # yields [cls+pos0 | patch_emb+bias+pos_i] per batch element.
    x = jnp.dot(patches_ref[...], patch_w_ref[...],
                preferred_element_type=f32) + pos_add_ref[...]     # (B*N, D)

    for d in range(depth):                                         # unrolled
        # ---- multi-head self-attention (pre-norm) ----
        h = _layer_norm(x, ln1g_ref[d], ln1b_ref[d])               # (B*N, D)
        qkv_ref[...] = jnp.dot(h.astype(bf), wqkv_ref[d],
                               preferred_element_type=f32) + bqkv_ref[d]
        last = (d == depth - 1)

        for bi in range(bsz):
            r0 = bi * n_tok
            attn_acc = None
            for hh in range(n_heads):
                cq = hh * k_dim
                q = qkv_ref[r0:r0 + n_tok, cq:cq + k_dim].astype(bf)
                k = qkv_ref[r0:r0 + n_tok,
                            d_model + cq:d_model + cq + k_dim].astype(bf)
                v = qkv_ref[r0:r0 + n_tok,
                            2 * d_model + cq:2 * d_model + cq + k_dim].astype(bf)

                s = jax.lax.dot_general(
                    q, k, (((1,), (1,)), ((), ())),
                    preferred_element_type=f32) * scale            # (N, N)
                s = s - jnp.max(s, axis=-1, keepdims=True)
                e = jnp.exp(s)
                p = e / jnp.sum(e, axis=-1, keepdims=True)         # exact softmax

                o = jnp.dot(p.astype(bf), v, preferred_element_type=f32)  # (N, K)
                # head-concat for free: head hh -> columns [hh*K, (hh+1)*K)
                ao_ref[r0:r0 + n_tok, cq:cq + k_dim] = o

                if last:
                    attn_acc = p if attn_acc is None else attn_acc + p
            if last:
                attn_ref[bi] = attn_acc * (1.0 / n_heads)

        att = jnp.dot(ao_ref[...].astype(bf), wproj_ref[d],
                      preferred_element_type=f32) + bproj_ref[d]   # (B*N, D)
        x = x + att                                                # residual

        # ---- MLP (pre-norm) ----
        h2 = _layer_norm(x, ln2g_ref[d], ln2b_ref[d])
        a1 = jnp.dot(h2.astype(bf), w1_ref[d],
                     preferred_element_type=f32) + b1_ref[d]       # (B*N, HID)
        # TODO(synk): PyTorch nn.GELU defaults to exact erf-GELU; tanh approx here.
        a1 = jax.nn.gelu(a1, approximate=True)
        a2 = jnp.dot(a1.astype(bf), w2_ref[d],
                     preferred_element_type=f32) + b2_ref[d]       # (B*N, D)
        x = x + a2                                                 # residual

    # ---- final LayerNorm (all tokens) + lane-dense classifier matmul ----
    xn = _layer_norm(x, normg_ref[...], normb_ref[...])
    logits_ref[...] = jnp.dot(xn.astype(bf), headw_ref[...],
                              preferred_element_type=f32) + headb_ref[...]


# ----------------------------- parameter init (same convention as before) ------
def init_params(key):
    num_patches = (IMG // PATCH) * (IMG // PATCH)
    n_tokens = num_patches + 1
    keys = jax.random.split(key, 4 + 4 * DEPTH)
    ki = iter(keys)

    def w_init(k, shape):
        return (0.02 * jax.random.normal(k, shape)).astype(jnp.float32)

    params = {
        "patch_w": w_init(next(ki), (IN_CH * PATCH * PATCH, EMBED)),
        "patch_b": jnp.zeros((1, EMBED), jnp.float32),
        "cls_token": w_init(next(ki), (1, 1, EMBED)),
        "pos_embed": w_init(next(ki), (1, n_tokens, EMBED)),
        "norm_g": jnp.ones((1, EMBED), jnp.float32),
        "norm_b": jnp.zeros((1, EMBED), jnp.float32),
        "head_w": w_init(next(ki), (EMBED, NUM_CLASSES)),
        "head_b": jnp.zeros((1, NUM_CLASSES), jnp.float32),
        "blocks": [],
    }
    for _ in range(DEPTH):
        blk = (
            jnp.ones((1, EMBED), jnp.float32),               # ln1 gamma
            jnp.zeros((1, EMBED), jnp.float32),              # ln1 beta
            w_init(next(ki), (EMBED, 3 * EMBED)),            # W_qkv
            jnp.zeros((1, 3 * EMBED), jnp.float32),          # b_qkv
            w_init(next(ki), (EMBED, EMBED)),                # W_proj
            jnp.zeros((1, EMBED), jnp.float32),              # b_proj
            jnp.ones((1, EMBED), jnp.float32),               # ln2 gamma
            jnp.zeros((1, EMBED), jnp.float32),              # ln2 beta
            w_init(next(ki), (EMBED, MLP_HIDDEN)),           # W_fc1
            jnp.zeros((1, MLP_HIDDEN), jnp.float32),         # b_fc1
            w_init(next(ki), (MLP_HIDDEN, EMBED)),           # W_fc2
            jnp.zeros((1, EMBED), jnp.float32),              # b_fc2
        )
        params["blocks"].append(blk)
    return params


# ----------------------------- wrapper-side weight relayout --------------------
def _relayout_params(params, b, n_tok):
    """Dense, unreplicated kernel layouts:
       * W_qkv kept fused (D, 3D); MLP / proj / patch weights kept dense 2-D,
       * cls_token + conv bias + positional embedding folded into one (B*N, D)
         additive term (cls rows of the patch matrix are zero rows),
       * classifier padded to 128 lanes for a lane-dense epilogue store,
       * all matmul weights cast to bfloat16 (f32 accumulation in-kernel)."""
    D = EMBED
    bf = jnp.bfloat16

    cls_row = params["cls_token"].reshape(1, D) + params["pos_embed"][0, 0:1, :]
    patch_rows = params["patch_b"] + params["pos_embed"][0, 1:, :]       # (P, D)
    pos_add = jnp.concatenate([cls_row, patch_rows], axis=0)             # (N, D)
    pos_add = jnp.broadcast_to(pos_add[None], (b, n_tok, D)).reshape(b * n_tok, D)

    stacks = {k: [] for k in ("ln1g", "ln1b", "wqkv", "bqkv", "wproj", "bproj",
                              "ln2g", "ln2b", "w1", "b1", "w2", "b2")}
    for (g1, be1, Wqkv, Bqkv, Wp, Bp, g2, be2, W1, B1, W2, B2) in params["blocks"]:
        stacks["ln1g"].append(g1)
        stacks["ln1b"].append(be1)
        stacks["wqkv"].append(Wqkv.astype(bf))
        stacks["bqkv"].append(Bqkv)
        stacks["wproj"].append(Wp.astype(bf))
        stacks["bproj"].append(Bp)
        stacks["ln2g"].append(g2)
        stacks["ln2b"].append(be2)
        stacks["w1"].append(W1.astype(bf))
        stacks["b1"].append(B1)
        stacks["w2"].append(W2.astype(bf))
        stacks["b2"].append(B2)
    stacked = {k: jnp.stack(v, axis=0) for k, v in stacks.items()}

    head_w = jnp.zeros((D, LOGIT_PAD), jnp.float32)
    head_w = head_w.at[:, :NUM_CLASSES].set(params["head_w"]).astype(bf)
    head_b = jnp.zeros((1, LOGIT_PAD), jnp.float32)
    head_b = head_b.at[:, :NUM_CLASSES].set(params["head_b"][0])

    return dict(
        patch_w=params["patch_w"].astype(bf),                  # (C*p*p, D)
        pos_add=pos_add,                                       # (B*N, D)
        norm_g=params["norm_g"], norm_b=params["norm_b"],      # (1, D)
        head_w=head_w, head_b=head_b,                          # (D/1, 128)
        **stacked,
    )


# ----------------------------- full forward ------------------------------------
def vit_gusa_forward(x, params):
    b, c, h, w = x.shape
    hp, wp = h // PATCH, w // PATCH                  # (w_featmap, h_featmap)
    n_tok = hp * wp + 1
    cpp = c * PATCH * PATCH

    # patch extraction: equivalent to Conv2d(kernel=stride=PATCH) im2col (glue)
    patches = x.reshape(b, c, hp, PATCH, wp, PATCH)
    patches = patches.transpose(0, 2, 4, 1, 3, 5).reshape(b, hp * wp, cpp)
    # prepend a zero row per batch element at the cls position: tokens then come
    # straight out of one (B*N, Cpp) @ (Cpp, D) matmul inside the kernel.
    patches_pad = jnp.concatenate(
        [jnp.zeros((b, 1, cpp), patches.dtype), patches], axis=1
    ).reshape(b * n_tok, cpp).astype(jnp.bfloat16)

    ins = _relayout_params(params, b, n_tok)

    logits_full, attn_mean = pl.pallas_call(
        fused_vit_kernel,
        out_shape=(
            jax.ShapeDtypeStruct((b * n_tok, LOGIT_PAD), jnp.float32),
            jax.ShapeDtypeStruct((b, n_tok, n_tok), jnp.float32),
        ),
        scratch_shapes=[
            pltpu.VMEM((b * n_tok, 3 * EMBED), jnp.float32),   # fused QKV
            pltpu.VMEM((b * n_tok, EMBED), jnp.float32),       # head-concat attn out
        ],
    )(
        patches_pad, ins["patch_w"], ins["pos_add"],
        ins["ln1g"], ins["ln1b"], ins["wqkv"], ins["bqkv"],
        ins["wproj"], ins["bproj"], ins["ln2g"], ins["ln2b"],
        ins["w1"], ins["b1"], ins["w2"], ins["b2"],
        ins["norm_g"], ins["norm_b"], ins["head_w"], ins["head_b"],
    )

    # slice cls rows / real classes out of the lane-dense logits slab
    logits = logits_full.reshape(b, n_tok, LOGIT_PAD)[:, 0, :NUM_CLASSES]
    final_output = jnp.squeeze(logits)               # matches torch .squeeze()
    # roi map: head-mean already done in kernel; cls row, drop cls column
    roi_map = attn_mean[:, 0, 1:].reshape(b, 1, hp, wp)
    return final_output, roi_map


# ----------------------------- main ---------------------------------------------
if __name__ == "__main__":
    key = jax.random.PRNGKey(0)
    k_param, k_x = jax.random.split(key)
    params = init_params(k_param)
    x = jax.random.normal(k_x, (BATCH, IN_CH, IMG, IMG), dtype=jnp.float32)

    fwd = jax.jit(vit_gusa_forward)
    final_output, roi_map = fwd(x, params)
    jax.block_until_ready((final_output, roi_map))

    assert final_output.shape == (BATCH, NUM_CLASSES)
    assert roi_map.shape == (BATCH, 1, IMG // PATCH, IMG // PATCH)
    print("KERNEL_OK")
</pallas_src>

<mosaic_0001>
module attributes {stable_mosaic.version = 11 : i64} {
  func.func @fused_vit_kernel(%arg0: memref<10x192xbf16, #tpu.memory_space<vmem>>, %arg1: memref<192x32xbf16, #tpu.memory_space<vmem>>, %arg2: memref<10x32xf32, #tpu.memory_space<vmem>>, %arg3: memref<2x1x32xf32, #tpu.memory_space<vmem>>, %arg4: memref<2x1x32xf32, #tpu.memory_space<vmem>>, %arg5: memref<2x32x96xbf16, #tpu.memory_space<vmem>>, %arg6: memref<2x1x96xf32, #tpu.memory_space<vmem>>, %arg7: memref<2x32x32xbf16, #tpu.memory_space<vmem>>, %arg8: memref<2x1x32xf32, #tpu.memory_space<vmem>>, %arg9: memref<2x1x32xf32, #tpu.memory_space<vmem>>, %arg10: memref<2x1x32xf32, #tpu.memory_space<vmem>>, %arg11: memref<2x32x128xbf16, #tpu.memory_space<vmem>>, %arg12: memref<2x1x128xf32, #tpu.memory_space<vmem>>, %arg13: memref<2x128x32xbf16, #tpu.memory_space<vmem>>, %arg14: memref<2x1x32xf32, #tpu.memory_space<vmem>>, %arg15: memref<1x32xf32, #tpu.memory_space<vmem>>, %arg16: memref<1x32xf32, #tpu.memory_space<vmem>>, %arg17: memref<32x128xbf16, #tpu.memory_space<vmem>>, %arg18: memref<1x128xf32, #tpu.memory_space<vmem>>, %arg19: memref<10x128xf32, #tpu.memory_space<vmem>>, %arg20: memref<2x5x5xf32, #tpu.memory_space<vmem>>, %arg21: memref<10x96xf32, #tpu.memory_space<vmem>>, %arg22: memref<10x32xf32, #tpu.memory_space<vmem>>) attributes {dimension_semantics = [], scalar_prefetch = 0 : i64, scratch_operands = 2 : i64, tpu.core_type = #tpu.core_type<tc>} {
    %c0 = arith.constant 0 : index
    %c0_0 = arith.constant 0 : index
    %0 = vector.load %arg0[%c0, %c0_0] : memref<10x192xbf16, #tpu.memory_space<vmem>>, vector<10x192xbf16>
    %c0_1 = arith.constant 0 : index
    %c0_2 = arith.constant 0 : index
    %1 = vector.load %arg1[%c0_1, %c0_2] : memref<192x32xbf16, #tpu.memory_space<vmem>>, vector<192x32xbf16>
    %cst = arith.constant dense<0.000000e+00> : vector<10x32xf32>
    %2 = tpu.matmul %0, %1, %cst {dimension_numbers = #tpu.dot_dimension_numbers<[1], [0], [0], [1], [0, 0, 1, 1], [], []>} : vector<10x192xbf16>, vector<192x32xbf16>, vector<10x32xf32> -> vector<10x32xf32>
    %c0_3 = arith.constant 0 : index
    %c0_4 = arith.constant 0 : index
    %3 = vector.load %arg2[%c0_3, %c0_4] : memref<10x32xf32, #tpu.memory_space<vmem>>, vector<10x32xf32>
    %4 = arith.addf %2, %3 : vector<10x32xf32>
    %c0_5 = arith.constant 0 : index
    %c0_6 = arith.constant 0 : index
    %c0_7 = arith.constant 0 : index
    %5 = vector.load %arg3[%c0_5, %c0_6, %c0_7] : memref<2x1x32xf32, #tpu.memory_space<vmem>>, vector<1x1x32xf32>
    %6 = vector.shape_cast %5 : vector<1x1x32xf32> to vector<1x32xf32>
    %c0_8 = arith.constant 0 : index
    %c0_9 = arith.constant 0 : index
    %c0_10 = arith.constant 0 : index
    %7 = vector.load %arg4[%c0_8, %c0_9, %c0_10] : memref<2x1x32xf32, #tpu.memory_space<vmem>>, vector<1x1x32xf32>
    %8 = vector.shape_cast %7 : vector<1x1x32xf32> to vector<1x32xf32>
    %cst_11 = arith.constant dense<0.000000e+00> : vector<10xf32>
    %9 = vector.multi_reduction <add>, %4, %cst_11 [1] : vector<10x32xf32> to vector<10xf32>
    %10 = vector.shape_cast %9 : vector<10xf32> to vector<10x1xf32>
    %cst_12 = arith.constant 3.200000e+01 : f32
    %11 = vector.broadcast %cst_12 : f32 to vector<10x1xf32>
    %12 = arith.divf %10, %11 : vector<10x1xf32>
    %13 = vector.broadcast %12 : vector<10x1xf32> to vector<10x32xf32>
    %14 = arith.subf %4, %13 : vector<10x32xf32>
    %15 = arith.mulf %14, %14 : vector<10x32xf32>
    %cst_13 = arith.constant dense<0.000000e+00> : vector<10xf32>
    %16 = vector.multi_reduction <add>, %15, %cst_13 [1] : vector<10x32xf32> to vector<10xf32>
    %17 = vector.shape_cast %16 : vector<10xf32> to vector<10x1xf32>
    %cst_14 = arith.constant 3.200000e+01 : f32
    %18 = vector.broadcast %cst_14 : f32 to vector<10x1xf32>
    %19 = arith.divf %17, %18 : vector<10x1xf32>
    %20 = vector.broadcast %12 : vector<10x1xf32> to vector<10x32xf32>
    %21 = arith.subf %4, %20 : vector<10x32xf32>
    %cst_15 = arith.constant 9.99999997E-7 : f32
    %22 = vector.broadcast %cst_15 : f32 to vector<10x1xf32>
    %23 = arith.addf %19, %22 : vector<10x1xf32>
    %24 = math.rsqrt %23 : vector<10x1xf32>
    %25 = vector.broadcast %24 : vector<10x1xf32> to vector<10x32xf32>
    %26 = arith.mulf %21, %25 : vector<10x32xf32>
    %27 = vector.broadcast %6 : vector<1x32xf32> to vector<10x32xf32>
    %28 = arith.mulf %26, %27 : vector<10x32xf32>
    %29 = vector.broadcast %8 : vector<1x32xf32> to vector<10x32xf32>
    %30 = arith.addf %28, %29 : vector<10x32xf32>
    %31 = arith.truncf %30 : vector<10x32xf32> to vector<10x32xbf16>
    %c0_16 = arith.constant 0 : index
    %c0_17 = arith.constant 0 : index
    %c0_18 = arith.constant 0 : index
    %32 = vector.load %arg5[%c0_16, %c0_17, %c0_18] : memref<2x32x96xbf16, #tpu.memory_space<vmem>>, vector<1x32x96xbf16>
    %33 = vector.shape_cast %32 : vector<1x32x96xbf16> to vector<32x96xbf16>
    %cst_19 = arith.constant dense<0.000000e+00> : vector<10x96xf32>
    %34 = tpu.matmul %31, %33, %cst_19 {dimension_numbers = #tpu.dot_dimension_numbers<[1], [0], [0], [1], [0, 0, 1, 1], [], []>} : vector<10x32xbf16>, vector<32x96xbf16>, vector<10x96xf32> -> vector<10x96xf32>
    %c0_20 = arith.constant 0 : index
    %c0_21 = arith.constant 0 : index
    %c0_22 = arith.constant 0 : index
    %35 = vector.load %arg6[%c0_20, %c0_21, %c0_22] : memref<2x1x96xf32, #tpu.memory_space<vmem>>, vector<1x1x96xf32>
    %36 = vector.shape_cast %35 : vector<1x1x96xf32> to vector<1x96xf32>
    %37 = vector.broadcast %36 : vector<1x96xf32> to vector<10x96xf32>
    %38 = arith.addf %34, %37 : vector<10x96xf32>
    %c0_23 = arith.constant 0 : index
    %c0_24 = arith.constant 0 : index
    %39 = vector.load %arg21[%c0_23, %c0_24] : memref<10x96xf32, #tpu.memory_space<vmem>>, vector<10x96xf32>
    tpu.vector_store %arg21[%c0_23, %c0_24], %38 {strides = array<i32>} : memref<10x96xf32, #tpu.memory_space<vmem>>, vector<10x96xf32>,
    %c0_25 = arith.constant 0 : index
    %c0_26 = arith.constant 0 : index
    %40 = vector.load %arg21[%c0_25, %c0_26] : memref<10x96xf32, #tpu.memory_space<vmem>>, vector<5x8xf32>
    %41 = arith.truncf %40 : vector<5x8xf32> to vector<5x8xbf16>
    %c0_27 = arith.constant 0 : index
    %c32 = arith.constant 32 : index
    %42 = vector.load %arg21[%c0_27, %c32] : memref<10x96xf32, #tpu.memory_space<vmem>>, vector<5x8xf32>
    %43 = arith.truncf %42 : vector<5x8xf32> to vector<5x8xbf16>
    %c0_28 = arith.constant 0 : index
    %c64 = arith.constant 64 : index
    %44 = vector.load %arg21[%c0_28, %c64] : memref<10x96xf32, #tpu.memory_space<vmem>>, vector<5x8xf32>
    %45 = arith.truncf %44 : vector<5x8xf32> to vector<5x8xbf16>
    %cst_29 = arith.constant dense<0.000000e+00> : vector<5x5xf32>
    %46 = tpu.matmul %41, %43, %cst_29 {dimension_numbers = #tpu.dot_dimension_numbers<[1], [1], [0], [0], [0, 0, 1, 0], [], []>} : vector<5x8xbf16>, vector<5x8xbf16>, vector<5x5xf32> -> vector<5x5xf32>
    %cst_30 = arith.constant 0.353553385 : f32
    %47 = vector.broadcast %cst_30 : f32 to vector<5x5xf32>
    %48 = arith.mulf %46, %47 : vector<5x5xf32>
    %cst_31 = arith.constant dense<0xFF800000> : vector<5xf32>
    %49 = vector.multi_reduction <maximumf>, %48, %cst_31 [1] : vector<5x5xf32> to vector<5xf32>
    %50 = vector.shape_cast %49 : vector<5xf32> to vector<5x1xf32>
    %51 = vector.broadcast %50 : vector<5x1xf32> to vector<5x5xf32>
    %52 = arith.subf %48, %51 : vector<5x5xf32>
    %53 = math.exp %52 : vector<5x5xf32>
    %cst_32 = arith.constant dense<0.000000e+00> : vector<5xf32>
    %54 = vector.multi_reduction <add>, %53, %cst_32 [1] : vector<5x5xf32> to vector<5xf32>
    %55 = vector.shape_cast %54 : vector<5xf32> to vector<5x1xf32>
    %56 = vector.broadcast %55 : vector<5x1xf32> to vector<5x5xf32>
    %57 = arith.divf %53, %56 : vector<5x5xf32>
    %58 = arith.truncf %57 : vector<5x5xf32> to vector<5x5xbf16>
    %cst_33 = arith.constant dense<0.000000e+00> : vector<5x8xf32>
    %59 = tpu.matmul %58, %45, %cst_33 {dimension_numbers = #tpu.dot_dimension_numbers<[1], [0], [0], [1], [0, 0, 1, 1], [], []>} : vector<5x5xbf16>, vector<5x8xbf16>, vector<5x8xf32> -> vector<5x8xf32>
    %c0_34 = arith.constant 0 : index
    %c0_35 = arith.constant 0 : index
    %60 = vector.load %arg22[%c0_34, %c0_35] : memref<10x32xf32, #tpu.memory_space<vmem>>, vector<5x8xf32>
    tpu.vector_store %arg22[%c0_34, %c0_35], %59 {strides = array<i32>} : memref<10x32xf32, #tpu.memory_space<vmem>>, vector<5x8xf32>,
    %c0_36 = arith.constant 0 : index
    %c8 = arith.constant 8 : index
    %61 = vector.load %arg21[%c0_36, %c8] : memref<10x96xf32, #tpu.memory_space<vmem>>, vector<5x8xf32>
    %62 = arith.truncf %61 : vector<5x8xf32> to vector<5x8xbf16>
    %c0_37 = arith.constant 0 : index
    %c40 = arith.constant 40 : index
    %63 = vector.load %arg21[%c0_37, %c40] : memref<10x96xf32, #tpu.memory_space<vmem>>, vector<5x8xf32>
    %64 = arith.truncf %63 : vector<5x8xf32> to vector<5x8xbf16>
    %c0_38 = arith.constant 0 : index
    %c72 = arith.constant 72 : index
    %65 = vector.load %arg21[%c0_38, %c72] : memref<10x96xf32, #tpu.memory_space<vmem>>, vector<5x8xf32>
    %66 = arith.truncf %65 : vector<5x8xf32> to vector<5x8xbf16>
    %cst_39 = arith.constant dense<0.000000e+00> : vector<5x5xf32>
    %67 = tpu.matmul %62, %64, %cst_39 {dimension_numbers = #tpu.dot_dimension_numbers<[1], [1], [0], [0], [0, 0, 1, 0], [], []>} : vector<5x8xbf16>, vector<5x8xbf16>, vector<5x5xf32> -> vector<5x5xf32>
    %cst_40 = arith.constant 0.353553385 : f32
    %68 = vector.broadcast %cst_40 : f32 to vector<5x5xf32>
    %69 = arith.mulf %67, %68 : vector<5x5xf32>
    %cst_41 = arith.constant dense<0xFF800000> : vector<5xf32>
    %70 = vector.multi_reduction <maximumf>, %69, %cst_41 [1] : vector<5x5xf32> to vector<5xf32>
    %71 = vector.shape_cast %70 : vector<5xf32> to vector<5x1xf32>
    %72 = vector.broadcast %71 : vector<5x1xf32> to vector<5x5xf32>
    %73 = arith.subf %69, %72 : vector<5x5xf32>
    %74 = math.exp %73 : vector<5x5xf32>
    %cst_42 = arith.constant dense<0.000000e+00> : vector<5xf32>
    %75 = vector.multi_reduction <add>, %74, %cst_42 [1] : vector<5x5xf32> to vector<5xf32>
    %76 = vector.shape_cast %75 : vector<5xf32> to vector<5x1xf32>
    %77 = vector.broadcast %76 : vector<5x1xf32> to vector<5x5xf32>
    %78 = arith.divf %74, %77 : vector<5x5xf32>
    %79 = arith.truncf %78 : vector<5x5xf32> to vector<5x5xbf16>
    %cst_43 = arith.constant dense<0.000000e+00> : vector<5x8xf32>
    %80 = tpu.matmul %79, %66, %cst_43 {dimension_numbers = #tpu.dot_dimension_numbers<[1], [0], [0], [1], [0, 0, 1, 1], [], []>} : vector<5x5xbf16>, vector<5x8xbf16>, vector<5x8xf32> -> vector<5x8xf32>
    %c0_44 = arith.constant 0 : index
    %c8_45 = arith.constant 8 : index
    %81 = vector.load %arg22[%c0_44, %c8_45] : memref<10x32xf32, #tpu.memory_space<vmem>>, vector<5x8xf32>
    tpu.vector_store %arg22[%c0_44, %c8_45], %80 {strides = array<i32>} : memref<10x32xf32, #tpu.memory_space<vmem>>, vector<5x8xf32>,
    %c0_46 = arith.constant 0 : index
    %c16 = arith.constant 16 : index
    %82 = vector.load %arg21[%c0_46, %c16] : memref<10x96xf32, #tpu.memory_space<vmem>>, vector<5x8xf32>
    %83 = arith.truncf %82 : vector<5x8xf32> to vector<5x8xbf16>
    %c0_47 = arith.constant 0 : index
    %c48 = arith.constant 48 : index
    %84 = vector.load %arg21[%c0_47, %c48] : memref<10x96xf32, #tpu.memory_space<vmem>>, vector<5x8xf32>
    %85 = arith.truncf %84 : vector<5x8xf32> to vector<5x8xbf16>
    %c0_48 = arith.constant 0 : index
    %c80 = arith.constant 80 : index
    %86 = vector.load %arg21[%c0_48, %c80] : memref<10x96xf32, #tpu.memory_space<vmem>>, vector<5x8xf32>
    %87 = arith.truncf %86 : vector<5x8xf32> to vector<5x8xbf16>
    %cst_49 = arith.constant dense<0.000000e+00> : vector<5x5xf32>
    %88 = tpu.matmul %83, %85, %cst_49 {dimension_numbers = #tpu.dot_dimension_numbers<[1], [1], [0], [0], [0, 0, 1, 0], [], []>} : vector<5x8xbf16>, vector<5x8xbf16>, vector<5x5xf32> -> vector<5x5xf32>
    %cst_50 = arith.constant 0.353553385 : f32
    %89 = vector.broadcast %cst_50 : f32 to vector<5x5xf32>
    %90 = arith.mulf %88, %89 : vector<5x5xf32>
    %cst_51 = arith.constant dense<0xFF800000> : vector<5xf32>
    %91 = vector.multi_reduction <maximumf>, %90, %cst_51 [1] : vector<5x5xf32> to vector<5xf32>
    %92 = vector.shape_cast %91 : vector<5xf32> to vector<5x1xf32>
    %93 = vector.broadcast %92 : vector<5x1xf32> to vector<5x5xf32>
    %94 = arith.subf %90, %93 : vector<5x5xf32>
    %95 = math.exp %94 : vector<5x5xf32>
    %cst_52 = arith.constant dense<0.000000e+00> : vector<5xf32>
    %96 = vector.multi_reduction <add>, %95, %cst_52 [1] : vector<5x5xf32> to vector<5xf32>
    %97 = vector.shape_cast %96 : vector<5xf32> to vector<5x1xf32>
    %98 = vector.broadcast %97 : vector<5x1xf32> to vector<5x5xf32>
    %99 = arith.divf %95, %98 : vector<5x5xf32>
    %100 = arith.truncf %99 : vector<5x5xf32> to vector<5x5xbf16>
    %cst_53 = arith.constant dense<0.000000e+00> : vector<5x8xf32>
    %101 = tpu.matmul %100, %87, %cst_53 {dimension_numbers = #tpu.dot_dimension_numbers<[1], [0], [0], [1], [0, 0, 1, 1], [], []>} : vector<5x5xbf16>, vector<5x8xbf16>, vector<5x8xf32> -> vector<5x8xf32>
    %c0_54 = arith.constant 0 : index
    %c16_55 = arith.constant 16 : index
    %102 = vector.load %arg22[%c0_54, %c16_55] : memref<10x32xf32, #tpu.memory_space<vmem>>, vector<5x8xf32>
    tpu.vector_store %arg22[%c0_54, %c16_55], %101 {strides = array<i32>} : memref<10x32xf32, #tpu.memory_space<vmem>>, vector<5x8xf32>,
    %c0_56 = arith.constant 0 : index
    %c24 = arith.constant 24 : index
    %103 = vector.load %arg21[%c0_56, %c24] : memref<10x96xf32, #tpu.memory_space<vmem>>, vector<5x8xf32>
    %104 = arith.truncf %103 : vector<5x8xf32> to vector<5x8xbf16>
    %c0_57 = arith.constant 0 : index
    %c56 = arith.constant 56 : index
    %105 = vector.load %arg21[%c0_57, %c56] : memref<10x96xf32, #tpu.memory_space<vmem>>, vector<5x8xf32>
    %106 = arith.truncf %105 : vector<5x8xf32> to vector<5x8xbf16>
    %c0_58 = arith.constant 0 : index
    %c88 = arith.constant 88 : index
    %107 = vector.load %arg21[%c0_58, %c88] : memref<10x96xf32, #tpu.memory_space<vmem>>, vector<5x8xf32>
    %108 = arith.truncf %107 : vector<5x8xf32> to vector<5x8xbf16>
    %cst_59 = arith.constant dense<0.000000e+00> : vector<5x5xf32>
    %109 = tpu.matmul %104, %106, %cst_59 {dimension_numbers = #tpu.dot_dimension_numbers<[1], [1], [0], [0], [0, 0, 1, 0], [], []>} : vector<5x8xbf16>, vector<5x8xbf16>, vector<5x5xf32> -> vector<5x5xf32>
    %cst_60 = arith.constant 0.353553385 : f32
    %110 = vector.broadcast %cst_60 : f32 to vector<5x5xf32>
    %111 = arith.mulf %109, %110 : vector<5x5xf32>
    %cst_61 = arith.constant dense<0xFF800000> : vector<5xf32>
    %112 = vector.multi_reduction <maximumf>, %111, %cst_61 [1] : vector<5x5xf32> to vector<5xf32>
    %113 = vector.shape_cast %112 : vector<5xf32> to vector<5x1xf32>
    %114 = vector.broadcast %113 : vector<5x1xf32> to vector<5x5xf32>
    %115 = arith.subf %111, %114 : vector<5x5xf32>
    %116 = math.exp %115 : vector<5x5xf32>
    %cst_62 = arith.constant dense<0.000000e+00> : vector<5xf32>
    %117 = vector.multi_reduction <add>, %116, %cst_62 [1] : vector<5x5xf32> to vector<5xf32>
    %118 = vector.shape_cast %117 : vector<5xf32> to vector<5x1xf32>
    %119 = vector.broadcast %118 : vector<5x1xf32> to vector<5x5xf32>
    %120 = arith.divf %116, %119 : vector<5x5xf32>
    %121 = arith.truncf %120 : vector<5x5xf32> to vector<5x5xbf16>
    %cst_63 = arith.constant dense<0.000000e+00> : vector<5x8xf32>
    %122 = tpu.matmul %121, %108, %cst_63 {dimension_numbers = #tpu.dot_dimension_numbers<[1], [0], [0], [1], [0, 0, 1, 1], [], []>} : vector<5x5xbf16>, vector<5x8xbf16>, vector<5x8xf32> -> vector<5x8xf32>
    %c0_64 = arith.constant 0 : index
    %c24_65 = arith.constant 24 : index
    %123 = vector.load %arg22[%c0_64, %c24_65] : memref<10x32xf32, #tpu.memory_space<vmem>>, vector<5x8xf32>
    tpu.vector_store %arg22[%c0_64, %c24_65], %122 {strides = array<i32>} : memref<10x32xf32, #tpu.memory_space<vmem>>, vector<5x8xf32>,
    %c5 = arith.constant 5 : index
    %c0_66 = arith.constant 0 : index
    %124 = vector.load %arg21[%c5, %c0_66] : memref<10x96xf32, #tpu.memory_space<vmem>>, vector<5x8xf32>
    %125 = arith.truncf %124 : vector<5x8xf32> to vector<5x8xbf16>
    %c5_67 = arith.constant 5 : index
    %c32_68 = arith.constant 32 : index
    %126 = vector.load %arg21[%c5_67, %c32_68] : memref<10x96xf32, #tpu.memory_space<vmem>>, vector<5x8xf32>
    %127 = arith.truncf %126 : vector<5x8xf32> to vector<5x8xbf16>
    %c5_69 = arith.constant 5 : index
    %c64_70 = arith.constant 64 : index
    %128 = vector.load %arg21[%c5_69, %c64_70] : memref<10x96xf32, #tpu.memory_space<vmem>>, vector<5x8xf32>
    %129 = arith.truncf %128 : vector<5x8xf32> to vector<5x8xbf16>
    %cst_71 = arith.constant dense<0.000000e+00> : vector<5x5xf32>
    %130 = tpu.matmul %125, %127, %cst_71 {dimension_numbers = #tpu.dot_dimension_numbers<[1], [1], [0], [0], [0, 0, 1, 0], [], []>} : vector<5x8xbf16>, vector<5x8xbf16>, vector<5x5xf32> -> vector<5x5xf32>
    %cst_72 = arith.constant 0.353553385 : f32
    %131 = vector.broadcast %cst_72 : f32 to vector<5x5xf32>
    %132 = arith.mulf %130, %131 : vector<5x5xf32>
    %cst_73 = arith.constant dense<0xFF800000> : vector<5xf32>
    %133 = vector.multi_reduction <maximumf>, %132, %cst_73 [1] : vector<5x5xf32> to vector<5xf32>
    %134 = vector.shape_cast %133 : vector<5xf32> to vector<5x1xf32>
    %135 = vector.broadcast %134 : vector<5x1xf32> to vector<5x5xf32>
    %136 = arith.subf %132, %135 : vector<5x5xf32>
    %137 = math.exp %136 : vector<5x5xf32>
    %cst_74 = arith.constant dense<0.000000e+00> : vector<5xf32>
    %138 = vector.multi_reduction <add>, %137, %cst_74 [1] : vector<5x5xf32> to vector<5xf32>
    %139 = vector.shape_cast %138 : vector<5xf32> to vector<5x1xf32>
    %140 = vector.broadcast %139 : vector<5x1xf32> to vector<5x5xf32>
    %141 = arith.divf %137, %140 : vector<5x5xf32>
    %142 = arith.truncf %141 : vector<5x5xf32> to vector<5x5xbf16>
    %cst_75 = arith.constant dense<0.000000e+00> : vector<5x8xf32>
    %143 = tpu.matmul %142, %129, %cst_75 {dimension_numbers = #tpu.dot_dimension_numbers<[1], [0], [0], [1], [0, 0, 1, 1], [], []>} : vector<5x5xbf16>, vector<5x8xbf16>, vector<5x8xf32> -> vector<5x8xf32>
    %c5_76 = arith.constant 5 : index
    %c0_77 = arith.constant 0 : index
    %144 = vector.load %arg22[%c5_76, %c0_77] : memref<10x32xf32, #tpu.memory_space<vmem>>, vector<5x8xf32>
    tpu.vector_store %arg22[%c5_76, %c0_77], %143 {strides = array<i32>} : memref<10x32xf32, #tpu.memory_space<vmem>>, vector<5x8xf32>,
    %c5_78 = arith.constant 5 : index
    %c8_79 = arith.constant 8 : index
    %145 = vector.load %arg21[%c5_78, %c8_79] : memref<10x96xf32, #tpu.memory_space<vmem>>, vector<5x8xf32>
    %146 = arith.truncf %145 : vector<5x8xf32> to vector<5x8xbf16>
    %c5_80 = arith.constant 5 : index
    %c40_81 = arith.constant 40 : index
    %147 = vector.load %arg21[%c5_80, %c40_81] : memref<10x96xf32, #tpu.memory_space<vmem>>, vector<5x8xf32>
    %148 = arith.truncf %147 : vector<5x8xf32> to vector<5x8xbf16>
    %c5_82 = arith.constant 5 : index
    %c72_83 = arith.constant 72 : index
    %149 = vector.load %arg21[%c5_82, %c72_83] : memref<10x96xf32, #tpu.memory_space<vmem>>, vector<5x8xf32>
    %150 = arith.truncf %149 : vector<5x8xf32> to vector<5x8xbf16>
    %cst_84 = arith.constant dense<0.000000e+00> : vector<5x5xf32>
    %151 = tpu.matmul %146, %148, %cst_84 {dimension_numbers = #tpu.dot_dimension_numbers<[1], [1], [0], [0], [0, 0, 1, 0], [], []>} : vector<5x8xbf16>, vector<5x8xbf16>, vector<5x5xf32> -> vector<5x5xf32>
    %cst_85 = arith.constant 0.353553385 : f32
    %152 = vector.broadcast %cst_85 : f32 to vector<5x5xf32>
    %153 = arith.mulf %151, %152 : vector<5x5xf32>
    %cst_86 = arith.constant dense<0xFF800000> : vector<5xf32>
    %154 = vector.multi_reduction <maximumf>, %153, %cst_86 [1] : vector<5x5xf32> to vector<5xf32>
    %155 = vector.shape_cast %154 : vector<5xf32> to vector<5x1xf32>
    %156 = vector.broadcast %155 : vector<5x1xf32> to vector<5x5xf32>
    %157 = arith.subf %153, %156 : vector<5x5xf32>
    %158 = math.exp %157 : vector<5x5xf32>
    %cst_87 = arith.constant dense<0.000000e+00> : vector<5xf32>
    %159 = vector.multi_reduction <add>, %158, %cst_87 [1] : vector<5x5xf32> to vector<5xf32>
    %160 = vector.shape_cast %159 : vector<5xf32> to vector<5x1xf32>
    %161 = vector.broadcast %160 : vector<5x1xf32> to vector<5x5xf32>
    %162 = arith.divf %158, %161 : vector<5x5xf32>
    %163 = arith.truncf %162 : vector<5x5xf32> to vector<5x5xbf16>
    %cst_88 = arith.constant dense<0.000000e+00> : vector<5x8xf32>
    %164 = tpu.matmul %163, %150, %cst_88 {dimension_numbers = #tpu.dot_dimension_numbers<[1], [0], [0], [1], [0, 0, 1, 1], [], []>} : vector<5x5xbf16>, vector<5x8xbf16>, vector<5x8xf32> -> vector<5x8xf32>
    %c5_89 = arith.constant 5 : index
    %c8_90 = arith.constant 8 : index
    %165 = vector.load %arg22[%c5_89, %c8_90] : memref<10x32xf32, #tpu.memory_space<vmem>>, vector<5x8xf32>
    tpu.vector_store %arg22[%c5_89, %c8_90], %164 {strides = array<i32>} : memref<10x32xf32, #tpu.memory_space<vmem>>, vector<5x8xf32>,
    %c5_91 = arith.constant 5 : index
    %c16_92 = arith.constant 16 : index
    %166 = vector.load %arg21[%c5_91, %c16_92] : memref<10x96xf32, #tpu.memory_space<vmem>>, vector<5x8xf32>
    %167 = arith.truncf %166 : vector<5x8xf32> to vector<5x8xbf16>
    %c5_93 = arith.constant 5 : index
    %c48_94 = arith.constant 48 : index
    %168 = vector.load %arg21[%c5_93, %c48_94] : memref<10x96xf32, #tpu.memory_space<vmem>>, vector<5x8xf32>
    %169 = arith.truncf %168 : vector<5x8xf32> to vector<5x8xbf16>
    %c5_95 = arith.constant 5 : index
    %c80_96 = arith.constant 80 : index
    %170 = vector.load %arg21[%c5_95, %c80_96] : memref<10x96xf32, #tpu.memory_space<vmem>>, vector<5x8xf32>
    %171 = arith.truncf %170 : vector<5x8xf32> to vector<5x8xbf16>
    %cst_97 = arith.constant dense<0.000000e+00> : vector<5x5xf32>
    %172 = tpu.matmul %167, %169, %cst_97 {dimension_numbers = #tpu.dot_dimension_numbers<[1], [1], [0], [0], [0, 0, 1, 0], [], []>} : vector<5x8xbf16>, vector<5x8xbf16>, vector<5x5xf32> -> vector<5x5xf32>
    %cst_98 = arith.constant 0.353553385 : f32
    %173 = vector.broadcast %cst_98 : f32 to vector<5x5xf32>
    %174 = arith.mulf %172, %173 : vector<5x5xf32>
    %cst_99 = arith.constant dense<0xFF800000> : vector<5xf32>
    %175 = vector.multi_reduction <maximumf>, %174, %cst_99 [1] : vector<5x5xf32> to vector<5xf32>
    %176 = vector.shape_cast %175 : vector<5xf32> to vector<5x1xf32>
    %177 = vector.broadcast %176 : vector<5x1xf32> to vector<5x5xf32>
    %178 = arith.subf %174, %177 : vector<5x5xf32>
    %179 = math.exp %178 : vector<5x5xf32>
    %cst_100 = arith.constant dense<0.000000e+00> : vector<5xf32>
    %180 = vector.multi_reduction <add>, %179, %cst_100 [1] : vector<5x5xf32> to vector<5xf32>
    %181 = vector.shape_cast %180 : vector<5xf32> to vector<5x1xf32>
    %182 = vector.broadcast %181 : vector<5x1xf32> to vector<5x5xf32>
    %183 = arith.divf %179, %182 : vector<5x5xf32>
    %184 = arith.truncf %183 : vector<5x5xf32> to vector<5x5xbf16>
    %cst_101 = arith.constant dense<0.000000e+00> : vector<5x8xf32>
    %185 = tpu.matmul %184, %171, %cst_101 {dimension_numbers = #tpu.dot_dimension_numbers<[1], [0], [0], [1], [0, 0, 1, 1], [], []>} : vector<5x5xbf16>, vector<5x8xbf16>, vector<5x8xf32> -> vector<5x8xf32>
    %c5_102 = arith.constant 5 : index
    %c16_103 = arith.constant 16 : index
    %186 = vector.load %arg22[%c5_102, %c16_103] : memref<10x32xf32, #tpu.memory_space<vmem>>, vector<5x8xf32>
    tpu.vector_store %arg22[%c5_102, %c16_103], %185 {strides = array<i32>} : memref<10x32xf32, #tpu.memory_space<vmem>>, vector<5x8xf32>,
    %c5_104 = arith.constant 5 : index
    %c24_105 = arith.constant 24 : index
    %187 = vector.load %arg21[%c5_104, %c24_105] : memref<10x96xf32, #tpu.memory_space<vmem>>, vector<5x8xf32>
    %188 = arith.truncf %187 : vector<5x8xf32> to vector<5x8xbf16>
    %c5_106 = arith.constant 5 : index
    %c56_107 = arith.constant 56 : index
    %189 = vector.load %arg21[%c5_106, %c56_107] : memref<10x96xf32, #tpu.memory_space<vmem>>, vector<5x8xf32>
    %190 = arith.truncf %189 : vector<5x8xf32> to vector<5x8xbf16>
    %c5_108 = arith.constant 5 : index
    %c88_109 = arith.constant 88 : index
    %191 = vector.load %arg21[%c5_108, %c88_109] : memref<10x96xf32, #tpu.memory_space<vmem>>, vector<5x8xf32>
    %192 = arith.truncf %191 : vector<5x8xf32> to vector<5x8xbf16>
    %cst_110 = arith.constant dense<0.000000e+00> : vector<5x5xf32>
    %193 = tpu.matmul %188, %190, %cst_110 {dimension_numbers = #tpu.dot_dimension_numbers<[1], [1], [0], [0], [0, 0, 1, 0], [], []>} : vector<5x8xbf16>, vector<5x8xbf16>, vector<5x5xf32> -> vector<5x5xf32>
    %cst_111 = arith.constant 0.353553385 : f32
    %194 = vector.broadcast %cst_111 : f32 to vector<5x5xf32>
    %195 = arith.mulf %193, %194 : vector<5x5xf32>
    %cst_112 = arith.constant dense<0xFF800000> : vector<5xf32>
    %196 = vector.multi_reduction <maximumf>, %195, %cst_112 [1] : vector<5x5xf32> to vector<5xf32>
    %197 = vector.shape_cast %196 : vector<5xf32> to vector<5x1xf32>
    %198 = vector.broadcast %197 : vector<5x1xf32> to vector<5x5xf32>
    %199 = arith.subf %195, %198 : vector<5x5xf32>
    %200 = math.exp %199 : vector<5x5xf32>
    %cst_113 = arith.constant dense<0.000000e+00> : vector<5xf32>
    %201 = vector.multi_reduction <add>, %200, %cst_113 [1] : vector<5x5xf32> to vector<5xf32>
    %202 = vector.shape_cast %201 : vector<5xf32> to vector<5x1xf32>
    %203 = vector.broadcast %202 : vector<5x1xf32> to vector<5x5xf32>
    %204 = arith.divf %200, %203 : vector<5x5xf32>
    %205 = arith.truncf %204 : vector<5x5xf32> to vector<5x5xbf16>
    %cst_114 = arith.constant dense<0.000000e+00> : vector<5x8xf32>
    %206 = tpu.matmul %205, %192, %cst_114 {dimension_numbers = #tpu.dot_dimension_numbers<[1], [0], [0], [1], [0, 0, 1, 1], [], []>} : vector<5x5xbf16>, vector<5x8xbf16>, vector<5x8xf32> -> vector<5x8xf32>
    %c5_115 = arith.constant 5 : index
    %c24_116 = arith.constant 24 : index
    %207 = vector.load %arg22[%c5_115, %c24_116] : memref<10x32xf32, #tpu.memory_space<vmem>>, vector<5x8xf32>
    tpu.vector_store %arg22[%c5_115, %c24_116], %206 {strides = array<i32>} : memref<10x32xf32, #tpu.memory_space<vmem>>, vector<5x8xf32>,
    %c0_117 = arith.constant 0 : index
    %c0_118 = arith.constant 0 : index
    %208 = vector.load %arg22[%c0_117, %c0_118] : memref<10x32xf32, #tpu.memory_space<vmem>>, vector<10x32xf32>
    %209 = arith.truncf %208 : vector<10x32xf32> to vector<10x32xbf16>
    %c0_119 = arith.constant 0 : index
    %c0_120 = arith.constant 0 : index
    %c0_121 = arith.constant 0 : index
    %210 = vector.load %arg7[%c0_119, %c0_120, %c0_121] : memref<2x32x32xbf16, #tpu.memory_space<vmem>>, vector<1x32x32xbf16>
    %211 = vector.shape_cast %210 : vector<1x32x32xbf16> to vector<32x32xbf16>
    %cst_122 = arith.constant dense<0.000000e+00> : vector<10x32xf32>
    %212 = tpu.matmul %209, %211, %cst_122 {dimension_numbers = #tpu.dot_dimension_numbers<[1], [0], [0], [1], [0, 0, 1, 1], [], []>} : vector<10x32xbf16>, vector<32x32xbf16>, vector<10x32xf32> -> vector<10x32xf32>
    %c0_123 = arith.constant 0 : index
    %c0_124 = arith.constant 0 : index
    %c0_125 = arith.constant 0 : index
    %213 = vector.load %arg8[%c0_123, %c0_124, %c0_125] : memref<2x1x32xf32, #tpu.memory_space<vmem>>, vector<1x1x32xf32>
    %214 = vector.shape_cast %213 : vector<1x1x32xf32> to vector<1x32xf32>
    %215 = vector.broadcast %214 : vector<1x32xf32> to vector<10x32xf32>
    %216 = arith.addf %212, %215 : vector<10x32xf32>
    %217 = arith.addf %4, %216 : vector<10x32xf32>
    %c0_126 = arith.constant 0 : index
    %c0_127 = arith.constant 0 : index
    %c0_128 = arith.constant 0 : index
    %218 = vector.load %arg9[%c0_126, %c0_127, %c0_128] : memref<2x1x32xf32, #tpu.memory_space<vmem>>, vector<1x1x32xf32>
    %219 = vector.shape_cast %218 : vector<1x1x32xf32> to vector<1x32xf32>
    %c0_129 = arith.constant 0 : index
    %c0_130 = arith.constant 0 : index
    %c0_131 = arith.constant 0 : index
    %220 = vector.load %arg10[%c0_129, %c0_130, %c0_131] : memref<2x1x32xf32, #tpu.memory_space<vmem>>, vector<1x1x32xf32>
    %221 = vector.shape_cast %220 : vector<1x1x32xf32> to vector<1x32xf32>
    %cst_132 = arith.constant dense<0.000000e+00> : vector<10xf32>
    %222 = vector.multi_reduction <add>, %217, %cst_132 [1] : vector<10x32xf32> to vector<10xf32>
    %223 = vector.shape_cast %222 : vector<10xf32> to vector<10x1xf32>
    %cst_133 = arith.constant 3.200000e+01 : f32
    %224 = vector.broadcast %cst_133 : f32 to vector<10x1xf32>
    %225 = arith.divf %223, %224 : vector<10x1xf32>
    %226 = vector.broadcast %225 : vector<10x1xf32> to vector<10x32xf32>
    %227 = arith.subf %217, %226 : vector<10x32xf32>
    %228 = arith.mulf %227, %227 : vector<10x32xf32>
    %cst_134 = arith.constant dense<0.000000e+00> : vector<10xf32>
    %229 = vector.multi_reduction <add>, %228, %cst_134 [1] : vector<10x32xf32> to vector<10xf32>
    %230 = vector.shape_cast %229 : vector<10xf32> to vector<10x1xf32>
    %cst_135 = arith.constant 3.200000e+01 : f32
    %231 = vector.broadcast %cst_135 : f32 to vector<10x1xf32>
    %232 = arith.divf %230, %231 : vector<10x1xf32>
    %233 = vector.broadcast %225 : vector<10x1xf32> to vector<10x32xf32>
    %234 = arith.subf %217, %233 : vector<10x32xf32>
    %cst_136 = arith.constant 9.99999997E-7 : f32
    %235 = vector.broadcast %cst_136 : f32 to vector<10x1xf32>
    %236 = arith.addf %232, %235 : vector<10x1xf32>
    %237 = math.rsqrt %236 : vector<10x1xf32>
    %238 = vector.broadcast %237 : vector<10x1xf32> to vector<10x32xf32>
    %239 = arith.mulf %234, %238 : vector<10x32xf32>
    %240 = vector.broadcast %219 : vector<1x32xf32> to vector<10x32xf32>
    %241 = arith.mulf %239, %240 : vector<10x32xf32>
    %242 = vector.broadcast %221 : vector<1x32xf32> to vector<10x32xf32>
    %243 = arith.addf %241, %242 : vector<10x32xf32>
    %244 = arith.truncf %243 : vector<10x32xf32> to vector<10x32xbf16>
    %c0_137 = arith.constant 0 : index
    %c0_138 = arith.constant 0 : index
    %c0_139 = arith.constant 0 : index
    %245 = vector.load %arg11[%c0_137, %c0_138, %c0_139] : memref<2x32x128xbf16, #tpu.memory_space<vmem>>, vector<1x32x128xbf16>
    %246 = vector.shape_cast %245 : vector<1x32x128xbf16> to vector<32x128xbf16>
    %cst_140 = arith.constant dense<0.000000e+00> : vector<10x128xf32>
    %247 = tpu.matmul %244, %246, %cst_140 {dimension_numbers = #tpu.dot_dimension_numbers<[1], [0], [0], [1], [0, 0, 1, 1], [], []>} : vector<10x32xbf16>, vector<32x128xbf16>, vector<10x128xf32> -> vector<10x128xf32>
    %c0_141 = arith.constant 0 : index
    %c0_142 = arith.constant 0 : index
    %c0_143 = arith.constant 0 : index
    %248 = vector.load %arg12[%c0_141, %c0_142, %c0_143] : memref<2x1x128xf32, #tpu.memory_space<vmem>>, vector<1x1x128xf32>
    %249 = vector.shape_cast %248 : vector<1x1x128xf32> to vector<1x128xf32>
    %250 = vector.broadcast %249 : vector<1x128xf32> to vector<10x128xf32>
    %251 = arith.addf %247, %250 : vector<10x128xf32>
    %252 = arith.mulf %251, %251 : vector<10x128xf32>
    %253 = arith.mulf %251, %252 : vector<10x128xf32>
    %cst_144 = arith.constant 4.471500e-02 : f32
    %254 = vector.broadcast %cst_144 : f32 to vector<10x128xf32>
    %255 = arith.mulf %254, %253 : vector<10x128xf32>
    %256 = arith.addf %251, %255 : vector<10x128xf32>
    %cst_145 = arith.constant 0.797884583 : f32
    %257 = vector.broadcast %cst_145 : f32 to vector<10x128xf32>
    %258 = arith.mulf %257, %256 : vector<10x128xf32>
    %259 = math.tanh %258 : vector<10x128xf32>
    %cst_146 = arith.constant 1.000000e+00 : f32
    %260 = vector.broadcast %cst_146 : f32 to vector<10x128xf32>
    %261 = arith.addf %260, %259 : vector<10x128xf32>
    %cst_147 = arith.constant 5.000000e-01 : f32
    %262 = vector.broadcast %cst_147 : f32 to vector<10x128xf32>
    %263 = arith.mulf %262, %261 : vector<10x128xf32>
    %264 = arith.mulf %251, %263 : vector<10x128xf32>
    %265 = arith.truncf %264 : vector<10x128xf32> to vector<10x128xbf16>
    %c0_148 = arith.constant 0 : index
    %c0_149 = arith.constant 0 : index
    %c0_150 = arith.constant 0 : index
    %266 = vector.load %arg13[%c0_148, %c0_149, %c0_150] : memref<2x128x32xbf16, #tpu.memory_space<vmem>>, vector<1x128x32xbf16>
    %267 = vector.shape_cast %266 : vector<1x128x32xbf16> to vector<128x32xbf16>
    %cst_151 = arith.constant dense<0.000000e+00> : vector<10x32xf32>
    %268 = tpu.matmul %265, %267, %cst_151 {dimension_numbers = #tpu.dot_dimension_numbers<[1], [0], [0], [1], [0, 0, 1, 1], [], []>} : vector<10x128xbf16>, vector<128x32xbf16>, vector<10x32xf32> -> vector<10x32xf32>
    %c0_152 = arith.constant 0 : index
    %c0_153 = arith.constant 0 : index
    %c0_154 = arith.constant 0 : index
    %269 = vector.load %arg14[%c0_152, %c0_153, %c0_154] : memref<2x1x32xf32, #tpu.memory_space<vmem>>, vector<1x1x32xf32>
    %270 = vector.shape_cast %269 : vector<1x1x32xf32> to vector<1x32xf32>
    %271 = vector.broadcast %270 : vector<1x32xf32> to vector<10x32xf32>
    %272 = arith.addf %268, %271 : vector<10x32xf32>
    %273 = arith.addf %217, %272 : vector<10x32xf32>
    %c1 = arith.constant 1 : index
    %c0_155 = arith.constant 0 : index
    %c0_156 = arith.constant 0 : index
    %274 = vector.load %arg3[%c1, %c0_155, %c0_156] : memref<2x1x32xf32, #tpu.memory_space<vmem>>, vector<1x1x32xf32>
    %275 = vector.shape_cast %274 : vector<1x1x32xf32> to vector<1x32xf32>
    %c1_157 = arith.constant 1 : index
    %c0_158 = arith.constant 0 : index
    %c0_159 = arith.constant 0 : index
    %276 = vector.load %arg4[%c1_157, %c0_158, %c0_159] : memref<2x1x32xf32, #tpu.memory_space<vmem>>, vector<1x1x32xf32>
    %277 = vector.shape_cast %276 : vector<1x1x32xf32> to vector<1x32xf32>
    %cst_160 = arith.constant dense<0.000000e+00> : vector<10xf32>
    %278 = vector.multi_reduction <add>, %273, %cst_160 [1] : vector<10x32xf32> to vector<10xf32>
    %279 = vector.shape_cast %278 : vector<10xf32> to vector<10x1xf32>
    %cst_161 = arith.constant 3.200000e+01 : f32
    %280 = vector.broadcast %cst_161 : f32 to vector<10x1xf32>
    %281 = arith.divf %279, %280 : vector<10x1xf32>
    %282 = vector.broadcast %281 : vector<10x1xf32> to vector<10x32xf32>
    %283 = arith.subf %273, %282 : vector<10x32xf32>
    %284 = arith.mulf %283, %283 : vector<10x32xf32>
    %cst_162 = arith.constant dense<0.000000e+00> : vector<10xf32>
    %285 = vector.multi_reduction <add>, %284, %cst_162 [1] : vector<10x32xf32> to vector<10xf32>
    %286 = vector.shape_cast %285 : vector<10xf32> to vector<10x1xf32>
    %cst_163 = arith.constant 3.200000e+01 : f32
    %287 = vector.broadcast %cst_163 : f32 to vector<10x1xf32>
    %288 = arith.divf %286, %287 : vector<10x1xf32>
    %289 = vector.broadcast %281 : vector<10x1xf32> to vector<10x32xf32>
    %290 = arith.subf %273, %289 : vector<10x32xf32>
    %cst_164 = arith.constant 9.99999997E-7 : f32
    %291 = vector.broadcast %cst_164 : f32 to vector<10x1xf32>
    %292 = arith.addf %288, %291 : vector<10x1xf32>
    %293 = math.rsqrt %292 : vector<10x1xf32>
    %294 = vector.broadcast %293 : vector<10x1xf32> to vector<10x32xf32>
    %295 = arith.mulf %290, %294 : vector<10x32xf32>
    %296 = vector.broadcast %275 : vector<1x32xf32> to vector<10x32xf32>
    %297 = arith.mulf %295, %296 : vector<10x32xf32>
    %298 = vector.broadcast %277 : vector<1x32xf32> to vector<10x32xf32>
    %299 = arith.addf %297, %298 : vector<10x32xf32>
    %300 = arith.truncf %299 : vector<10x32xf32> to vector<10x32xbf16>
    %c1_165 = arith.constant 1 : index
    %c0_166 = arith.constant 0 : index
    %c0_167 = arith.constant 0 : index
    %301 = vector.load %arg5[%c1_165, %c0_166, %c0_167] : memref<2x32x96xbf16, #tpu.memory_space<vmem>>, vector<1x32x96xbf16>
    %302 = vector.shape_cast %301 : vector<1x32x96xbf16> to vector<32x96xbf16>
    %cst_168 = arith.constant dense<0.000000e+00> : vector<10x96xf32>
    %303 = tpu.matmul %300, %302, %cst_168 {dimension_numbers = #tpu.dot_dimension_numbers<[1], [0], [0], [1], [0, 0, 1, 1], [], []>} : vector<10x32xbf16>, vector<32x96xbf16>, vector<10x96xf32> -> vector<10x96xf32>
    %c1_169 = arith.constant 1 : index
    %c0_170 = arith.constant 0 : index
    %c0_171 = arith.constant 0 : index
    %304 = vector.load %arg6[%c1_169, %c0_170, %c0_171] : memref<2x1x96xf32, #tpu.memory_space<vmem>>, vector<1x1x96xf32>
    %305 = vector.shape_cast %304 : vector<1x1x96xf32> to vector<1x96xf32>
    %306 = vector.broadcast %305 : vector<1x96xf32> to vector<10x96xf32>
    %307 = arith.addf %303, %306 : vector<10x96xf32>
    %c0_172 = arith.constant 0 : index
    %c0_173 = arith.constant 0 : index
    %308 = vector.load %arg21[%c0_172, %c0_173] : memref<10x96xf32, #tpu.memory_space<vmem>>, vector<10x96xf32>
    tpu.vector_store %arg21[%c0_172, %c0_173], %307 {strides = array<i32>} : memref<10x96xf32, #tpu.memory_space<vmem>>, vector<10x96xf32>,
    %c0_174 = arith.constant 0 : index
    %c0_175 = arith.constant 0 : index
    %309 = vector.load %arg21[%c0_174, %c0_175] : memref<10x96xf32, #tpu.memory_space<vmem>>, vector<5x8xf32>
    %310 = arith.truncf %309 : vector<5x8xf32> to vector<5x8xbf16>
    %c0_176 = arith.constant 0 : index
    %c32_177 = arith.constant 32 : index
    %311 = vector.load %arg21[%c0_176, %c32_177] : memref<10x96xf32, #tpu.memory_space<vmem>>, vector<5x8xf32>
    %312 = arith.truncf %311 : vector<5x8xf32> to vector<5x8xbf16>
    %c0_178 = arith.constant 0 : index
    %c64_179 = arith.constant 64 : index
    %313 = vector.load %arg21[%c0_178, %c64_179] : memref<10x96xf32, #tpu.memory_space<vmem>>, vector<5x8xf32>
    %314 = arith.truncf %313 : vector<5x8xf32> to vector<5x8xbf16>
    %cst_180 = arith.constant dense<0.000000e+00> : vector<5x5xf32>
    %315 = tpu.matmul %310, %312, %cst_180 {dimension_numbers = #tpu.dot_dimension_numbers<[1], [1], [0], [0], [0, 0, 1, 0], [], []>} : vector<5x8xbf16>, vector<5x8xbf16>, vector<5x5xf32> -> vector<5x5xf32>
    %cst_181 = arith.constant 0.353553385 : f32
    %316 = vector.broadcast %cst_181 : f32 to vector<5x5xf32>
    %317 = arith.mulf %315, %316 : vector<5x5xf32>
    %cst_182 = arith.constant dense<0xFF800000> : vector<5xf32>
    %318 = vector.multi_reduction <maximumf>, %317, %cst_182 [1] : vector<5x5xf32> to vector<5xf32>
    %319 = vector.shape_cast %318 : vector<5xf32> to vector<5x1xf32>
    %320 = vector.broadcast %319 : vector<5x1xf32> to vector<5x5xf32>
    %321 = arith.subf %317, %320 : vector<5x5xf32>
    %322 = math.exp %321 : vector<5x5xf32>
    %cst_183 = arith.constant dense<0.000000e+00> : vector<5xf32>
    %323 = vector.multi_reduction <add>, %322, %cst_183 [1] : vector<5x5xf32> to vector<5xf32>
    %324 = vector.shape_cast %323 : vector<5xf32> to vector<5x1xf32>
    %325 = vector.broadcast %324 : vector<5x1xf32> to vector<5x5xf32>
    %326 = arith.divf %322, %325 : vector<5x5xf32>
    %327 = arith.truncf %326 : vector<5x5xf32> to vector<5x5xbf16>
    %cst_184 = arith.constant dense<0.000000e+00> : vector<5x8xf32>
    %328 = tpu.matmul %327, %314, %cst_184 {dimension_numbers = #tpu.dot_dimension_numbers<[1], [0], [0], [1], [0, 0, 1, 1], [], []>} : vector<5x5xbf16>, vector<5x8xbf16>, vector<5x8xf32> -> vector<5x8xf32>
    %c0_185 = arith.constant 0 : index
    %c0_186 = arith.constant 0 : index
    %329 = vector.load %arg22[%c0_185, %c0_186] : memref<10x32xf32, #tpu.memory_space<vmem>>, vector<5x8xf32>
    tpu.vector_store %arg22[%c0_185, %c0_186], %328 {strides = array<i32>} : memref<10x32xf32, #tpu.memory_space<vmem>>, vector<5x8xf32>,
    %c0_187 = arith.constant 0 : index
    %c8_188 = arith.constant 8 : index
    %330 = vector.load %arg21[%c0_187, %c8_188] : memref<10x96xf32, #tpu.memory_space<vmem>>, vector<5x8xf32>
    %331 = arith.truncf %330 : vector<5x8xf32> to vector<5x8xbf16>
    %c0_189 = arith.constant 0 : index
    %c40_190 = arith.constant 40 : index
    %332 = vector.load %arg21[%c0_189, %c40_190] : memref<10x96xf32, #tpu.memory_space<vmem>>, vector<5x8xf32>
    %333 = arith.truncf %332 : vector<5x8xf32> to vector<5x8xbf16>
    %c0_191 = arith.constant 0 : index
    %c72_192 = arith.constant 72 : index
    %334 = vector.load %arg21[%c0_191, %c72_192] : memref<10x96xf32, #tpu.memory_space<vmem>>, vector<5x8xf32>
    %335 = arith.truncf %334 : vector<5x8xf32> to vector<5x8xbf16>
    %cst_193 = arith.constant dense<0.000000e+00> : vector<5x5xf32>
    %336 = tpu.matmul %331, %333, %cst_193 {dimension_numbers = #tpu.dot_dimension_numbers<[1], [1], [0], [0], [0, 0, 1, 0], [], []>} : vector<5x8xbf16>, vector<5x8xbf16>, vector<5x5xf32> -> vector<5x5xf32>
    %cst_194 = arith.constant 0.353553385 : f32
    %337 = vector.broadcast %cst_194 : f32 to vector<5x5xf32>
    %338 = arith.mulf %336, %337 : vector<5x5xf32>
    %cst_195 = arith.constant dense<0xFF800000> : vector<5xf32>
    %339 = vector.multi_reduction <maximumf>, %338, %cst_195 [1] : vector<5x5xf32> to vector<5xf32>
    %340 = vector.shape_cast %339 : vector<5xf32> to vector<5x1xf32>
    %341 = vector.broadcast %340 : vector<5x1xf32> to vector<5x5xf32>
    %342 = arith.subf %338, %341 : vector<5x5xf32>
    %343 = math.exp %342 : vector<5x5xf32>
    %cst_196 = arith.constant dense<0.000000e+00> : vector<5xf32>
    %344 = vector.multi_reduction <add>, %343, %cst_196 [1] : vector<5x5xf32> to vector<5xf32>
    %345 = vector.shape_cast %344 : vector<5xf32> to vector<5x1xf32>
    %346 = vector.broadcast %345 : vector<5x1xf32> to vector<5x5xf32>
    %347 = arith.divf %343, %346 : vector<5x5xf32>
    %348 = arith.truncf %347 : vector<5x5xf32> to vector<5x5xbf16>
    %cst_197 = arith.constant dense<0.000000e+00> : vector<5x8xf32>
    %349 = tpu.matmul %348, %335, %cst_197 {dimension_numbers = #tpu.dot_dimension_numbers<[1], [0], [0], [1], [0, 0, 1, 1], [], []>} : vector<5x5xbf16>, vector<5x8xbf16>, vector<5x8xf32> -> vector<5x8xf32>
    %c0_198 = arith.constant 0 : index
    %c8_199 = arith.constant 8 : index
    %350 = vector.load %arg22[%c0_198, %c8_199] : memref<10x32xf32, #tpu.memory_space<vmem>>, vector<5x8xf32>
    tpu.vector_store %arg22[%c0_198, %c8_199], %349 {strides = array<i32>} : memref<10x32xf32, #tpu.memory_space<vmem>>, vector<5x8xf32>,
    %351 = arith.addf %326, %347 : vector<5x5xf32>
    %c0_200 = arith.constant 0 : index
    %c16_201 = arith.constant 16 : index
    %352 = vector.load %arg21[%c0_200, %c16_201] : memref<10x96xf32, #tpu.memory_space<vmem>>, vector<5x8xf32>
    %353 = arith.truncf %352 : vector<5x8xf32> to vector<5x8xbf16>
    %c0_202 = arith.constant 0 : index
    %c48_203 = arith.constant 48 : index
    %354 = vector.load %arg21[%c0_202, %c48_203] : memref<10x96xf32, #tpu.memory_space<vmem>>, vector<5x8xf32>
    %355 = arith.truncf %354 : vector<5x8xf32> to vector<5x8xbf16>
    %c0_204 = arith.constant 0 : index
    %c80_205 = arith.constant 80 : index
    %356 = vector.load %arg21[%c0_204, %c80_205] : memref<10x96xf32, #tpu.memory_space<vmem>>, vector<5x8xf32>
    %357 = arith.truncf %356 : vector<5x8xf32> to vector<5x8xbf16>
    %cst_206 = arith.constant dense<0.000000e+00> : vector<5x5xf32>
    %358 = tpu.matmul %353, %355, %cst_206 {dimension_numbers = #tpu.dot_dimension_numbers<[1], [1], [0], [0], [0, 0, 1, 0], [], []>} : vector<5x8xbf16>, vector<5x8xbf16>, vector<5x5xf32> -> vector<5x5xf32>
    %cst_207 = arith.constant 0.353553385 : f32
    %359 = vector.broadcast %cst_207 : f32 to vector<5x5xf32>
    %360 = arith.mulf %358, %359 : vector<5x5xf32>
    %cst_208 = arith.constant dense<0xFF800000> : vector<5xf32>
    %361 = vector.multi_reduction <maximumf>, %360, %cst_208 [1] : vector<5x5xf32> to vector<5xf32>
    %362 = vector.shape_cast %361 : vector<5xf32> to vector<5x1xf32>
    %363 = vector.broadcast %362 : vector<5x1xf32> to vector<5x5xf32>
    %364 = arith.subf %360, %363 : vector<5x5xf32>
    %365 = math.exp %364 : vector<5x5xf32>
    %cst_209 = arith.constant dense<0.000000e+00> : vector<5xf32>
    %366 = vector.multi_reduction <add>, %365, %cst_209 [1] : vector<5x5xf32> to vector<5xf32>
    %367 = vector.shape_cast %366 : vector<5xf32> to vector<5x1xf32>
    %368 = vector.broadcast %367 : vector<5x1xf32> to vector<5x5xf32>
    %369 = arith.divf %365, %368 : vector<5x5xf32>
    %370 = arith.truncf %369 : vector<5x5xf32> to vector<5x5xbf16>
    %cst_210 = arith.constant dense<0.000000e+00> : vector<5x8xf32>
    %371 = tpu.matmul %370, %357, %cst_210 {dimension_numbers = #tpu.dot_dimension_numbers<[1], [0], [0], [1], [0, 0, 1, 1], [], []>} : vector<5x5xbf16>, vector<5x8xbf16>, vector<5x8xf32> -> vector<5x8xf32>
    %c0_211 = arith.constant 0 : index
    %c16_212 = arith.constant 16 : index
    %372 = vector.load %arg22[%c0_211, %c16_212] : memref<10x32xf32, #tpu.memory_space<vmem>>, vector<5x8xf32>
    tpu.vector_store %arg22[%c0_211, %c16_212], %371 {strides = array<i32>} : memref<10x32xf32, #tpu.memory_space<vmem>>, vector<5x8xf32>,
    %373 = arith.addf %351, %369 : vector<5x5xf32>
    %c0_213 = arith.constant 0 : index
    %c24_214 = arith.constant 24 : index
    %374 = vector.load %arg21[%c0_213, %c24_214] : memref<10x96xf32, #tpu.memory_space<vmem>>, vector<5x8xf32>
    %375 = arith.truncf %374 : vector<5x8xf32> to vector<5x8xbf16>
    %c0_215 = arith.constant 0 : index
    %c56_216 = arith.constant 56 : index
    %376 = vector.load %arg21[%c0_215, %c56_216] : memref<10x96xf32, #tpu.memory_space<vmem>>, vector<5x8xf32>
    %377 = arith.truncf %376 : vector<5x8xf32> to vector<5x8xbf16>
    %c0_217 = arith.constant 0 : index
    %c88_218 = arith.constant 88 : index
    %378 = vector.load %arg21[%c0_217, %c88_218] : memref<10x96xf32, #tpu.memory_space<vmem>>, vector<5x8xf32>
    %379 = arith.truncf %378 : vector<5x8xf32> to vector<5x8xbf16>
    %cst_219 = arith.constant dense<0.000000e+00> : vector<5x5xf32>
    %380 = tpu.matmul %375, %377, %cst_219 {dimension_numbers = #tpu.dot_dimension_numbers<[1], [1], [0], [0], [0, 0, 1, 0], [], []>} : vector<5x8xbf16>, vector<5x8xbf16>, vector<5x5xf32> -> vector<5x5xf32>
    %cst_220 = arith.constant 0.353553385 : f32
    %381 = vector.broadcast %cst_220 : f32 to vector<5x5xf32>
    %382 = arith.mulf %380, %381 : vector<5x5xf32>
    %cst_221 = arith.constant dense<0xFF800000> : vector<5xf32>
    %383 = vector.multi_reduction <maximumf>, %382, %cst_221 [1] : vector<5x5xf32> to vector<5xf32>
    %384 = vector.shape_cast %383 : vector<5xf32> to vector<5x1xf32>
    %385 = vector.broadcast %384 : vector<5x1xf32> to vector<5x5xf32>
    %386 = arith.subf %382, %385 : vector<5x5xf32>
    %387 = math.exp %386 : vector<5x5xf32>
    %cst_222 = arith.constant dense<0.000000e+00> : vector<5xf32>
    %388 = vector.multi_reduction <add>, %387, %cst_222 [1] : vector<5x5xf32> to vector<5xf32>
    %389 = vector.shape_cast %388 : vector<5xf32> to vector<5x1xf32>
    %390 = vector.broadcast %389 : vector<5x1xf32> to vector<5x5xf32>
    %391 = arith.divf %387, %390 : vector<5x5xf32>
    %392 = arith.truncf %391 : vector<5x5xf32> to vector<5x5xbf16>
    %cst_223 = arith.constant dense<0.000000e+00> : vector<5x8xf32>
    %393 = tpu.matmul %392, %379, %cst_223 {dimension_numbers = #tpu.dot_dimension_numbers<[1], [0], [0], [1], [0, 0, 1, 1], [], []>} : vector<5x5xbf16>, vector<5x8xbf16>, vector<5x8xf32> -> vector<5x8xf32>
    %c0_224 = arith.constant 0 : index
    %c24_225 = arith.constant 24 : index
    %394 = vector.load %arg22[%c0_224, %c24_225] : memref<10x32xf32, #tpu.memory_space<vmem>>, vector<5x8xf32>
    tpu.vector_store %arg22[%c0_224, %c24_225], %393 {strides = array<i32>} : memref<10x32xf32, #tpu.memory_space<vmem>>, vector<5x8xf32>,
    %395 = arith.addf %373, %391 : vector<5x5xf32>
    %cst_226 = arith.constant 2.500000e-01 : f32
    %396 = vector.broadcast %cst_226 : f32 to vector<5x5xf32>
    %397 = arith.mulf %395, %396 : vector<5x5xf32>
    %c0_227 = arith.constant 0 : index
    %c0_228 = arith.constant 0 : index
    %c0_229 = arith.constant 0 : index
    %398 = vector.load %arg20[%c0_227, %c0_228, %c0_229] : memref<2x5x5xf32, #tpu.memory_space<vmem>>, vector<1x5x5xf32>
    %399 = vector.shape_cast %398 : vector<1x5x5xf32> to vector<5x5xf32>
    %400 = vector.shape_cast %397 : vector<5x5xf32> to vector<1x5x5xf32>
    tpu.vector_store %arg20[%c0_227, %c0_228, %c0_229], %400 {strides = array<i32>} : memref<2x5x5xf32, #tpu.memory_space<vmem>>, vector<1x5x5xf32>,
    %c5_230 = arith.constant 5 : index
    %c0_231 = arith.constant 0 : index
    %401 = vector.load %arg21[%c5_230, %c0_231] : memref<10x96xf32, #tpu.memory_space<vmem>>, vector<5x8xf32>
    %402 = arith.truncf %401 : vector<5x8xf32> to vector<5x8xbf16>
    %c5_232 = arith.constant 5 : index
    %c32_233 = arith.constant 32 : index
    %403 = vector.load %arg21[%c5_232, %c32_233] : memref<10x96xf32, #tpu.memory_space<vmem>>, vector<5x8xf32>
    %404 = arith.truncf %403 : vector<5x8xf32> to vector<5x8xbf16>
    %c5_234 = arith.constant 5 : index
    %c64_235 = arith.constant 64 : index
    %405 = vector.load %arg21[%c5_234, %c64_235] : memref<10x96xf32, #tpu.memory_space<vmem>>, vector<5x8xf32>
    %406 = arith.truncf %405 : vector<5x8xf32> to vector<5x8xbf16>
    %cst_236 = arith.constant dense<0.000000e+00> : vector<5x5xf32>
    %407 = tpu.matmul %402, %404, %cst_236 {dimension_numbers = #tpu.dot_dimension_numbers<[1], [1], [0], [0], [0, 0, 1, 0], [], []>} : vector<5x8xbf16>, vector<5x8xbf16>, vector<5x5xf32> -> vector<5x5xf32>
    %cst_237 = arith.constant 0.353553385 : f32
    %408 = vector.broadcast %cst_237 : f32 to vector<5x5xf32>
    %409 = arith.mulf %407, %408 : vector<5x5xf32>
    %cst_238 = arith.constant dense<0xFF800000> : vector<5xf32>
    %410 = vector.multi_reduction <maximumf>, %409, %cst_238 [1] : vector<5x5xf32> to vector<5xf32>
    %411 = vector.shape_cast %410 : vector<5xf32> to vector<5x1xf32>
    %412 = vector.broadcast %411 : vector<5x1xf32> to vector<5x5xf32>
    %413 = arith.subf %409, %412 : vector<5x5xf32>
    %414 = math.exp %413 : vector<5x5xf32>
    %cst_239 = arith.constant dense<0.000000e+00> : vector<5xf32>
    %415 = vector.multi_reduction <add>, %414, %cst_239 [1] : vector<5x5xf32> to vector<5xf32>
    %416 = vector.shape_cast %415 : vector<5xf32> to vector<5x1xf32>
    %417 = vector.broadcast %416 : vector<5x1xf32> to vector<5x5xf32>
    %418 = arith.divf %414, %417 : vector<5x5xf32>
    %419 = arith.truncf %418 : vector<5x5xf32> to vector<5x5xbf16>
    %cst_240 = arith.constant dense<0.000000e+00> : vector<5x8xf32>
    %420 = tpu.matmul %419, %406, %cst_240 {dimension_numbers = #tpu.dot_dimension_numbers<[1], [0], [0], [1], [0, 0, 1, 1], [], []>} : vector<5x5xbf16>, vector<5x8xbf16>, vector<5x8xf32> -> vector<5x8xf32>
    %c5_241 = arith.constant 5 : index
    %c0_242 = arith.constant 0 : index
    %421 = vector.load %arg22[%c5_241, %c0_242] : memref<10x32xf32, #tpu.memory_space<vmem>>, vector<5x8xf32>
    tpu.vector_store %arg22[%c5_241, %c0_242], %420 {strides = array<i32>} : memref<10x32xf32, #tpu.memory_space<vmem>>, vector<5x8xf32>,
    %c5_243 = arith.constant 5 : index
    %c8_244 = arith.constant 8 : index
    %422 = vector.load %arg21[%c5_243, %c8_244] : memref<10x96xf32, #tpu.memory_space<vmem>>, vector<5x8xf32>
    %423 = arith.truncf %422 : vector<5x8xf32> to vector<5x8xbf16>
    %c5_245 = arith.constant 5 : index
    %c40_246 = arith.constant 40 : index
    %424 = vector.load %arg21[%c5_245, %c40_246] : memref<10x96xf32, #tpu.memory_space<vmem>>, vector<5x8xf32>
    %425 = arith.truncf %424 : vector<5x8xf32> to vector<5x8xbf16>
    %c5_247 = arith.constant 5 : index
    %c72_248 = arith.constant 72 : index
    %426 = vector.load %arg21[%c5_247, %c72_248] : memref<10x96xf32, #tpu.memory_space<vmem>>, vector<5x8xf32>
    %427 = arith.truncf %426 : vector<5x8xf32> to vector<5x8xbf16>
    %cst_249 = arith.constant dense<0.000000e+00> : vector<5x5xf32>
    %428 = tpu.matmul %423, %425, %cst_249 {dimension_numbers = #tpu.dot_dimension_numbers<[1], [1], [0], [0], [0, 0, 1, 0], [], []>} : vector<5x8xbf16>, vector<5x8xbf16>, vector<5x5xf32> -> vector<5x5xf32>
    %cst_250 = arith.constant 0.353553385 : f32
    %429 = vector.broadcast %cst_250 : f32 to vector<5x5xf32>
    %430 = arith.mulf %428, %429 : vector<5x5xf32>
    %cst_251 = arith.constant dense<0xFF800000> : vector<5xf32>
    %431 = vector.multi_reduction <maximumf>, %430, %cst_251 [1] : vector<5x5xf32> to vector<5xf32>
    %432 = vector.shape_cast %431 : vector<5xf32> to vector<5x1xf32>
    %433 = vector.broadcast %432 : vector<5x1xf32> to vector<5x5xf32>
    %434 = arith.subf %430, %433 : vector<5x5xf32>
    %435 = math.exp %434 : vector<5x5xf32>
    %cst_252 = arith.constant dense<0.000000e+00> : vector<5xf32>
    %436 = vector.multi_reduction <add>, %435, %cst_252 [1] : vector<5x5xf32> to vector<5xf32>
    %437 = vector.shape_cast %436 : vector<5xf32> to vector<5x1xf32>
    %438 = vector.broadcast %437 : vector<5x1xf32> to vector<5x5xf32>
    %439 = arith.divf %435, %438 : vector<5x5xf32>
    %440 = arith.truncf %439 : vector<5x5xf32> to vector<5x5xbf16>
    %cst_253 = arith.constant dense<0.000000e+00> : vector<5x8xf32>
    %441 = tpu.matmul %440, %427, %cst_253 {dimension_numbers = #tpu.dot_dimension_numbers<[1], [0], [0], [1], [0, 0, 1, 1], [], []>} : vector<5x5xbf16>, vector<5x8xbf16>, vector<5x8xf32> -> vector<5x8xf32>
    %c5_254 = arith.constant 5 : index
    %c8_255 = arith.constant 8 : index
    %442 = vector.load %arg22[%c5_254, %c8_255] : memref<10x32xf32, #tpu.memory_space<vmem>>, vector<5x8xf32>
    tpu.vector_store %arg22[%c5_254, %c8_255], %441 {strides = array<i32>} : memref<10x32xf32, #tpu.memory_space<vmem>>, vector<5x8xf32>,
    %443 = arith.addf %418, %439 : vector<5x5xf32>
    %c5_256 = arith.constant 5 : index
    %c16_257 = arith.constant 16 : index
    %444 = vector.load %arg21[%c5_256, %c16_257] : memref<10x96xf32, #tpu.memory_space<vmem>>, vector<5x8xf32>
    %445 = arith.truncf %444 : vector<5x8xf32> to vector<5x8xbf16>
    %c5_258 = arith.constant 5 : index
    %c48_259 = arith.constant 48 : index
    %446 = vector.load %arg21[%c5_258, %c48_259] : memref<10x96xf32, #tpu.memory_space<vmem>>, vector<5x8xf32>
    %447 = arith.truncf %446 : vector<5x8xf32> to vector<5x8xbf16>
    %c5_260 = arith.constant 5 : index
    %c80_261 = arith.constant 80 : index
    %448 = vector.load %arg21[%c5_260, %c80_261] : memref<10x96xf32, #tpu.memory_space<vmem>>, vector<5x8xf32>
    %449 = arith.truncf %448 : vector<5x8xf32> to vector<5x8xbf16>
    %cst_262 = arith.constant dense<0.000000e+00> : vector<5x5xf32>
    %450 = tpu.matmul %445, %447, %cst_262 {dimension_numbers = #tpu.dot_dimension_numbers<[1], [1], [0], [0], [0, 0, 1, 0], [], []>} : vector<5x8xbf16>, vector<5x8xbf16>, vector<5x5xf32> -> vector<5x5xf32>
    %cst_263 = arith.constant 0.353553385 : f32
    %451 = vector.broadcast %cst_263 : f32 to vector<5x5xf32>
    %452 = arith.mulf %450, %451 : vector<5x5xf32>
    %cst_264 = arith.constant dense<0xFF800000> : vector<5xf32>
    %453 = vector.multi_reduction <maximumf>, %452, %cst_264 [1] : vector<5x5xf32> to vector<5xf32>
    %454 = vector.shape_cast %453 : vector<5xf32> to vector<5x1xf32>
    %455 = vector.broadcast %454 : vector<5x1xf32> to vector<5x5xf32>
    %456 = arith.subf %452, %455 : vector<5x5xf32>
    %457 = math.exp %456 : vector<5x5xf32>
    %cst_265 = arith.constant dense<0.000000e+00> : vector<5xf32>
    %458 = vector.multi_reduction <add>, %457, %cst_265 [1] : vector<5x5xf32> to vector<5xf32>
    %459 = vector.shape_cast %458 : vector<5xf32> to vector<5x1xf32>
    %460 = vector.broadcast %459 : vector<5x1xf32> to vector<5x5xf32>
    %461 = arith.divf %457, %460 : vector<5x5xf32>
    %462 = arith.truncf %461 : vector<5x5xf32> to vector<5x5xbf16>
    %cst_266 = arith.constant dense<0.000000e+00> : vector<5x8xf32>
    %463 = tpu.matmul %462, %449, %cst_266 {dimension_numbers = #tpu.dot_dimension_numbers<[1], [0], [0], [1], [0, 0, 1, 1], [], []>} : vector<5x5xbf16>, vector<5x8xbf16>, vector<5x8xf32> -> vector<5x8xf32>
    %c5_267 = arith.constant 5 : index
    %c16_268 = arith.constant 16 : index
    %464 = vector.load %arg22[%c5_267, %c16_268] : memref<10x32xf32, #tpu.memory_space<vmem>>, vector<5x8xf32>
    tpu.vector_store %arg22[%c5_267, %c16_268], %463 {strides = array<i32>} : memref<10x32xf32, #tpu.memory_space<vmem>>, vector<5x8xf32>,
    %465 = arith.addf %443, %461 : vector<5x5xf32>
    %c5_269 = arith.constant 5 : index
    %c24_270 = arith.constant 24 : index
    %466 = vector.load %arg21[%c5_269, %c24_270] : memref<10x96xf32, #tpu.memory_space<vmem>>, vector<5x8xf32>
    %467 = arith.truncf %466 : vector<5x8xf32> to vector<5x8xbf16>
    %c5_271 = arith.constant 5 : index
    %c56_272 = arith.constant 56 : index
    %468 = vector.load %arg21[%c5_271, %c56_272] : memref<10x96xf32, #tpu.memory_space<vmem>>, vector<5x8xf32>
    %469 = arith.truncf %468 : vector<5x8xf32> to vector<5x8xbf16>
    %c5_273 = arith.constant 5 : index
    %c88_274 = arith.constant 88 : index
    %470 = vector.load %arg21[%c5_273, %c88_274] : memref<10x96xf32, #tpu.memory_space<vmem>>, vector<5x8xf32>
    %471 = arith.truncf %470 : vector<5x8xf32> to vector<5x8xbf16>
    %cst_275 = arith.constant dense<0.000000e+00> : vector<5x5xf32>
    %472 = tpu.matmul %467, %469, %cst_275 {dimension_numbers = #tpu.dot_dimension_numbers<[1], [1], [0], [0], [0, 0, 1, 0], [], []>} : vector<5x8xbf16>, vector<5x8xbf16>, vector<5x5xf32> -> vector<5x5xf32>
    %cst_276 = arith.constant 0.353553385 : f32
    %473 = vector.broadcast %cst_276 : f32 to vector<5x5xf32>
    %474 = arith.mulf %472, %473 : vector<5x5xf32>
    %cst_277 = arith.constant dense<0xFF800000> : vector<5xf32>
    %475 = vector.multi_reduction <maximumf>, %474, %cst_277 [1] : vector<5x5xf32> to vector<5xf32>
    %476 = vector.shape_cast %475 : vector<5xf32> to vector<5x1xf32>
    %477 = vector.broadcast %476 : vector<5x1xf32> to vector<5x5xf32>
    %478 = arith.subf %474, %477 : vector<5x5xf32>
    %479 = math.exp %478 : vector<5x5xf32>
    %cst_278 = arith.constant dense<0.000000e+00> : vector<5xf32>
    %480 = vector.multi_reduction <add>, %479, %cst_278 [1] : vector<5x5xf32> to vector<5xf32>
    %481 = vector.shape_cast %480 : vector<5xf32> to vector<5x1xf32>
    %482 = vector.broadcast %481 : vector<5x1xf32> to vector<5x5xf32>
    %483 = arith.divf %479, %482 : vector<5x5xf32>
    %484 = arith.truncf %483 : vector<5x5xf32> to vector<5x5xbf16>
    %cst_279 = arith.constant dense<0.000000e+00> : vector<5x8xf32>
    %485 = tpu.matmul %484, %471, %cst_279 {dimension_numbers = #tpu.dot_dimension_numbers<[1], [0], [0], [1], [0, 0, 1, 1], [], []>} : vector<5x5xbf16>, vector<5x8xbf16>, vector<5x8xf32> -> vector<5x8xf32>
    %c5_280 = arith.constant 5 : index
    %c24_281 = arith.constant 24 : index
    %486 = vector.load %arg22[%c5_280, %c24_281] : memref<10x32xf32, #tpu.memory_space<vmem>>, vector<5x8xf32>
    tpu.vector_store %arg22[%c5_280, %c24_281], %485 {strides = array<i32>} : memref<10x32xf32, #tpu.memory_space<vmem>>, vector<5x8xf32>,
    %487 = arith.addf %465, %483 : vector<5x5xf32>
    %cst_282 = arith.constant 2.500000e-01 : f32
    %488 = vector.broadcast %cst_282 : f32 to vector<5x5xf32>
    %489 = arith.mulf %487, %488 : vector<5x5xf32>
    %c1_283 = arith.constant 1 : index
    %c0_284 = arith.constant 0 : index
    %c0_285 = arith.constant 0 : index
    %490 = vector.load %arg20[%c1_283, %c0_284, %c0_285] : memref<2x5x5xf32, #tpu.memory_space<vmem>>, vector<1x5x5xf32>
    %491 = vector.shape_cast %490 : vector<1x5x5xf32> to vector<5x5xf32>
    %492 = vector.shape_cast %489 : vector<5x5xf32> to vector<1x5x5xf32>
    tpu.vector_store %arg20[%c1_283, %c0_284, %c0_285], %492 {strides = array<i32>} : memref<2x5x5xf32, #tpu.memory_space<vmem>>, vector<1x5x5xf32>,
    %c0_286 = arith.constant 0 : index
    %c0_287 = arith.constant 0 : index
    %493 = vector.load %arg22[%c0_286, %c0_287] : memref<10x32xf32, #tpu.memory_space<vmem>>, vector<10x32xf32>
    %494 = arith.truncf %493 : vector<10x32xf32> to vector<10x32xbf16>
    %c1_288 = arith.constant 1 : index
    %c0_289 = arith.constant 0 : index
    %c0_290 = arith.constant 0 : index
    %495 = vector.load %arg7[%c1_288, %c0_289, %c0_290] : memref<2x32x32xbf16, #tpu.memory_space<vmem>>, vector<1x32x32xbf16>
    %496 = vector.shape_cast %495 : vector<1x32x32xbf16> to vector<32x32xbf16>
    %cst_291 = arith.constant dense<0.000000e+00> : vector<10x32xf32>
    %497 = tpu.matmul %494, %496, %cst_291 {dimension_numbers = #tpu.dot_dimension_numbers<[1], [0], [0], [1], [0, 0, 1, 1], [], []>} : vector<10x32xbf16>, vector<32x32xbf16>, vector<10x32xf32> -> vector<10x32xf32>
    %c1_292 = arith.constant 1 : index
    %c0_293 = arith.constant 0 : index
    %c0_294 = arith.constant 0 : index
    %498 = vector.load %arg8[%c1_292, %c0_293, %c0_294] : memref<2x1x32xf32, #tpu.memory_space<vmem>>, vector<1x1x32xf32>
    %499 = vector.shape_cast %498 : vector<1x1x32xf32> to vector<1x32xf32>
    %500 = vector.broadcast %499 : vector<1x32xf32> to vector<10x32xf32>
    %501 = arith.addf %497, %500 : vector<10x32xf32>
    %502 = arith.addf %273, %501 : vector<10x32xf32>
    %c1_295 = arith.constant 1 : index
    %c0_296 = arith.constant 0 : index
    %c0_297 = arith.constant 0 : index
    %503 = vector.load %arg9[%c1_295, %c0_296, %c0_297] : memref<2x1x32xf32, #tpu.memory_space<vmem>>, vector<1x1x32xf32>
    %504 = vector.shape_cast %503 : vector<1x1x32xf32> to vector<1x32xf32>
    %c1_298 = arith.constant 1 : index
    %c0_299 = arith.constant 0 : index
    %c0_300 = arith.constant 0 : index
    %505 = vector.load %arg10[%c1_298, %c0_299, %c0_300] : memref<2x1x32xf32, #tpu.memory_space<vmem>>, vector<1x1x32xf32>
    %506 = vector.shape_cast %505 : vector<1x1x32xf32> to vector<1x32xf32>
    %cst_301 = arith.constant dense<0.000000e+00> : vector<10xf32>
    %507 = vector.multi_reduction <add>, %502, %cst_301 [1] : vector<10x32xf32> to vector<10xf32>
    %508 = vector.shape_cast %507 : vector<10xf32> to vector<10x1xf32>
    %cst_302 = arith.constant 3.200000e+01 : f32
    %509 = vector.broadcast %cst_302 : f32 to vector<10x1xf32>
    %510 = arith.divf %508, %509 : vector<10x1xf32>
    %511 = vector.broadcast %510 : vector<10x1xf32> to vector<10x32xf32>
    %512 = arith.subf %502, %511 : vector<10x32xf32>
    %513 = arith.mulf %512, %512 : vector<10x32xf32>
    %cst_303 = arith.constant dense<0.000000e+00> : vector<10xf32>
    %514 = vector.multi_reduction <add>, %513, %cst_303 [1] : vector<10x32xf32> to vector<10xf32>
    %515 = vector.shape_cast %514 : vector<10xf32> to vector<10x1xf32>
    %cst_304 = arith.constant 3.200000e+01 : f32
    %516 = vector.broadcast %cst_304 : f32 to vector<10x1xf32>
    %517 = arith.divf %515, %516 : vector<10x1xf32>
    %518 = vector.broadcast %510 : vector<10x1xf32> to vector<10x32xf32>
    %519 = arith.subf %502, %518 : vector<10x32xf32>
    %cst_305 = arith.constant 9.99999997E-7 : f32
    %520 = vector.broadcast %cst_305 : f32 to vector<10x1xf32>
    %521 = arith.addf %517, %520 : vector<10x1xf32>
    %522 = math.rsqrt %521 : vector<10x1xf32>
    %523 = vector.broadcast %522 : vector<10x1xf32> to vector<10x32xf32>
    %524 = arith.mulf %519, %523 : vector<10x32xf32>
    %525 = vector.broadcast %504 : vector<1x32xf32> to vector<10x32xf32>
    %526 = arith.mulf %524, %525 : vector<10x32xf32>
    %527 = vector.broadcast %506 : vector<1x32xf32> to vector<10x32xf32>
    %528 = arith.addf %526, %527 : vector<10x32xf32>
    %529 = arith.truncf %528 : vector<10x32xf32> to vector<10x32xbf16>
    %c1_306 = arith.constant 1 : index
    %c0_307 = arith.constant 0 : index
    %c0_308 = arith.constant 0 : index
    %530 = vector.load %arg11[%c1_306, %c0_307, %c0_308] : memref<2x32x128xbf16, #tpu.memory_space<vmem>>, vector<1x32x128xbf16>
    %531 = vector.shape_cast %530 : vector<1x32x128xbf16> to vector<32x128xbf16>
    %cst_309 = arith.constant dense<0.000000e+00> : vector<10x128xf32>
    %532 = tpu.matmul %529, %531, %cst_309 {dimension_numbers = #tpu.dot_dimension_numbers<[1], [0], [0], [1], [0, 0, 1, 1], [], []>} : vector<10x32xbf16>, vector<32x128xbf16>, vector<10x128xf32> -> vector<10x128xf32>
    %c1_310 = arith.constant 1 : index
    %c0_311 = arith.constant 0 : index
    %c0_312 = arith.constant 0 : index
    %533 = vector.load %arg12[%c1_310, %c0_311, %c0_312] : memref<2x1x128xf32, #tpu.memory_space<vmem>>, vector<1x1x128xf32>
    %534 = vector.shape_cast %533 : vector<1x1x128xf32> to vector<1x128xf32>
    %535 = vector.broadcast %534 : vector<1x128xf32> to vector<10x128xf32>
    %536 = arith.addf %532, %535 : vector<10x128xf32>
    %537 = arith.mulf %536, %536 : vector<10x128xf32>
    %538 = arith.mulf %536, %537 : vector<10x128xf32>
    %cst_313 = arith.constant 4.471500e-02 : f32
    %539 = vector.broadcast %cst_313 : f32 to vector<10x128xf32>
    %540 = arith.mulf %539, %538 : vector<10x128xf32>
    %541 = arith.addf %536, %540 : vector<10x128xf32>
    %cst_314 = arith.constant 0.797884583 : f32
    %542 = vector.broadcast %cst_314 : f32 to vector<10x128xf32>
    %543 = arith.mulf %542, %541 : vector<10x128xf32>
    %544 = math.tanh %543 : vector<10x128xf32>
    %cst_315 = arith.constant 1.000000e+00 : f32
    %545 = vector.broadcast %cst_315 : f32 to vector<10x128xf32>
    %546 = arith.addf %545, %544 : vector<10x128xf32>
    %cst_316 = arith.constant 5.000000e-01 : f32
    %547 = vector.broadcast %cst_316 : f32 to vector<10x128xf32>
    %548 = arith.mulf %547, %546 : vector<10x128xf32>
    %549 = arith.mulf %536, %548 : vector<10x128xf32>
    %550 = arith.truncf %549 : vector<10x128xf32> to vector<10x128xbf16>
    %c1_317 = arith.constant 1 : index
    %c0_318 = arith.constant 0 : index
    %c0_319 = arith.constant 0 : index
    %551 = vector.load %arg13[%c1_317, %c0_318, %c0_319] : memref<2x128x32xbf16, #tpu.memory_space<vmem>>, vector<1x128x32xbf16>
    %552 = vector.shape_cast %551 : vector<1x128x32xbf16> to vector<128x32xbf16>
    %cst_320 = arith.constant dense<0.000000e+00> : vector<10x32xf32>
    %553 = tpu.matmul %550, %552, %cst_320 {dimension_numbers = #tpu.dot_dimension_numbers<[1], [0], [0], [1], [0, 0, 1, 1], [], []>} : vector<10x128xbf16>, vector<128x32xbf16>, vector<10x32xf32> -> vector<10x32xf32>
    %c1_321 = arith.constant 1 : index
    %c0_322 = arith.constant 0 : index
    %c0_323 = arith.constant 0 : index
    %554 = vector.load %arg14[%c1_321, %c0_322, %c0_323] : memref<2x1x32xf32, #tpu.memory_space<vmem>>, vector<1x1x32xf32>
    %555 = vector.shape_cast %554 : vector<1x1x32xf32> to vector<1x32xf32>
    %556 = vector.broadcast %555 : vector<1x32xf32> to vector<10x32xf32>
    %557 = arith.addf %553, %556 : vector<10x32xf32>
    %558 = arith.addf %502, %557 : vector<10x32xf32>
    %c0_324 = arith.constant 0 : index
    %c0_325 = arith.constant 0 : index
    %559 = vector.load %arg15[%c0_324, %c0_325] : memref<1x32xf32, #tpu.memory_space<vmem>>, vector<1x32xf32>
    %c0_326 = arith.constant 0 : index
    %c0_327 = arith.constant 0 : index
    %560 = vector.load %arg16[%c0_326, %c0_327] : memref<1x32xf32, #tpu.memory_space<vmem>>, vector<1x32xf32>
    %cst_328 = arith.constant dense<0.000000e+00> : vector<10xf32>
    %561 = vector.multi_reduction <add>, %558, %cst_328 [1] : vector<10x32xf32> to vector<10xf32>
    %562 = vector.shape_cast %561 : vector<10xf32> to vector<10x1xf32>
    %cst_329 = arith.constant 3.200000e+01 : f32
    %563 = vector.broadcast %cst_329 : f32 to vector<10x1xf32>
    %564 = arith.divf %562, %563 : vector<10x1xf32>
    %565 = vector.broadcast %564 : vector<10x1xf32> to vector<10x32xf32>
    %566 = arith.subf %558, %565 : vector<10x32xf32>
    %567 = arith.mulf %566, %566 : vector<10x32xf32>
    %cst_330 = arith.constant dense<0.000000e+00> : vector<10xf32>
    %568 = vector.multi_reduction <add>, %567, %cst_330 [1] : vector<10x32xf32> to vector<10xf32>
    %569 = vector.shape_cast %568 : vector<10xf32> to vector<10x1xf32>
    %cst_331 = arith.constant 3.200000e+01 : f32
    %570 = vector.broadcast %cst_331 : f32 to vector<10x1xf32>
    %571 = arith.divf %569, %570 : vector<10x1xf32>
    %572 = vector.broadcast %564 : vector<10x1xf32> to vector<10x32xf32>
    %573 = arith.subf %558, %572 : vector<10x32xf32>
    %cst_332 = arith.constant 9.99999997E-7 : f32
    %574 = vector.broadcast %cst_332 : f32 to vector<10x1xf32>
    %575 = arith.addf %571, %574 : vector<10x1xf32>
    %576 = math.rsqrt %575 : vector<10x1xf32>
    %577 = vector.broadcast %576 : vector<10x1xf32> to vector<10x32xf32>
    %578 = arith.mulf %573, %577 : vector<10x32xf32>
    %579 = vector.broadcast %559 : vector<1x32xf32> to vector<10x32xf32>
    %580 = arith.mulf %578, %579 : vector<10x32xf32>
    %581 = vector.broadcast %560 : vector<1x32xf32> to vector<10x32xf32>
    %582 = arith.addf %580, %581 : vector<10x32xf32>
    %583 = arith.truncf %582 : vector<10x32xf32> to vector<10x32xbf16>
    %c0_333 = arith.constant 0 : index
    %c0_334 = arith.constant 0 : index
    %584 = vector.load %arg17[%c0_333, %c0_334] : memref<32x128xbf16, #tpu.memory_space<vmem>>, vector<32x128xbf16>
    %cst_335 = arith.constant dense<0.000000e+00> : vector<10x128xf32>
    %585 = tpu.matmul %583, %584, %cst_335 {dimension_numbers = #tpu.dot_dimension_numbers<[1], [0], [0], [1], [0, 0, 1, 1], [], []>} : vector<10x32xbf16>, vector<32x128xbf16>, vector<10x128xf32> -> vector<10x128xf32>
    %c0_336 = arith.constant 0 : index
    %c0_337 = arith.constant 0 : index
    %586 = vector.load %arg18[%c0_336, %c0_337] : memref<1x128xf32, #tpu.memory_space<vmem>>, vector<1x128xf32>
    %587 = vector.broadcast %586 : vector<1x128xf32> to vector<10x128xf32>
    %588 = arith.addf %585, %587 : vector<10x128xf32>
    %c0_338 = arith.constant 0 : index
    %c0_339 = arith.constant 0 : index
    %589 = vector.load %arg19[%c0_338, %c0_339] : memref<10x128xf32, #tpu.memory_space<vmem>>, vector<10x128xf32>
    tpu.vector_store %arg19[%c0_338, %c0_339], %588 {strides = array<i32>} : memref<10x128xf32, #tpu.memory_space<vmem>>, vector<10x128xf32>,
    return
  }
}

</mosaic_0001>

<bundles_post_ra>
// kernel: squeeze.7
= control target key start
LH: loop header
LB: loop body
LE: loop exit
PB: predicated region body
PF: predicated region fallthrough
CT: control target
= control target key end

     0   :  { %s83_s0 = inlined_call_operand.vmem [shape: f32[2,4], index: 0, kind: input, shape index: {}]   ;;  %s84_s1 = inlined_call_operand.hbm [shape: f32[2,1,2,2], index: 1, kind: output, shape index: {}]  }
   0x1   :  { %v6_v0 = vld [vmem:[%s83_s0] sm:$0x3] }
   0x2   :  { %2 = vsyncpa [#allocation1], 0  ;;  %7 = vst [vmem:[#allocation3] sm:$0x3] %v6_v0  ;;  %vm9_vm0 = vcmask 15360   ;;  %s65_s0 = smov 126  }
   0x3   :  { %s66_s8 = smov [#allocation0]  }
   0x4   :  { %s35_s9 = sshll.u32 %s66_s8, 4  ;;  %s36_s9 = int_to_ptr.vmem [resolvable:$true] %s35_s9 }
   0x5   :  { %s43_s10 = scalar_lea.vmem %s36_s9, 64  ;;  %p48_p1 = scmp.lt.s32.totalorder %s36_s9, %s36_s9 }
   0x6   :  { %p44_p0 = scmp.ne.s32.totalorder %s36_s9, %s43_s10  ;;  %p49_p2 = scmp.lt.s32.totalorder %s43_s10, %s43_s10 }
   0x8   :  { %p50_p3 = por %p49_p2, %p48_p1 }
   0x9   :  { %v11_v1 = vld [vmem:[#allocation3] sm:$0x3]  }
   0xa   :  { %v8_v2 = vld [vmem:[#allocation3] sm:$0x3]   ;;  %12 = vrot.lane.b32.xlu0 %v11_v1, %s65_s0  ;;  %p51_p4 = pnand %p50_p3, %p44_p0 }
   0xb   :  { %10 = vst.msk [vmem:[#allocation2] ss:$8 sm:$0x3] %vm9_vm0, %v8_v2  }
  0x7c   :  { %v13_v3 = vpop.permute.xlu0 %12  }
  0x7d   :  { %16 = vst.msk [vmem:[#allocation2 + $0x1] ss:$8 sm:$0x3] %vm9_vm0, %v13_v3  }
  0x84   :  { %v21_v4 = vld [vmem:[#allocation2] sm:$0x3]  ;;  %v26_v5 = vld [vmem:[#allocation2 + $0x8] sm:$0x3] }
  0x85   :  { %24 = vst [vmem:[#allocation0] sm:$0x3] %v21_v4  ;;  %30 = vst [vmem:[#allocation0 + $0x2] sm:$0x3] %v26_v5 }
  0x86   :  { %54 = shalt.err (!%p51_p4)
}
  0x87   :  { %38 = dma.vmem_to_hbm [thread:$0]  %s36_s9, 64, %s84_s1, [#allocation1]  }
  0x88   :  { %63 = dma.done.wait [#allocation1], 64  }
  0x89   :  { %64 = vsyncadd [#allocation1], 4294967232 }
  0x8a   :  { %40 = vsyncpa [#allocation1], 1 }

// kernel: vit_gusa_forward.1
= control target key start
LH: loop header
LB: loop body
LE: loop exit
PB: predicated region body
PF: predicated region fallthrough
CT: control target
= control target key end

     0   :  { %v3808_v0 = vmov 0   ;;  %vm174_vm0 = vcmask 523264   ;;  %vm221_vm1 = vcmask 261120   ;;  %vm225_vm2 = vcmask 254976   ;;  %s4662_s26 = smov 64   ;;  %s3817_s28 = smov 112   ;;  %s4630_s1 = inlined_call_operand.vmem [shape: bf16[192,32], index: 1, kind: input, shape index: {}]   ;;  %s4631_s0 = inlined_call_operand.vmem [shape: bf16[10,192], index: 0, kind: input, shape index: {}]   ;;  %s4632_s2 = inlined_call_operand.vmem [shape: f32[10,32], index: 2, kind: input, shape index: {}]   ;;  %s4633_s5 = inlined_call_operand.vmem [shape: bf16[2,32,96], index: 5, kind: input, shape index: {}]   ;;  %s4634_s3 = inlined_call_operand.vmem [shape: f32[2,1,32], index: 3, kind: input, shape index: {}]   ;;  %s4635_s4 = inlined_call_operand.vmem [shape: f32[2,1,32], index: 4, kind: input, shape index: {}]   ;;  %s4636_s6 = inlined_call_operand.vmem [shape: f32[2,1,96], index: 6, kind: input, shape index: {}]   ;;  %s4637_s7 = inlined_call_operand.vmem [shape: bf16[2,32,32], index: 7, kind: input, shape index: {}]   ;;  %s4638_s8 = inlined_call_operand.vmem [shape: f32[2,1,32], index: 8, kind: input, shape index: {}]   ;;  %s4639_s11 = inlined_call_operand.vmem [shape: bf16[2,32,128], index: 11, kind: input, shape index: {}]   ;;  %s4640_s9 = inlined_call_operand.vmem [shape: f32[2,1,32], index: 9, kind: input, shape index: {}]   ;;  %s4641_s10 = inlined_call_operand.vmem [shape: f32[2,1,32], index: 10, kind: input, shape index: {}]   ;;  %s4642_s13 = inlined_call_operand.vmem [shape: bf16[2,128,32], index: 13, kind: input, shape index: {}]   ;;  %s4643_s12 = inlined_call_operand.vmem [shape: f32[2,1,128], index: 12, kind: input, shape index: {}]   ;;  %s4644_s14 = inlined_call_operand.vmem [shape: f32[2,1,32], index: 14, kind: input, shape index: {}]   ;;  %s4645_s20 = inlined_call_operand.vmem [shape: f32[2,5,5], index: 20, kind: output, shape index: {1}]   ;;  %s4646_s17 = inlined_call_operand.vmem [shape: bf16[32,128], index: 17, kind: input, shape index: {}]   ;;  %s4647_s15 = inlined_call_operand.vmem [shape: f32[1,32], index: 15, kind: input, shape index: {}]   ;;  %s4648_s16 = inlined_call_operand.vmem [shape: f32[1,32], index: 16, kind: input, shape index: {}]   ;;  %s4649_s18 = inlined_call_operand.vmem [shape: f32[1,128], index: 18, kind: input, shape index: {}]   ;;  %s4650_s19 = inlined_call_operand.vmem [shape: f32[10,128], index: 19, kind: output, shape index: {0}]  }
   0x1   :  { %4672 = sst [smem:[#allocation4_spill]] %s4630_s1  ;;  %178 = vmatprep.subr.bf16.mxu0 %v3808_v0  ;;  %v3809_v35 = vmov 0.0   ;;  %vm3810_vm3 = vmmov 0   ;;  %v3138_v50 = vld [vmem:[%s4635_s4] ss:$0 sm:$0xff]  ;;  %vm334_vm4 = vcmask 785408  }
   0x2   :  { %4673 = sst [smem:[#allocation5_spill]] %s4631_s0  ;;  %3365 = vmatprep.subr.bf16.mxu1 %v3809_v35  ;;  %3369 = vmatprep.mubr.msk.bf16.mxu1 %vm3810_vm3, %v3809_v35  ;;  %v3139_v55 = vld [vmem:[%s4636_s6] ss:$0 sm:$0xff]  ;;  %vm336_vm5 = vcmask 779264   ;;  %vm343_vm6 = vcmask 64512   ;;  %vm391_vm7 = vcmask 36864  }
   0x3   :  { %4674 = sst [smem:[#allocation6_spill]] %s4632_s2  ;;  %vm410_vm8 = vcmask 1041408   ;;  %vm411_vm9 = vcmask 1042432   ;;  %vm406_vm10 = vcmask 39936   ;;  %vm457_vm11 = vcmask 61440   ;;  %s3819_s30 = smov 72  }
   0x4   :  { %4675 = sst [smem:[#allocation7_spill]] %s4633_s5  ;;  %s3812_s5 = smov 88   ;;  %vm577_vm12 = vcmask 127040   ;;  %vm697_vm13 = vcmask 192640   ;;  %vm817_vm14 = vcmask 258240  }
   0x5   :  { %4676 = sst [smem:[#allocation8_spill]] %s4634_s3  ;;  %s3818_s3 = smov 80  }
   0x6   :  { %s4677_s23 = sld [smem:[#allocation4_spill]]  ;;  %s4664_s1 = smov 104  }
   0x7   :  { %s4678_s29 = sld [smem:[#allocation5_spill]]  ;;  %s4656_s0 = smov 48  }
   0x8   :  { %s4679_s25 = sld [smem:[#allocation6_spill]]  ;;  %s4658_s22 = smov 40  }
   0x9   :  { %s4680_s27 = sld [smem:[#allocation7_spill]]  ;;  %s4670_s24 = smov 8  }
   0xa   :  { %s4681_s21 = sld [smem:[#allocation8_spill]]  ;;  %s4668_s2 = smov 16  }
   0xc   :  { %v3671_v1 = vld [vmem:[%s4677_s23 + $0x38] sm:$0xff]   ;;  %v3672_v2 = vld [vmem:[%s4677_s23 + $0x30] sm:$0xff]   ;;  %v3673_v3 = vld [vmem:[%s4677_s23 + $0x28] sm:$0xff]  }
   0xd   :  { %179 = vmatpush1.bf16.msra.mxu0 %v3671_v1  ;;  %v3674_v4 = vld [vmem:[%s4677_s23 + $0x20] sm:$0xff]   ;;  %v3675_v6 = vld [vmem:[%s4677_s23 + $0x18] sm:$0xff]   ;;  %v3676_v7 = vld [vmem:[%s4677_s23 + $0x10] sm:$0xff]  }
   0xe   :  { %180 = vmatprep.subr.bf16.mxu0 %v3808_v0  ;;  %v3685_v5 = vld [vmem:[%s4678_s29 + $0x4] ss:$8 sps:$4 sm:$0x1f]   ;;  %v3679_v10 = vld [vmem:[%s4677_s23 + $0x58] sm:$0xff]   ;;  %v3680_v11 = vld [vmem:[%s4677_s23 + $0x50] sm:$0xff]  }
   0xf   :  { %3136 = vmatprep.mubr.msk.bf16.mxu0 %vm174_vm0, %v3685_v5  ;;  %v3677_v8 = vld [vmem:[%s4677_s23 + $0x8] sm:$0xff]   ;;  %v3678_v9 = vld [vmem:[%s4677_s23] sm:$0xff]  }
  0x10   :  { %v3681_v12 = vld [vmem:[%s4677_s23 + $0x48] sm:$0xff]   ;;  %v3682_v13 = vld [vmem:[%s4677_s23 + $0x40] sm:$0xff]   ;;  %s3814_s23 = smov 120  }
  0x11   :  { %181 = vmatpush1.bf16.msra.mxu0 %v3672_v2  ;;  %v3683_v14 = vld [vmem:[%s4678_s29] ss:$8 sps:$4 sm:$0x1f]   ;;  %s4660_s29 = smov 56  }
  0x12   :  { %182 = vmatprep.subr.bf16.mxu0 %v3808_v0  ;;  %v91_v15 = vld [vmem:[%s4679_s25] sm:$0xff]  ;;  %v92_v19 = vld [vmem:[%s4679_s25 + $0x8] sm:$0x3]  ;;  %s3811_s25 = smov 96  }
  0x13   :  { %v3686_v36 = vld [vmem:[%s4680_s27 + $0x8] sm:$0xff]   ;;  %v3687_v37 = vld [vmem:[%s4680_s27] sm:$0xff]  }
  0x14   :  { %3366 = vmatpush3.bf16.msra.mxu1 %v3686_v36  ;;  %v3137_v46 = vld [vmem:[%s4681_s21] ss:$0 sm:$0xff] }
  0x15   :  { %183 = vmatpush1.bf16.msra.mxu0 %v3673_v3  ;;  %3367 = vmatprep.subr.bf16.mxu1 %v3809_v35 }
  0x16   :  { %184 = vmatprep.subr.bf16.mxu0 %v3808_v0 }
  0x18   :  { %3368 = vmatpush3.bf16.msra.mxu1 %v3687_v37 }
  0x19   :  { %185 = vmatpush1.bf16.msra.mxu0 %v3674_v4  ;;  %3373 = vmatprep.subr.bf16.mxu1 %v3809_v35 }
  0x1a   :  { %186 = vmatprep.subr.bf16.mxu0 %v3808_v0 }
  0x1d   :  { %187 = vmatpush1.bf16.msra.mxu0 %v3675_v6 }
  0x1e   :  { %188 = vmatprep.subr.bf16.mxu0 %v3808_v0 }
  0x21   :  { %189 = vmatpush1.bf16.msra.mxu0 %v3676_v7 }
  0x22   :  { %190 = vmatprep.subr.bf16.mxu0 %v3808_v0 }
  0x25   :  { %191 = vmatpush1.bf16.msra.mxu0 %v3677_v8 }
  0x26   :  { %192 = vmatprep.subr.bf16.mxu0 %v3808_v0 }
  0x29   :  { %193 = vmatpush1.bf16.msra.mxu0 %v3678_v9 }
  0x2a   :  { %202 = vmatprep.subr.bf16.mxu0 %v3808_v0 }
  0x2d   :  { %203 = vmatpush2.bf16.msra.mxu0 %v3679_v10 }
  0x2e   :  { %204 = vmatprep.subr.bf16.mxu0 %v3808_v0 }
  0x31   :  { %205 = vmatpush2.bf16.msra.mxu0 %v3680_v11 }
  0x32   :  { %206 = vmatprep.subr.bf16.mxu0 %v3808_v0 }
  0x35   :  { %207 = vmatpush2.bf16.msra.mxu0 %v3681_v12 }
  0x36   :  { %208 = vmatprep.subr.bf16.mxu0 %v3808_v0 }
  0x39   :  { %209 = vmatpush2.bf16.msra.mxu0 %v3682_v13 }
  0x3a   :  { %3415 = vmatprep.subr.bf16.mxu0 %v3809_v35 }
  0x3c   :  { %211 = vmatmul.mubr.bf16.vlgmr.msra.gmra.mxu0 %v3683_v14 }
  0x3d   :  { %3417 = vmatprep.mubr.msk.bf16.mxu0 %vm3810_vm3, %v3809_v35 }
  0xfc   :  { %v212_v16 = vpop.f32.mrf.mxu0 }
  0xfd   :  { %v3976_v17 = vadd.f32 %v212_v16, %v91_v15  ;;  %v3815_v15 = vmov 65535  }
  0xfe   :  { %v214_v18 = vpop.f32.mrf.mxu0  ;;  %v412_v16 = vsel %vm410_vm8, 4294967295, %v3815_v15 }
  0xff   :  { %v222_v20 = vsel %vm221_vm1, %v3976_v17, 0.0 }
 0x100   :  { %v215_v21 = vpop.f32.mrf.mxu0  ;;  %223 = vadd.xlane.f32.xlu0 %v222_v20 }
 0x101   :  { %v3983_v22 = vadd.f32 %v215_v21, %v92_v19  ;;  %v4034_v19 = vsel %vm411_vm9, %v412_v16, 0 }
 0x102   :  { %v217_v23 = vpop.f32.mrf.mxu0 }
 0x103   :  { %v226_v24 = vsel %vm225_vm2, %v3983_v22, 0.0 }
 0x104   :  { %227 = vadd.xlane.f32.xlu0 %v226_v24 }
 0x189   :  { %v224_v25 = vpop.xlane.xlu0 %223 }
 0x18a   :  { %v230_v26 = vmul.f32 0.03125, %v224_v25 }
 0x18c   :  { %v232_v27 = vsub.f32 %v3976_v17, %v230_v26 }
 0x18d   :  { %v228_v28 = vpop.xlane.xlu0 %227 }
 0x18e   :  { %v231_v29 = vmul.f32 0.03125, %v228_v28  ;;  %v234_v30 = vmul.f32 %v232_v27, %v232_v27 }
 0x190   :  { %v233_v31 = vsub.f32 %v3983_v22, %v231_v29  ;;  %v236_v32 = vsel %vm221_vm1, %v234_v30, 0.0 }
 0x191   :  { %237 = vadd.xlane.f32.xlu1 %v236_v32 }
 0x192   :  { %v235_v33 = vmul.f32 %v233_v31, %v233_v31 }
 0x194   :  { %v239_v34 = vsel %vm225_vm2, %v235_v33, 0.0 }
 0x195   :  { %240 = vadd.xlane.f32.xlu1 %v239_v34 }
 0x21a   :  { %v238_v38 = vpop.xlane.xlu1 %237 }
 0x21b   :  { %v242_v39 = vmul.f32 0.03125, %v238_v38 }
 0x21d   :  { %v244_v40 = vadd.f32 1e-06, %v242_v39 }
 0x21e   :  { %v241_v41 = vpop.xlane.xlu1 %240 }
 0x21f   :  { %3716 = vrsqrt.f32 %v244_v40  ;;  %v243_v42 = vmul.f32 0.03125, %v241_v41 }
 0x221   :  { %v245_v43 = vadd.f32 1e-06, %v243_v42 }
 0x223   :  { %3718 = vrsqrt.f32 %v245_v43 }
 0x22c   :  { %v3717_v44 = vpop.eup %3716 }
 0x22d   :  { %v248_v45 = vmul.f32 %v3717_v44, %v232_v27 }
 0x22f   :  { %v256_v49 = vmul.f32 %v3137_v46, %v248_v45 }
 0x230   :  { %v3719_v47 = vpop.eup %3718 }
 0x231   :  { %v249_v48 = vmul.f32 %v3719_v47, %v233_v31  ;;  %v264_v52 = vadd.f32 %v3138_v50, %v256_v49 }
 0x233   :  { %v257_v51 = vmul.f32 %v3137_v46, %v249_v48 }
 0x235   :  { %v265_v53 = vadd.f32 %v3138_v50, %v257_v51 }
 0x237   :  { %v266_v54 = vpack.c.bf16 %v265_v53, %v264_v52 }
 0x239   :  { %3370 = vmatmul.mubr.msk.bf16.vlgmr.msra.gmra.mxu1 %vm221_vm1, %v266_v54 }
 0x23a   :  { %3375 = vmatprep.mubr.msk.bf16.mxu1 %vm3810_vm3, %v3809_v35 }
 0x2f9   :  { %v327_v56 = vpop.f32.mrf.mxu1 }
 0x2fa   :  { %v328_v57 = vadd.f32 %v3139_v55, %v327_v56 }
 0x2fb   :  { %v3371_v58 = vpop.f32.mrf.mxu1 }
 0x2fc   :  { %335 = vst.msk [vmem:[#allocation2] sm:$0xff] %vm334_vm4, %v328_v57 }
 0x2fd   :  { %v330_v59 = vpop.f32.mrf.mxu1 }
 0x2fe   :  { %v331_v60 = vadd.f32 %v3139_v55, %v330_v59 }
 0x2ff   :  { %v3372_v61 = vpop.f32.mrf.mxu1 }
 0x300   :  { %337 = vst.msk [vmem:[#allocation2 + $0x8] sm:$0x3] %vm336_vm5, %v331_v60 }
 0x303   :  { %v338_v62 = vld [vmem:[#allocation2] sm:$0x1f] }
 0x304   :  { %v339_v63 = vpack.c.bf16 %v338_v62, %v338_v62  ;;  %v459_v0 = vld [vmem:[#allocation2] sm:$0x1f] }
 0x305   :  { %v4020_v1 = vpack.c.bf16 %v459_v0, %v459_v0  ;;  %v579_v40 = vld [vmem:[#allocation2] sm:$0x1f] }
 0x306   :  { %341 = vrot.lane.b32.xlu0 %v339_v63, %s3811_s25  ;;  %v4050_v41 = vpack.c.bf16 %v579_v40, %v579_v40 }
 0x307   :  { %v819_v15 = vld [vmem:[#allocation2 + $0x5] sm:$0x1f] }
 0x308   :  { %v4091_v16 = vpack.c.bf16 %v819_v15, %v819_v15 }
 0x30a   :  { %464 = vrot.lane.b32.xlu0 %v4020_v1, %s3812_s5 }
 0x378   :  { %v342_v2 = vpop.permute.xlu0 %341 }
 0x379   :  { %v348_v3 = vsel %vm343_vm6, %v342_v2, 0  ;;  %v699_v2 = vld [vmem:[#allocation2] sm:$0x1f] }
 0x37a   :  { %3374 = vmatpush3.bf16.xpose.msra.mxu1 %v348_v3  ;;  %v4070_v3 = vpack.c.bf16 %v699_v2, %v699_v2 }
 0x37b   :  { %3379 = vmatprep.subr.bf16.mxu1 %v3809_v35 }
 0x37c   :  { %v465_v25 = vpop.permute.xlu0 %464 }
 0x37d   :  { %v470_v27 = vsel %vm343_vm6, %v465_v25, 0 }
 0x381   :  { %3376 = vmatmul.mubr.msk.bf16.vlgmr.msra.gmra.mxu1 %vm343_vm6, %v339_v63 }
 0x382   :  { %3381 = vmatprep.mubr.msk.bf16.mxu1 %vm3810_vm3, %v3809_v35 }
 0x441   :  { %v384_v4 = vpop.f32.mrf.mxu1 }
 0x442   :  { %v390_v5 = vmul.f32 0.35355338, %v384_v4  ;;  %v932_v4 = vld [vmem:[#allocation2 + $0x5] sm:$0x1f] }
 0x443   :  { %v3377_v6 = vpop.f32.mrf.mxu1 }
 0x444   :  { %v392_v7 = vsel %vm391_vm7, %v390_v5, -inf  ;;  %v1051_v6 = vld [vmem:[#allocation2 + $0x5] sm:$0x1f] }
 0x445   :  { %393 = vmax.xlane.f32.xlu1 %v392_v7  ;;  %v387_v8 = vpop.f32.mrf.mxu1  ;;  %v4080_v7 = vpack.c.bf16 %v1051_v6, %v1051_v6 }
 0x446   :  { %v1170_v8 = vld [vmem:[#allocation2 + $0x5] sm:$0x1f] }
 0x447   :  { %v3378_v9 = vpop.f32.mrf.mxu1 }
 0x448   :  { %v4084_v9 = vpack.c.bf16 %v1170_v8, %v1170_v8 }
 0x4ce   :  { %v394_v10 = vpop.xlane.xlu1 %393 }
 0x4cf   :  { %v395_v11 = vsub.f32 %v390_v5, %v394_v10  ;;  %v4076_v5 = vpack.c.bf16 %v932_v4, %v932_v4 }
 0x4d1   :  { %v396_v12 = vmul.f32 1.442695, %v395_v11 }
 0x4d3   :  { %3720 = vpow2.f32 %v396_v12 }
 0x4e0   :  { %v3721_v13 = vpop.eup %3720 }
 0x4e1   :  { %v398_v14 = vsel %vm391_vm7, %v3721_v13, 0.0 }
 0x4e2   :  { %399 = vadd.xlane.f32.xlu1 %v398_v14 }
 0x4f3   :  { %404 = vrot.lane.b32.xlu1 %v339_v63, %s4662_s26 }
 0x4f7   :  { %462 = vrot.lane.b32.xlu1 %v4020_v1, %s3814_s23 }
 0x56b   :  { %v400_v18 = vpop.xlane.xlu1 %399 }
 0x56c   :  { %3722 = vrcp.f32 %v400_v18 }
 0x56f   :  { %v405_v20 = vpop.permute.xlu1 %404 }
 0x570   :  { %v415_v21 = vand.u32 %v4034_v19, %v405_v20 }
 0x572   :  { %3380 = vmatpush3.bf16.msra.mxu1 %v415_v21 }
 0x573   :  { %3385 = vmatprep.subr.bf16.mxu1 %v3809_v35  ;;  %v463_v28 = vpop.permute.xlu1 %462 }
 0x579   :  { %v3723_v23 = vpop.eup %3722 }
 0x57a   :  { %v402_v24 = vmul.f32 %v3723_v23, %v3721_v13 }
 0x57c   :  { %v403_v26 = vpack.c.bf16 %v402_v24, %v402_v24 }
 0x57e   :  { %3382 = vmatmul.mubr.msk.bf16.vlgmr.msra.gmra.mxu1 %vm406_vm10, %v403_v26 }
 0x57f   :  { %3386 = vmatpush3.bf16.xpose.msra.mxu1 %v470_v27  ;;  %3387 = vmatprep.mubr.msk.bf16.mxu1 %vm3810_vm3, %v3809_v35 }
 0x580   :  { %3391 = vmatprep.subr.bf16.mxu1 %v3809_v35 }
 0x586   :  { %3388 = vmatmul.mubr.msk.bf16.vlgmr.msra.gmra.mxu1 %vm343_vm6, %v463_v28 }
 0x587   :  { %3393 = vmatprep.mubr.msk.bf16.mxu1 %vm3810_vm3, %v3809_v35 }
 0x63e   :  { %v451_v29 = vpop.f32.mrf.mxu1 }
 0x63f   :  { %458 = vst.msk [vmem:[#allocation3] sm:$0x1f] %vm457_vm11, %v451_v29 }
 0x640   :  { %v3383_v30 = vpop.f32.mrf.mxu1 }
 0x642   :  { %v454_v31 = vpop.f32.mrf.mxu1 }
 0x644   :  { %v3384_v32 = vpop.f32.mrf.mxu1 }
 0x646   :  { %v506_v33 = vpop.f32.mrf.mxu1 }
 0x647   :  { %v512_v34 = vmul.f32 0.35355338, %v506_v33 }
 0x648   :  { %v3389_v36 = vpop.f32.mrf.mxu1 }
 0x649   :  { %v513_v37 = vsel %vm391_vm7, %v512_v34, -inf }
 0x64a   :  { %514 = vmax.xlane.f32.xlu0 %v513_v37  ;;  %v509_v38 = vpop.f32.mrf.mxu1 }
 0x64c   :  { %v3390_v39 = vpop.f32.mrf.mxu1 }
 0x660   :  { %525 = vrot.lane.b32.xlu0 %v4020_v1, %s4660_s29 }
 0x664   :  { %582 = vrot.lane.b32.xlu0 %v4050_v41, %s3817_s28 }
 0x6d3   :  { %v515_v42 = vpop.xlane.xlu0 %514 }
 0x6d4   :  { %v516_v43 = vsub.f32 %v512_v34, %v515_v42 }
 0x6d6   :  { %v517_v44 = vmul.f32 1.442695, %v516_v43 }
 0x6d7   :  { %v526_v45 = vpop.permute.xlu0 %525 }
 0x6d8   :  { %3724 = vpow2.f32 %v517_v44  ;;  %v531_v46 = vand.u32 %v526_v45, %v4034_v19 }
 0x6da   :  { %3392 = vmatpush3.bf16.msra.mxu1 %v531_v46 }
 0x6db   :  { %3397 = vmatprep.subr.bf16.mxu1 %v3809_v35  ;;  %v583_v55 = vpop.permute.xlu0 %582 }
 0x6e5   :  { %v3725_v47 = vpop.eup %3724 }
 0x6e6   :  { %v519_v48 = vsel %vm391_vm7, %v3725_v47, 0.0 }
 0x6e7   :  { %520 = vadd.xlane.f32.xlu1 %v519_v48 }
 0x6f8   :  { %584 = vrot.lane.b32.xlu1 %v4050_v41, %s3818_s3 }
 0x770   :  { %v521_v49 = vpop.xlane.xlu1 %520 }
 0x771   :  { %3726 = vrcp.f32 %v521_v49 }
 0x774   :  { %v585_v52 = vpop.permute.xlu1 %584 }
 0x775   :  { %v590_v54 = vsel %vm343_vm6, %v585_v52, 0 }
 0x77e   :  { %v3727_v50 = vpop.eup %3726 }
 0x77f   :  { %v523_v51 = vmul.f32 %v3727_v50, %v3725_v47 }
 0x781   :  { %v524_v53 = vpack.c.bf16 %v523_v51, %v523_v51 }
 0x783   :  { %3394 = vmatmul.mubr.msk.bf16.vlgmr.msra.gmra.mxu1 %vm406_vm10, %v524_v53 }
 0x784   :  { %3398 = vmatpush3.bf16.xpose.msra.mxu1 %v590_v54  ;;  %3399 = vmatprep.mubr.msk.bf16.mxu1 %vm3810_vm3, %v3809_v35 }
 0x785   :  { %3403 = vmatprep.subr.bf16.mxu1 %v3809_v35 }
 0x78b   :  { %3400 = vmatmul.mubr.msk.bf16.vlgmr.msra.gmra.mxu1 %vm343_vm6, %v583_v55 }
 0x78c   :  { %3405 = vmatprep.mubr.msk.bf16.mxu1 %vm3810_vm3, %v3809_v35 }
 0x843   :  { %v4067_v56 = vpop.f32.mrf.mxu1 }
 0x845   :  { %v3395_v57 = vpop.f32.mrf.mxu1 }
 0x847   :  { %v570_v58 = vpop.f32.mrf.mxu1 }
 0x849   :  { %v3396_v59 = vpop.f32.mrf.mxu1 }
 0x84b   :  { %v626_v60 = vpop.f32.mrf.mxu1 }
 0x84c   :  { %v632_v61 = vmul.f32 0.35355338, %v626_v60 }
 0x84d   :  { %v3401_v62 = vpop.f32.mrf.mxu1 }
 0x84e   :  { %v633_v63 = vsel %vm391_vm7, %v632_v61, -inf }
 0x84f   :  { %634 = vmax.xlane.f32.xlu1 %v633_v63  ;;  %v629_v0 = vpop.f32.mrf.mxu1 }
 0x851   :  { %v3402_v1 = vpop.f32.mrf.mxu1 }
 0x860   :  { %704 = vrot.lane.b32.xlu1 %v4070_v3, %s3819_s30 }
 0x864   :  { %702 = vrot.lane.b32.xlu1 %v4070_v3, %s4664_s1 }
 0x868   :  { %937 = vrot.lane.b32.xlu1 %v4076_v5, %s3812_s5 }
 0x86c   :  { %1056 = vrot.lane.b32.xlu1 %v4080_v7, %s3818_s3 }
 0x870   :  { %1175 = vrot.lane.b32.xlu1 %v4084_v9, %s3819_s30 }
 0x8d8   :  { %v635_v10 = vpop.xlane.xlu1 %634 }
 0x8d9   :  { %v636_v11 = vsub.f32 %v632_v61, %v635_v10 }
 0x8db   :  { %v637_v12 = vmul.f32 1.442695, %v636_v11 }
 0x8dc   :  { %v705_v25 = vpop.permute.xlu1 %704 }
 0x8dd   :  { %3728 = vpow2.f32 %v637_v12  ;;  %v710_v27 = vsel %vm343_vm6, %v705_v25, 0 }
 0x8e0   :  { %v703_v29 = vpop.permute.xlu1 %702 }
 0x8e4   :  { %v938_v31 = vpop.permute.xlu1 %937 }
 0x8e5   :  { %v943_v32 = vsel %vm343_vm6, %v938_v31, 0 }
 0x8e8   :  { %v1057_v33 = vpop.permute.xlu1 %1056 }
 0x8e9   :  { %v1062_v36 = vsel %vm343_vm6, %v1057_v33, 0 }
 0x8ea   :  { %v3729_v13 = vpop.eup %3728 }
 0x8eb   :  { %v639_v14 = vsel %vm391_vm7, %v3729_v13, 0.0 }
 0x8ec   :  { %640 = vadd.xlane.f32.xlu0 %v639_v14  ;;  %v1176_v37 = vpop.permute.xlu1 %1175 }
 0x8ed   :  { %v1181_v39 = vsel %vm343_vm6, %v1176_v37, 0 }
 0x902   :  { %645 = vrot.lane.b32.xlu0 %v4050_v41, %s4656_s0 }
 0x906   :  { %822 = vrot.lane.b32.xlu0 %v4091_v16, %s3811_s25 }
 0x90a   :  { %935 = vrot.lane.b32.xlu0 %v4076_v5, %s3814_s23 }
 0x90e   :  { %1054 = vrot.lane.b32.xlu0 %v4080_v7, %s3817_s28 }
 0x912   :  { %1173 = vrot.lane.b32.xlu0 %v4084_v9, %s4664_s1  ;;  %s4689_s1 = smov 24  }
 0x975   :  { %v641_v18 = vpop.xlane.xlu0 %640 }
 0x976   :  { %3730 = vrcp.f32 %v641_v18 }
 0x979   :  { %v646_v20 = vpop.permute.xlu0 %645 }
 0x97a   :  { %v651_v21 = vand.u32 %v646_v20, %v4034_v19 }
 0x97c   :  { %3404 = vmatpush3.bf16.msra.mxu1 %v651_v21 }
 0x97d   :  { %3409 = vmatprep.subr.bf16.mxu1 %v3809_v35  ;;  %v823_v28 = vpop.permute.xlu0 %822 }
 0x97e   :  { %v828_v30 = vsel %vm343_vm6, %v823_v28, 0 }
 0x981   :  { %v936_v34 = vpop.permute.xlu0 %935 }
 0x983   :  { %v3731_v23 = vpop.eup %3730 }
 0x984   :  { %v643_v24 = vmul.f32 %v3731_v23, %v3729_v13 }
 0x985   :  { %v1055_v38 = vpop.permute.xlu0 %1054 }
 0x986   :  { %v644_v26 = vpack.c.bf16 %v643_v24, %v643_v24 }
 0x988   :  { %3406 = vmatmul.mubr.msk.bf16.vlgmr.msra.gmra.mxu1 %vm406_vm10, %v644_v26 }
 0x989   :  { %3410 = vmatpush3.bf16.xpose.msra.mxu1 %v710_v27  ;;  %3411 = vmatprep.mubr.msk.bf16.mxu1 %vm3810_vm3, %v3809_v35  ;;  %v1174_v40 = vpop.permute.xlu0 %1173 }
 0x98a   :  { %3421 = vmatprep.subr.bf16.mxu1 %v3809_v35 }
 0x990   :  { %3412 = vmatmul.mubr.msk.bf16.vlgmr.msra.gmra.mxu1 %vm343_vm6, %v703_v29 }
 0x991   :  { %3422 = vmatpush3.bf16.xpose.msra.mxu1 %v828_v30  ;;  %3423 = vmatprep.mubr.msk.bf16.mxu1 %vm3810_vm3, %v3809_v35 }
 0x992   :  { %3433 = vmatprep.subr.bf16.mxu1 %v3809_v35 }
 0x998   :  { %3424 = vmatmul.mubr.msk.bf16.vlgmr.msra.gmra.mxu1 %vm343_vm6, %v4091_v16 }
 0x999   :  { %3434 = vmatpush3.bf16.xpose.msra.mxu1 %v943_v32  ;;  %3435 = vmatprep.mubr.msk.bf16.mxu1 %vm3810_vm3, %v3809_v35 }
 0x99a   :  { %3445 = vmatprep.subr.bf16.mxu1 %v3809_v35 }
 0x9a0   :  { %3436 = vmatmul.mubr.msk.bf16.vlgmr.msra.gmra.mxu1 %vm343_vm6, %v936_v34 }
 0x9a1   :  { %3446 = vmatpush3.bf16.xpose.msra.mxu1 %v1062_v36  ;;  %3447 = vmatprep.mubr.msk.bf16.mxu1 %vm3810_vm3, %v3809_v35 }
 0x9a2   :  { %3457 = vmatprep.subr.bf16.mxu1 %v3809_v35 }
 0x9a8   :  { %3448 = vmatmul.mubr.msk.bf16.vlgmr.msra.gmra.mxu1 %vm343_vm6, %v1055_v38 }
 0x9a9   :  { %3458 = vmatpush3.bf16.xpose.msra.mxu1 %v1181_v39  ;;  %3459 = vmatprep.mubr.msk.bf16.mxu1 %vm3810_vm3, %v3809_v35 }
 0x9aa   :  { %3469 = vmatprep.subr.bf16.mxu1 %v3809_v35 }
 0x9b0   :  { %3460 = vmatmul.mubr.msk.bf16.vlgmr.msra.gmra.mxu1 %vm343_vm6, %v1174_v40 }
 0x9b1   :  { %3473 = vmatprep.mubr.msk.bf16.mxu1 %vm3810_vm3, %v3809_v35 }
 0xa48   :  { %v4132_v41 = vpop.f32.mrf.mxu1 }
 0xa4a   :  { %v3407_v42 = vpop.f32.mrf.mxu1 }
 0xa4c   :  { %v690_v43 = vpop.f32.mrf.mxu1 }
 0xa4e   :  { %v3408_v44 = vpop.f32.mrf.mxu1 }
 0xa50   :  { %v746_v45 = vpop.f32.mrf.mxu1 }
 0xa51   :  { %v752_v46 = vmul.f32 0.35355338, %v746_v45 }
 0xa52   :  { %v3413_v47 = vpop.f32.mrf.mxu1 }
 0xa53   :  { %v753_v48 = vsel %vm391_vm7, %v752_v46, -inf }
 0xa54   :  { %754 = vmax.xlane.f32.xlu1 %v753_v48  ;;  %v749_v49 = vpop.f32.mrf.mxu1 }
 0xa56   :  { %v3414_v50 = vpop.f32.mrf.mxu1 }
 0xa58   :  { %v864_v51 = vpop.f32.mrf.mxu1 }
 0xa59   :  { %v870_v52 = vmul.f32 0.35355338, %v864_v51 }
 0xa5a   :  { %v3425_v53 = vpop.f32.mrf.mxu1 }
 0xa5b   :  { %v871_v54 = vsel %vm391_vm7, %v870_v52, -inf }
 0xa5c   :  { %872 = vmax.xlane.f32.xlu0 %v871_v54  ;;  %v867_v55 = vpop.f32.mrf.mxu1 }
 0xa5e   :  { %v3426_v57 = vpop.f32.mrf.mxu1 }
 0xa60   :  { %v979_v58 = vpop.f32.mrf.mxu1 }
 0xa61   :  { %v985_v59 = vmul.f32 0.35355338, %v979_v58 }
 0xa62   :  { %v3437_v60 = vpop.f32.mrf.mxu1 }
 0xa63   :  { %v986_v61 = vsel %vm391_vm7, %v985_v59, -inf }
 0xa64   :  { %987 = vmax.xlane.f32.xlu0 %v986_v61  ;;  %v982_v62 = vpop.f32.mrf.mxu1 }
 0xa66   :  { %v3438_v63 = vpop.f32.mrf.mxu1 }
 0xa68   :  { %v1098_v0 = vpop.f32.mrf.mxu1 }
 0xa69   :  { %v1104_v1 = vmul.f32 0.35355338, %v1098_v0 }
 0xa6a   :  { %v3449_v2 = vpop.f32.mrf.mxu1 }
 0xa6b   :  { %v1105_v4 = vsel %vm391_vm7, %v1104_v1, -inf }
 0xa6c   :  { %1106 = vmax.xlane.f32.xlu0 %v1105_v4  ;;  %v1101_v6 = vpop.f32.mrf.mxu1 }
 0xa6e   :  { %v3450_v8 = vpop.f32.mrf.mxu1 }
 0xa70   :  { %v1217_v10 = vpop.f32.mrf.mxu1 }
 0xa71   :  { %v1223_v11 = vmul.f32 0.35355338, %v1217_v10 }
 0xa72   :  { %v3461_v12 = vpop.f32.mrf.mxu1 }
 0xa73   :  { %v1224_v13 = vsel %vm391_vm7, %v1223_v11, -inf }
 0xa74   :  { %1225 = vmax.xlane.f32.xlu1 %v1224_v13  ;;  %v1220_v14 = vpop.f32.mrf.mxu1 }
 0xa76   :  { %v3462_v15 = vpop.f32.mrf.mxu1 }
 0xadd   :  { %v755_v18 = vpop.xlane.xlu1 %754 }
 0xade   :  { %v756_v20 = vsub.f32 %v752_v46, %v755_v18 }
 0xae0   :  { %v757_v21 = vmul.f32 1.442695, %v756_v20 }
 0xae2   :  { %3732 = vpow2.f32 %v757_v21 }
 0xae5   :  { %v873_v23 = vpop.xlane.xlu0 %872 }
 0xae6   :  { %v874_v24 = vsub.f32 %v870_v52, %v873_v23 }
 0xae8   :  { %v875_v25 = vmul.f32 1.442695, %v874_v24 }
 0xaea   :  { %3734 = vpow2.f32 %v875_v25 }
 0xaed   :  { %v988_v26 = vpop.xlane.xlu0 %987 }
 0xaee   :  { %v989_v27 = vsub.f32 %v985_v59, %v988_v26 }
 0xaef   :  { %v3733_v28 = vpop.eup %3732 }
 0xaf0   :  { %v990_v29 = vmul.f32 1.442695, %v989_v27  ;;  %v759_v30 = vsel %vm391_vm7, %v3733_v28, 0.0 }
 0xaf1   :  { %760 = vadd.xlane.f32.xlu0 %v759_v30  ;;  %v3689_v30 = vld [vmem:[%s4637_s7] sm:$0xff]  }
 0xaf2   :  { %3736 = vpow2.f32 %v990_v29  ;;  %v3688_v29 = vld [vmem:[%s4637_s7 + $0x8] sm:$0xff]  }
 0xaf3   :  { %3470 = vmatpush3.bf16.msra.mxu1 %v3688_v29  ;;  %v3697_v29 = vld [vmem:[%s4642_s13 + $0x10] sm:$0xff]  }
 0xaf4   :  { %3471 = vmatprep.subr.bf16.mxu1 %v3809_v35 }
 0xaf5   :  { %v1107_v36 = vpop.xlane.xlu0 %1106 }
 0xaf6   :  { %v1108_v37 = vsub.f32 %v1104_v1, %v1107_v36 }
 0xaf7   :  { %v3735_v31 = vpop.eup %3734  ;;  %3472 = vmatpush3.bf16.msra.mxu1 %v3689_v30  ;;  %v3698_v30 = vld [vmem:[%s4642_s13 + $0x8] sm:$0xff]  }
 0xaf8   :  { %v877_v32 = vsel %vm391_vm7, %v3735_v31, 0.0  ;;  %v1109_v39 = vmul.f32 1.442695, %v1108_v37  ;;  %3485 = vmatprep.subr.bf16.mxu1 %v3809_v35 }
 0xaf9   :  { %878 = vadd.xlane.f32.xlu1 %v877_v32 }
 0xafa   :  { %3738 = vpow2.f32 %v1109_v39 }
 0xafd   :  { %v1226_v38 = vpop.xlane.xlu1 %1225 }
 0xafe   :  { %v1227_v40 = vsub.f32 %v1223_v11, %v1226_v38 }
 0xaff   :  { %v4141_v33 = vpop.eup %3736 }
 0xb00   :  { %v992_v34 = vsel %vm391_vm7, %v4141_v33, 0.0 }
 0xb01   :  { %993 = vadd.xlane.f32.xlu0 %v992_v34 }
 0xb0a   :  { %883 = vrot.lane.b32.xlu1 %v4091_v16, %s4662_s26  ;;  %v1228_v16 = vmul.f32 1.442695, %v1227_v40 }
 0xb0c   :  { %3740 = vpow2.f32 %v1228_v16 }
 0xb0e   :  { %998 = vrot.lane.b32.xlu1 %v4076_v5, %s4660_s29  ;;  %v3739_v5 = vpop.eup %3738 }
 0xb17   :  { %765 = vrot.lane.b32.xlu0 %v4070_v3, %s4658_s22  ;;  %v1111_v3 = vsel %vm391_vm7, %v3739_v5, 0.0 }
 0xb19   :  { %v3741_v42 = vpop.eup %3740 }
 0xb1b   :  { %1117 = vrot.lane.b32.xlu0 %v4080_v7, %s4656_s0  ;;  %v1230_v7 = vsel %vm391_vm7, %v3741_v42, 0.0  ;;  %s4666_s0 = smov 24  }
 0xb1f   :  { %574 = vrot.lane.b32.xlu0 %v4067_v56, %s4670_s24 }
 0xb23   :  { %694 = vrot.lane.b32.xlu0 %v4132_v41, %s4668_s2 }
 0xb32   :  { %1112 = vadd.xlane.f32.xlu1 %v1111_v3 }
 0xb36   :  { %1231 = vadd.xlane.f32.xlu1 %v1230_v7 }
 0xb47   :  { %1236 = vrot.lane.b32.xlu1 %v4084_v9, %s4658_s22 }
 0xb7a   :  { %v761_v43 = vpop.xlane.xlu0 %760 }
 0xb7b   :  { %3742 = vrcp.f32 %v761_v43 }
 0xb82   :  { %v879_v56 = vpop.xlane.xlu1 %878 }
 0xb83   :  { %3744 = vrcp.f32 %v879_v56  ;;  %v3159_v56 = vld [vmem:[%s4638_s8] ss:$0 sm:$0xff] }
 0xb86   :  { %v884_v48 = vpop.permute.xlu1 %883 }
 0xb87   :  { %v889_v9 = vand.u32 %v884_v48, %v4034_v19 }
 0xb88   :  { %v3743_v45 = vpop.eup %3742 }
 0xb89   :  { %v763_v46 = vmul.f32 %v3743_v45, %v3733_v28 }
 0xb8a   :  { %v994_v44 = vpop.xlane.xlu0 %993  ;;  %v999_v54 = vpop.permute.xlu1 %998 }
 0xb8b   :  { %3746 = vrcp.f32 %v994_v44  ;;  %v764_v50 = vpack.c.bf16 %v763_v46, %v763_v46  ;;  %v1004_v59 = vand.u32 %v999_v54, %v4034_v19 }
 0xb8e   :  { %v766_v41 = vpop.permute.xlu0 %765 }
 0xb8f   :  { %v771_v47 = vand.u32 %v766_v41, %v4034_v19 }
 0xb90   :  { %v3745_v51 = vpop.eup %3744 }
 0xb91   :  { %3416 = vmatpush3.bf16.msra.mxu0 %v771_v47  ;;  %v881_v53 = vmul.f32 %v3745_v51, %v3735_v31 }
 0xb92   :  { %v1118_v49 = vpop.permute.xlu0 %1117  ;;  %3427 = vmatprep.subr.bf16.mxu0 %v3809_v35 }
 0xb93   :  { %v882_v57 = vpack.c.bf16 %v881_v53, %v881_v53  ;;  %v1123_v62 = vand.u32 %v1118_v49, %v4034_v19 }
 0xb94   :  { %3418 = vmatmul.mubr.msk.bf16.vlgmr.msra.gmra.mxu0 %vm406_vm10, %v764_v50 }
 0xb95   :  { %3428 = vmatpush3.bf16.msra.mxu0 %v889_v9  ;;  %3429 = vmatprep.mubr.msk.bf16.mxu0 %vm3810_vm3, %v3809_v35 }
 0xb96   :  { %v575_v52 = vpop.permute.xlu0 %574  ;;  %3439 = vmatprep.subr.bf16.mxu0 %v3809_v35 }
 0xb97   :  { %578 = vst.msk [vmem:[#allocation3] sm:$0x1f] %vm577_vm12, %v575_v52 }
 0xb98   :  { %v3747_v58 = vpop.eup %3746 }
 0xb99   :  { %v996_v60 = vmul.f32 %v3747_v58, %v4141_v33 }
 0xb9a   :  { %v695_v55 = vpop.permute.xlu0 %694 }
 0xb9b   :  { %698 = vst.msk [vmem:[#allocation3] sm:$0x1f] %vm697_vm13, %v695_v55  ;;  %v997_v61 = vpack.c.bf16 %v996_v60, %v996_v60 }
 0xb9c   :  { %3430 = vmatmul.mubr.msk.bf16.vlgmr.msra.gmra.mxu0 %vm406_vm10, %v882_v57 }
 0xb9d   :  { %3440 = vmatpush3.bf16.msra.mxu0 %v1004_v59  ;;  %3441 = vmatprep.mubr.msk.bf16.mxu0 %vm3810_vm3, %v3809_v35 }
 0xb9e   :  { %3451 = vmatprep.subr.bf16.mxu0 %v3809_v35 }
 0xba4   :  { %3442 = vmatmul.mubr.msk.bf16.vlgmr.msra.gmra.mxu0 %vm406_vm10, %v997_v61  ;;  %v3690_v61 = vld [vmem:[%s4639_s11 + $0x8] sm:$0xff]  }
 0xba5   :  { %3452 = vmatpush3.bf16.msra.mxu0 %v1123_v62  ;;  %3453 = vmatprep.mubr.msk.bf16.mxu0 %vm3810_vm3, %v3809_v35  ;;  %v3691_v62 = vld [vmem:[%s4639_s11] sm:$0xff]  }
 0xba6   :  { %3463 = vmatprep.subr.bf16.mxu0 %v3809_v35 }
 0xbbb   :  { %v1113_v63 = vpop.xlane.xlu1 %1112 }
 0xbbc   :  { %3748 = vrcp.f32 %v1113_v63 }
 0xbbf   :  { %v1232_v0 = vpop.xlane.xlu1 %1231 }
 0xbc0   :  { %3750 = vrcp.f32 %v1232_v0 }
 0xbc3   :  { %v1237_v2 = vpop.permute.xlu1 %1236 }
 0xbc4   :  { %v1242_v10 = vand.u32 %v1237_v2, %v4034_v19 }
 0xbc9   :  { %v3749_v1 = vpop.eup %3748 }
 0xbca   :  { %v1115_v4 = vmul.f32 %v3749_v1, %v3739_v5 }
 0xbcc   :  { %v1116_v6 = vpack.c.bf16 %v1115_v4, %v1115_v4 }
 0xbcd   :  { %v3751_v8 = vpop.eup %3750 }
 0xbce   :  { %3454 = vmatmul.mubr.msk.bf16.vlgmr.msra.gmra.mxu0 %vm406_vm10, %v1116_v6  ;;  %v1234_v11 = vmul.f32 %v3751_v8, %v3741_v42 }
 0xbcf   :  { %3464 = vmatpush3.bf16.msra.mxu0 %v1242_v10  ;;  %3465 = vmatprep.mubr.msk.bf16.mxu0 %vm3810_vm3, %v3809_v35 }
 0xbd0   :  { %3477 = vmatprep.subr.bf16.mxu0 %v3809_v35  ;;  %v1235_v12 = vpack.c.bf16 %v1234_v11, %v1234_v11  ;;  %v3163_v11 = vld [vmem:[%s4640_s9] ss:$0 sm:$0xff] }
 0xbd6   :  { %3466 = vmatmul.mubr.msk.bf16.vlgmr.msra.gmra.mxu0 %vm406_vm10, %v1235_v12 }
 0xbd7   :  { %3481 = vmatprep.mubr.msk.bf16.mxu0 %vm3810_vm3, %v3809_v35  ;;  %3478 = vmatpush3.bf16.msra.mxu0 %v3690_v61 }
 0xbd8   :  { %3479 = vmatprep.subr.bf16.mxu0 %v3809_v35 }
 0xbdb   :  { %3480 = vmatpush3.bf16.msra.mxu0 %v3691_v62 }
 0xbdc   :  { %3505 = vmatprep.subr.bf16.mxu0 %v3809_v35 }
 0xc54   :  { %v807_v13 = vpop.f32.mrf.mxu0 }
 0xc55   :  { %814 = vrot.lane.b32.xlu0 %v807_v13, %s4666_s0 }
 0xc56   :  { %v3419_v14 = vpop.f32.mrf.mxu0 }
 0xc58   :  { %v810_v15 = vpop.f32.mrf.mxu0 }
 0xc59   :  { %v3164_v15 = vld [vmem:[%s4641_s10] ss:$0 sm:$0xff] }
 0xc5a   :  { %v3420_v18 = vpop.f32.mrf.mxu0 }
 0xc5c   :  { %v925_v20 = vpop.f32.mrf.mxu0 }
 0xc5d   :  { %931 = vst.msk [vmem:[#allocation3 + $0x5] sm:$0x1f] %vm457_vm11, %v925_v20 }
 0xc5e   :  { %v3431_v21 = vpop.f32.mrf.mxu0 }
 0xc60   :  { %v928_v23 = vpop.f32.mrf.mxu0 }
 0xc62   :  { %v3432_v24 = vpop.f32.mrf.mxu0 }
 0xc63   :  { %v3692_v24 = vld [vmem:[%s4642_s13 + $0x38] sm:$0xff]  }
 0xc64   :  { %v1040_v25 = vpop.f32.mrf.mxu0 }
 0xc65   :  { %1047 = vrot.lane.b32.xlu1 %v1040_v25, %s4670_s24  ;;  %v3693_v25 = vld [vmem:[%s4642_s13 + $0x30] sm:$0xff]  }
 0xc66   :  { %v3443_v26 = vpop.f32.mrf.mxu0 }
 0xc67   :  { %v3694_v26 = vld [vmem:[%s4642_s13 + $0x28] sm:$0xff]  }
 0xc68   :  { %v1043_v27 = vpop.f32.mrf.mxu0 }
 0xc69   :  { %v3695_v27 = vld [vmem:[%s4642_s13 + $0x20] sm:$0xff]  }
 0xc6a   :  { %v3444_v28 = vpop.f32.mrf.mxu0 }
 0xc6b   :  { %v3696_v28 = vld [vmem:[%s4642_s13 + $0x18] sm:$0xff]  }
 0xc8e   :  { %v1159_v31 = vpop.f32.mrf.mxu0 }
 0xc8f   :  { %1166 = vrot.lane.b32.xlu1 %v1159_v31, %s4668_s2  ;;  %v3699_v31 = vld [vmem:[%s4642_s13] sm:$0xff]   ;;  %s4687_s2 = smov 8  }
 0xc90   :  { %v3455_v32 = vpop.f32.mrf.mxu0 }
 0xc91   :  { %v3165_v32 = vld [vmem:[%s4643_s12] ss:$0 sm:$0xff] }
 0xc92   :  { %v1162_v33 = vpop.f32.mrf.mxu0 }
 0xc94   :  { %v3456_v34 = vpop.f32.mrf.mxu0 }
 0xc96   :  { %v1278_v36 = vpop.f32.mrf.mxu0 }
 0xc97   :  { %1285 = vrot.lane.b32.xlu1 %v1278_v36, %s4666_s0 }
 0xc98   :  { %v3467_v37 = vpop.f32.mrf.mxu0 }
 0xc9a   :  { %v1281_v38 = vpop.f32.mrf.mxu0 }
 0xc9c   :  { %v3468_v39 = vpop.f32.mrf.mxu0 }
 0xcc7   :  { %v815_v40 = vpop.permute.xlu0 %814 }
 0xcc8   :  { %818 = vst.msk [vmem:[#allocation3] sm:$0x1f] %vm817_vm14, %v815_v40 }
 0xcd7   :  { %v1048_v16 = vpop.permute.xlu1 %1047 }
 0xcd8   :  { %1050 = vst.msk [vmem:[#allocation3 + $0x5] sm:$0x1f] %vm577_vm12, %v1048_v16 }
 0xd01   :  { %v1167_v5 = vpop.permute.xlu1 %1166 }
 0xd02   :  { %1169 = vst.msk [vmem:[#allocation3 + $0x5] sm:$0x1f] %vm697_vm13, %v1167_v5 }
 0xd09   :  { %v1286_v3 = vpop.permute.xlu1 %1285 }
 0xd0a   :  { %1288 = vst.msk [vmem:[#allocation3 + $0x5] sm:$0x1f] %vm817_vm14, %v1286_v3 }
 0xd11   :  { %v1289_v42 = vld [vmem:[#allocation3] sm:$0xff]  ;;  %v1290_v7 = vld [vmem:[#allocation3 + $0x8] sm:$0x3] }
 0xd12   :  { %v1291_v43 = vpack.c.bf16 %v1290_v7, %v1289_v42 }
 0xd14   :  { %3474 = vmatmul.mubr.msk.bf16.vlgmr.msra.gmra.mxu1 %vm221_vm1, %v1291_v43 }
 0xd15   :  { %3501 = vmatprep.mubr.msk.bf16.mxu1 %vm3810_vm3, %v3809_v35  ;;  %3486 = vmatpush3.bf16.msra.mxu1 %v3692_v24 }
 0xd16   :  { %3487 = vmatprep.subr.bf16.mxu1 %v3809_v35 }
 0xd19   :  { %3488 = vmatpush3.bf16.msra.mxu1 %v3693_v25 }
 0xd1a   :  { %3489 = vmatprep.subr.bf16.mxu1 %v3809_v35 }
 0xd1d   :  { %3490 = vmatpush3.bf16.msra.mxu1 %v3694_v26  ;;  %v3180_v26 = vld [vmem:[%s4681_s21 + $0x1] ss:$0 sm:$0xff]  ;;  %s4684_s21 = smov 56  }
 0xd1e   :  { %3491 = vmatprep.subr.bf16.mxu1 %v3809_v35 }
 0xd21   :  { %3492 = vmatpush3.bf16.msra.mxu1 %v3695_v27 }
 0xd22   :  { %3493 = vmatprep.subr.bf16.mxu1 %v3809_v35 }
 0xd25   :  { %3494 = vmatpush3.bf16.msra.mxu1 %v3696_v28  ;;  %v3181_v28 = vld [vmem:[%s4635_s4 + $0x1] ss:$0 sm:$0xff]  ;;  %s4682_s4 = smov 104  }
 0xd26   :  { %3495 = vmatprep.subr.bf16.mxu1 %v3809_v35 }
 0xd29   :  { %3496 = vmatpush3.bf16.msra.mxu1 %v3697_v29 }
 0xd2a   :  { %3497 = vmatprep.subr.bf16.mxu1 %v3809_v35 }
 0xd2d   :  { %3498 = vmatpush3.bf16.msra.mxu1 %v3698_v30 }
 0xd2e   :  { %3499 = vmatprep.subr.bf16.mxu1 %v3809_v35 }
 0xd31   :  { %3500 = vmatpush3.bf16.msra.mxu1 %v3699_v31 }
 0xd32   :  { %3531 = vmatprep.subr.bf16.mxu1 %v3809_v35 }
 0xdd4   :  { %v1352_v44 = vpop.f32.mrf.mxu1 }
 0xdd5   :  { %v1353_v45 = vadd.f32 %v3159_v56, %v1352_v44 }
 0xdd6   :  { %v3475_v41 = vpop.f32.mrf.mxu1 }
 0xdd7   :  { %v4213_v46 = vadd.f32 %v1353_v45, %v3976_v17 }
 0xdd8   :  { %v1355_v47 = vpop.f32.mrf.mxu1 }
 0xdd9   :  { %v1356_v48 = vadd.f32 %v3159_v56, %v1355_v47  ;;  %v1363_v49 = vsel %vm221_vm1, %v4213_v46, 0.0 }
 0xdda   :  { %1364 = vadd.xlane.f32.xlu0 %v1363_v49  ;;  %v3476_v50 = vpop.f32.mrf.mxu1 }
 0xddb   :  { %v4218_v51 = vadd.f32 %v1356_v48, %v3983_v22 }
 0xddd   :  { %v1366_v9 = vsel %vm225_vm2, %v4218_v51, 0.0 }
 0xdde   :  { %1367 = vadd.xlane.f32.xlu1 %v1366_v9 }
 0xe63   :  { %v1365_v52 = vpop.xlane.xlu0 %1364 }
 0xe64   :  { %v1369_v53 = vmul.f32 0.03125, %v1365_v52 }
 0xe66   :  { %v1371_v54 = vsub.f32 %v4213_v46, %v1369_v53 }
 0xe67   :  { %v1368_v17 = vpop.xlane.xlu1 %1367 }
 0xe68   :  { %v1370_v55 = vmul.f32 0.03125, %v1368_v17  ;;  %v1373_v57 = vmul.f32 %v1371_v54, %v1371_v54  ;;  %v3169_v17 = vld [vmem:[%s4644_s14] ss:$0 sm:$0xff] }
 0xe6a   :  { %v1372_v58 = vsub.f32 %v4218_v51, %v1370_v55  ;;  %v1375_v59 = vsel %vm221_vm1, %v1373_v57, 0.0 }
 0xe6b   :  { %1376 = vadd.xlane.f32.xlu0 %v1375_v59 }
 0xe6c   :  { %v1374_v60 = vmul.f32 %v1372_v58, %v1372_v58 }
 0xe6e   :  { %v1378_v22 = vsel %vm225_vm2, %v1374_v60, 0.0 }
 0xe6f   :  { %1379 = vadd.xlane.f32.xlu0 %v1378_v22 }
 0xef4   :  { %v1377_v63 = vpop.xlane.xlu0 %1376 }
 0xef5   :  { %v1381_v0 = vmul.f32 0.03125, %v1377_v63 }
 0xef7   :  { %v1383_v1 = vadd.f32 1e-06, %v1381_v0 }
 0xef8   :  { %v1380_v2 = vpop.xlane.xlu0 %1379 }
 0xef9   :  { %3752 = vrsqrt.f32 %v1383_v1  ;;  %v1382_v4 = vmul.f32 0.03125, %v1380_v2 }
 0xefb   :  { %v1384_v6 = vadd.f32 1e-06, %v1382_v4 }
 0xefd   :  { %3754 = vrsqrt.f32 %v1384_v6 }
 0xf06   :  { %v3753_v8 = vpop.eup %3752 }
 0xf07   :  { %v1387_v10 = vmul.f32 %v3753_v8, %v1371_v54 }
 0xf09   :  { %v1395_v14 = vmul.f32 %v3163_v11, %v1387_v10 }
 0xf0a   :  { %v3755_v12 = vpop.eup %3754 }
 0xf0b   :  { %v1388_v13 = vmul.f32 %v3755_v12, %v1372_v58  ;;  %v1403_v20 = vadd.f32 %v3164_v15, %v1395_v14  ;;  %v3701_v14 = vld [vmem:[%s4680_s27 + $0x10] sm:$0xff]  }
 0xf0d   :  { %v1396_v18 = vmul.f32 %v3163_v11, %v1388_v13  ;;  %v3700_v13 = vld [vmem:[%s4680_s27 + $0x18] sm:$0xff]  }
 0xf0f   :  { %v1404_v21 = vadd.f32 %v3164_v15, %v1396_v18 }
 0xf11   :  { %v1405_v23 = vpack.c.bf16 %v1404_v21, %v1403_v20 }
 0xf13   :  { %3482 = vmatmul.mubr.msk.bf16.vlgmr.msra.gmra.mxu0 %vm221_vm1, %v1405_v23 }
 0xf14   :  { %3509 = vmatprep.mubr.msk.bf16.mxu0 %vm3810_vm3, %v3809_v35  ;;  %3506 = vmatpush3.bf16.msra.mxu0 %v3700_v13 }
 0xf15   :  { %3507 = vmatprep.subr.bf16.mxu0 %v3809_v35 }
 0xf18   :  { %3508 = vmatpush3.bf16.msra.mxu0 %v3701_v14 }
 0xf19   :  { %3513 = vmatprep.subr.bf16.mxu0 %v3809_v35 }
 0xfd3   :  { %v1466_v33 = vpop.f32.mrf.mxu0 }
 0xfd4   :  { %v1467_v34 = vadd.f32 %v3165_v32, %v1466_v33 }
 0xfd5   :  { %v3483_v36 = vpop.f32.mrf.mxu0 }
 0xfd6   :  { %v1473_v37 = vmul.f32 %v1467_v34, %v1467_v34 }
 0xfd7   :  { %v1469_v38 = vpop.f32.mrf.mxu0 }
 0xfd8   :  { %v1475_v39 = vmul.f32 %v1473_v37, %v1467_v34  ;;  %v1470_v40 = vadd.f32 %v3165_v32, %v1469_v38  ;;  %v3187_v37 = vld [vmem:[%s4636_s6 + $0x1] ss:$0 sm:$0xff]  ;;  %s4683_s6 = smov 64  }
 0xfd9   :  { %v3484_v16 = vpop.f32.mrf.mxu0 }
 0xfda   :  { %v1477_v5 = vmul.f32 0.044715, %v1475_v39  ;;  %v1474_v3 = vmul.f32 %v1470_v40, %v1470_v40 }
 0xfdc   :  { %v1479_v42 = vadd.f32 %v1477_v5, %v1467_v34  ;;  %v1476_v7 = vmul.f32 %v1474_v3, %v1470_v40 }
 0xfde   :  { %v1481_v43 = vmul.f32 0.7978846, %v1479_v42  ;;  %v1478_v56 = vmul.f32 0.044715, %v1476_v7 }
 0xfe0   :  { %3756 = vtanh.f32 %v1481_v43  ;;  %v1480_v44 = vadd.f32 %v1478_v56, %v1470_v40 }
 0xfe2   :  { %v1482_v45 = vmul.f32 0.7978846, %v1480_v44 }
 0xfe4   :  { %3758 = vtanh.f32 %v1482_v45 }
 0xfed   :  { %v3757_v41 = vpop.eup %3756 }
 0xfee   :  { %v1485_v47 = vadd.f32 1.0, %v3757_v41 }
 0xff0   :  { %v1487_v49 = vmul.f32 0.5, %v1485_v47 }
 0xff1   :  { %v3759_v48 = vpop.eup %3758 }
 0xff2   :  { %v1486_v50 = vadd.f32 1.0, %v3759_v48  ;;  %v1489_v52 = vmul.f32 %v1487_v49, %v1467_v34 }
 0xff4   :  { %v1488_v9 = vmul.f32 0.5, %v1486_v50 }
 0xff6   :  { %v1490_v53 = vmul.f32 %v1488_v9, %v1470_v40 }
 0xff8   :  { %v1491_v54 = vpack.c.bf16 %v1490_v53, %v1489_v52 }
 0xffa   :  { %3502 = vmatmul.mubr.bf16.vlgmr.msra.gmra.mxu1 %v1491_v54 }
 0xffb   :  { %3533 = vmatprep.mubr.msk.bf16.mxu1 %vm3810_vm3, %v3809_v35 }
0x10ba   :  { %v1597_v55 = vpop.f32.mrf.mxu1 }
0x10bb   :  { %v1598_v57 = vadd.f32 %v3169_v17, %v1597_v55 }
0x10bc   :  { %v3503_v58 = vpop.f32.mrf.mxu1 }
0x10bd   :  { %v4284_v59 = vadd.f32 %v1598_v57, %v4213_v46 }
0x10be   :  { %v1600_v60 = vpop.f32.mrf.mxu1 }
0x10bf   :  { %v1601_v22 = vadd.f32 %v3169_v17, %v1600_v60  ;;  %v1610_v61 = vsel %vm221_vm1, %v4284_v59, 0.0 }
0x10c0   :  { %1611 = vadd.xlane.f32.xlu0 %v1610_v61  ;;  %v3504_v62 = vpop.f32.mrf.mxu1 }
0x10c1   :  { %v4289_v63 = vadd.f32 %v1601_v22, %v4218_v51 }
0x10c3   :  { %v1613_v0 = vsel %vm225_vm2, %v4289_v63, 0.0 }
0x10c4   :  { %1614 = vadd.xlane.f32.xlu1 %v1613_v0 }
0x1149   :  { %v1612_v1 = vpop.xlane.xlu0 %1611 }
0x114a   :  { %v1616_v2 = vmul.f32 0.03125, %v1612_v1 }
0x114c   :  { %v1618_v4 = vsub.f32 %v4284_v59, %v1616_v2 }
0x114d   :  { %v1615_v46 = vpop.xlane.xlu1 %1614 }
0x114e   :  { %v1617_v6 = vmul.f32 0.03125, %v1615_v46  ;;  %v1620_v8 = vmul.f32 %v1618_v4, %v1618_v4 }
0x1150   :  { %v1619_v10 = vsub.f32 %v4289_v63, %v1617_v6  ;;  %v1622_v11 = vsel %vm221_vm1, %v1620_v8, 0.0 }
0x1151   :  { %1623 = vadd.xlane.f32.xlu0 %v1622_v11 }
0x1152   :  { %v1621_v12 = vmul.f32 %v1619_v10, %v1619_v10 }
0x1154   :  { %v1625_v51 = vsel %vm225_vm2, %v1621_v12, 0.0 }
0x1155   :  { %1626 = vadd.xlane.f32.xlu1 %v1625_v51 }
0x11da   :  { %v1624_v15 = vpop.xlane.xlu0 %1623 }
0x11db   :  { %v1628_v18 = vmul.f32 0.03125, %v1624_v15 }
0x11dd   :  { %v1630_v20 = vadd.f32 1e-06, %v1628_v18 }
0x11de   :  { %v1627_v21 = vpop.xlane.xlu1 %1626 }
0x11df   :  { %3760 = vrsqrt.f32 %v1630_v20  ;;  %v1629_v23 = vmul.f32 0.03125, %v1627_v21 }
0x11e1   :  { %v1631_v24 = vadd.f32 1e-06, %v1629_v23 }
0x11e3   :  { %3762 = vrsqrt.f32 %v1631_v24 }
0x11ec   :  { %v3761_v25 = vpop.eup %3760 }
0x11ed   :  { %v1634_v27 = vmul.f32 %v3761_v25, %v1618_v4 }
0x11ef   :  { %v1642_v29 = vmul.f32 %v3180_v26, %v1634_v27 }
0x11f0   :  { %v3763_v30 = vpop.eup %3762 }
0x11f1   :  { %v1635_v31 = vmul.f32 %v3763_v30, %v1619_v10  ;;  %v1650_v32 = vadd.f32 %v3181_v28, %v1642_v29 }
0x11f3   :  { %v1643_v33 = vmul.f32 %v3180_v26, %v1635_v31 }
0x11f5   :  { %v1651_v34 = vadd.f32 %v3181_v28, %v1643_v33 }
0x11f7   :  { %v1652_v36 = vpack.c.bf16 %v1651_v34, %v1650_v32 }
0x11f9   :  { %3510 = vmatmul.mubr.msk.bf16.vlgmr.msra.gmra.mxu0 %vm221_vm1, %v1652_v36 }
0x11fa   :  { %3515 = vmatprep.mubr.msk.bf16.mxu0 %vm3810_vm3, %v3809_v35 }
0x12b9   :  { %v1715_v38 = vpop.f32.mrf.mxu0 }
0x12ba   :  { %v1716_v39 = vadd.f32 %v3187_v37, %v1715_v38 }
0x12bb   :  { %v3511_v40 = vpop.f32.mrf.mxu0 }
0x12bc   :  { %1722 = vst.msk [vmem:[#allocation2] sm:$0xff] %vm334_vm4, %v1716_v39 }
0x12bd   :  { %v1718_v16 = vpop.f32.mrf.mxu0 }
0x12be   :  { %v1719_v5 = vadd.f32 %v3187_v37, %v1718_v16 }
0x12bf   :  { %v3512_v3 = vpop.f32.mrf.mxu0 }
0x12c0   :  { %1723 = vst.msk [vmem:[#allocation2 + $0x8] sm:$0x3] %vm336_vm5, %v1719_v5 }
0x12c3   :  { %v1724_v42 = vld [vmem:[#allocation2] sm:$0x1f] }
0x12c4   :  { %v1725_v7 = vpack.c.bf16 %v1724_v42, %v1724_v42  ;;  %v1837_v43 = vld [vmem:[#allocation2] sm:$0x1f] }
0x12c5   :  { %v4320_v56 = vpack.c.bf16 %v1837_v43, %v1837_v43  ;;  %v1957_v44 = vld [vmem:[#allocation2] sm:$0x1f] }
0x12c6   :  { %1727 = vrot.lane.b32.xlu0 %v1725_v7, %s3811_s25  ;;  %v4324_v45 = vpack.c.bf16 %v1957_v44, %v1957_v44  ;;  %v2077_v41 = vld [vmem:[#allocation2] sm:$0x1f] }
0x12c7   :  { %v4328_v47 = vpack.c.bf16 %v2077_v41, %v2077_v41  ;;  %v2199_v48 = vld [vmem:[#allocation2 + $0x5] sm:$0x1f] }
0x12c8   :  { %v4332_v49 = vpack.c.bf16 %v2199_v48, %v2199_v48  ;;  %v2312_v50 = vld [vmem:[#allocation2 + $0x5] sm:$0x1f] }
0x12c9   :  { %v4336_v9 = vpack.c.bf16 %v2312_v50, %v2312_v50  ;;  %v2432_v52 = vld [vmem:[#allocation2 + $0x5] sm:$0x1f] }
0x12ca   :  { %1842 = vrot.lane.b32.xlu0 %v4320_v56, %s3812_s5  ;;  %v4340_v53 = vpack.c.bf16 %v2432_v52, %v2432_v52  ;;  %v2552_v54 = vld [vmem:[#allocation2 + $0x5] sm:$0x1f] }
0x12cb   :  { %v4344_v17 = vpack.c.bf16 %v2552_v54, %v2552_v54 }
0x12ce   :  { %1962 = vrot.lane.b32.xlu0 %v4324_v45, %s3818_s3 }
0x12d2   :  { %2082 = vrot.lane.b32.xlu0 %v4328_v47, %s3819_s30 }
0x12d6   :  { %2202 = vrot.lane.b32.xlu0 %v4332_v49, %s3811_s25  ;;  %s4685_s25 = smov 40  }
0x12da   :  { %2315 = vrot.lane.b32.xlu0 %v4336_v9, %s3814_s23 }
0x12de   :  { %2435 = vrot.lane.b32.xlu0 %v4340_v53, %s3817_s28 }
0x12e2   :  { %2555 = vrot.lane.b32.xlu0 %v4344_v17, %s4682_s4 }
0x1338   :  { %v1728_v55 = vpop.permute.xlu0 %1727 }
0x1339   :  { %v1733_v57 = vsel %vm343_vm6, %v1728_v55, 0 }
0x133a   :  { %3514 = vmatpush3.bf16.xpose.msra.mxu0 %v1733_v57 }
0x133b   :  { %3519 = vmatprep.subr.bf16.mxu0 %v3809_v35 }
0x133c   :  { %v1843_v13 = vpop.permute.xlu0 %1842 }
0x133d   :  { %v1848_v15 = vsel %vm343_vm6, %v1843_v13, 0 }
0x1340   :  { %v1963_v18 = vpop.permute.xlu0 %1962 }
0x1341   :  { %3516 = vmatmul.mubr.msk.bf16.vlgmr.msra.gmra.mxu0 %vm343_vm6, %v1725_v7  ;;  %v1968_v21 = vsel %vm343_vm6, %v1963_v18, 0 }
0x1342   :  { %3521 = vmatprep.mubr.msk.bf16.mxu0 %vm3810_vm3, %v3809_v35 }
0x1344   :  { %v2083_v23 = vpop.permute.xlu0 %2082 }
0x1345   :  { %v2088_v25 = vsel %vm343_vm6, %v2083_v23, 0 }
0x1348   :  { %v2203_v26 = vpop.permute.xlu0 %2202 }
0x1349   :  { %v2208_v28 = vsel %vm343_vm6, %v2203_v26, 0 }
0x134c   :  { %v2316_v32 = vpop.permute.xlu0 %2315 }
0x1350   :  { %v2436_v36 = vpop.permute.xlu0 %2435 }
0x1354   :  { %v2556_v38 = vpop.permute.xlu0 %2555 }
0x1401   :  { %v1769_v58 = vpop.f32.mrf.mxu0 }
0x1402   :  { %v1775_v60 = vmul.f32 0.35355338, %v1769_v58 }
0x1403   :  { %v3517_v22 = vpop.f32.mrf.mxu0 }
0x1404   :  { %v1776_v61 = vsel %vm391_vm7, %v1775_v60, -inf }
0x1405   :  { %1777 = vmax.xlane.f32.xlu1 %v1776_v61  ;;  %v1772_v62 = vpop.f32.mrf.mxu0 }
0x1407   :  { %v3518_v0 = vpop.f32.mrf.mxu0 }
0x148e   :  { %v1778_v1 = vpop.xlane.xlu1 %1777 }
0x148f   :  { %v1779_v2 = vsub.f32 %v1775_v60, %v1778_v1 }
0x1491   :  { %v1780_v4 = vmul.f32 1.442695, %v1779_v2 }
0x1493   :  { %3764 = vpow2.f32 %v1780_v4 }
0x14a0   :  { %v3765_v46 = vpop.eup %3764 }
0x14a1   :  { %v1782_v6 = vsel %vm391_vm7, %v3765_v46, 0.0 }
0x14a2   :  { %1783 = vadd.xlane.f32.xlu1 %v1782_v6 }
0x14b3   :  { %1788 = vrot.lane.b32.xlu1 %v1725_v7, %s4683_s6 }
0x14b7   :  { %1840 = vrot.lane.b32.xlu1 %v4320_v56, %s3814_s23 }
0x14bb   :  { %1960 = vrot.lane.b32.xlu1 %v4324_v45, %s3817_s28 }
0x14bf   :  { %2080 = vrot.lane.b32.xlu1 %v4328_v47, %s4682_s4 }
0x14c3   :  { %2317 = vrot.lane.b32.xlu1 %v4336_v9, %s3812_s5  ;;  %s4686_s5 = smov 48  }
0x14c7   :  { %2437 = vrot.lane.b32.xlu1 %v4340_v53, %s3818_s3 }
0x14cb   :  { %2557 = vrot.lane.b32.xlu1 %v4344_v17, %s3819_s30 }
0x152b   :  { %v1784_v8 = vpop.xlane.xlu1 %1783 }
0x152c   :  { %3766 = vrcp.f32 %v1784_v8 }
0x152f   :  { %v1789_v10 = vpop.permute.xlu1 %1788 }
0x1530   :  { %v1794_v11 = vand.u32 %v1789_v10, %v4034_v19 }
0x1532   :  { %3520 = vmatpush3.bf16.msra.mxu0 %v1794_v11 }
0x1533   :  { %3525 = vmatprep.subr.bf16.mxu0 %v3809_v35  ;;  %v1841_v20 = vpop.permute.xlu1 %1840 }
0x1537   :  { %v1961_v24 = vpop.permute.xlu1 %1960 }
0x1539   :  { %v3767_v12 = vpop.eup %3766 }
0x153a   :  { %v4370_v51 = vmul.f32 %v3767_v12, %v3765_v46 }
0x153b   :  { %v2081_v27 = vpop.permute.xlu1 %2080 }
0x153c   :  { %v1787_v14 = vpack.c.bf16 %v4370_v51, %v4370_v51 }
0x153e   :  { %3522 = vmatmul.mubr.msk.bf16.vlgmr.msra.gmra.mxu0 %vm406_vm10, %v1787_v14 }
0x153f   :  { %3526 = vmatpush3.bf16.xpose.msra.mxu0 %v1848_v15  ;;  %3527 = vmatprep.mubr.msk.bf16.mxu0 %vm3810_vm3, %v3809_v35  ;;  %v2318_v29 = vpop.permute.xlu1 %2317 }
0x1540   :  { %3537 = vmatprep.subr.bf16.mxu0 %v3809_v35  ;;  %v2323_v30 = vsel %vm343_vm6, %v2318_v29, 0 }
0x1543   :  { %v2438_v31 = vpop.permute.xlu1 %2437 }
0x1544   :  { %v2443_v33 = vsel %vm343_vm6, %v2438_v31, 0 }
0x1546   :  { %3528 = vmatmul.mubr.msk.bf16.vlgmr.msra.gmra.mxu0 %vm343_vm6, %v1841_v20 }
0x1547   :  { %3538 = vmatpush3.bf16.xpose.msra.mxu0 %v1968_v21  ;;  %3539 = vmatprep.mubr.msk.bf16.mxu0 %vm3810_vm3, %v3809_v35  ;;  %v2558_v34 = vpop.permute.xlu1 %2557 }
0x1548   :  { %3549 = vmatprep.subr.bf16.mxu0 %v3809_v35  ;;  %v2563_v37 = vsel %vm343_vm6, %v2558_v34, 0 }
0x154e   :  { %3540 = vmatmul.mubr.msk.bf16.vlgmr.msra.gmra.mxu0 %vm343_vm6, %v1961_v24 }
0x154f   :  { %3550 = vmatpush3.bf16.xpose.msra.mxu0 %v2088_v25  ;;  %3551 = vmatprep.mubr.msk.bf16.mxu0 %vm3810_vm3, %v3809_v35 }
0x1550   :  { %3561 = vmatprep.subr.bf16.mxu0 %v3809_v35 }
0x1556   :  { %3552 = vmatmul.mubr.msk.bf16.vlgmr.msra.gmra.mxu0 %vm343_vm6, %v2081_v27 }
0x1557   :  { %3562 = vmatpush3.bf16.xpose.msra.mxu0 %v2208_v28  ;;  %3563 = vmatprep.mubr.msk.bf16.mxu0 %vm3810_vm3, %v3809_v35 }
0x1558   :  { %3573 = vmatprep.subr.bf16.mxu0 %v3809_v35 }
0x155e   :  { %3564 = vmatmul.mubr.msk.bf16.vlgmr.msra.gmra.mxu0 %vm343_vm6, %v4332_v49 }
0x155f   :  { %3574 = vmatpush3.bf16.xpose.msra.mxu0 %v2323_v30  ;;  %3575 = vmatprep.mubr.msk.bf16.mxu0 %vm3810_vm3, %v3809_v35 }
0x1560   :  { %3585 = vmatprep.subr.bf16.mxu0 %v3809_v35 }
0x1566   :  { %3576 = vmatmul.mubr.msk.bf16.vlgmr.msra.gmra.mxu0 %vm343_vm6, %v2316_v32 }
0x1567   :  { %3586 = vmatpush3.bf16.xpose.msra.mxu0 %v2443_v33  ;;  %3587 = vmatprep.mubr.msk.bf16.mxu0 %vm3810_vm3, %v3809_v35 }
0x1568   :  { %3597 = vmatprep.subr.bf16.mxu0 %v3809_v35 }
0x156e   :  { %3588 = vmatmul.mubr.msk.bf16.vlgmr.msra.gmra.mxu0 %vm343_vm6, %v2436_v36 }
0x156f   :  { %3598 = vmatpush3.bf16.xpose.msra.mxu0 %v2563_v37  ;;  %3599 = vmatprep.mubr.msk.bf16.mxu0 %vm3810_vm3, %v3809_v35 }
0x1570   :  { %3609 = vmatprep.subr.bf16.mxu0 %v3809_v35 }
0x1576   :  { %3600 = vmatmul.mubr.msk.bf16.vlgmr.msra.gmra.mxu0 %vm343_vm6, %v2556_v38 }
0x1577   :  { %3613 = vmatprep.mubr.msk.bf16.mxu0 %vm3810_vm3, %v3809_v35 }
0x15fe   :  { %v1830_v39 = vpop.f32.mrf.mxu0 }
0x15ff   :  { %1836 = vst.msk [vmem:[#allocation3] sm:$0x1f] %vm457_vm11, %v1830_v39 }
0x1600   :  { %v3523_v40 = vpop.f32.mrf.mxu0 }
0x1602   :  { %v1833_v16 = vpop.f32.mrf.mxu0 }
0x1604   :  { %v3524_v5 = vpop.f32.mrf.mxu0 }
0x1606   :  { %v1884_v3 = vpop.f32.mrf.mxu0 }
0x1607   :  { %v1890_v42 = vmul.f32 0.35355338, %v1884_v3 }
0x1608   :  { %v3529_v7 = vpop.f32.mrf.mxu0 }
0x1609   :  { %v1891_v43 = vsel %vm391_vm7, %v1890_v42, -inf }
0x160a   :  { %1892 = vmax.xlane.f32.xlu1 %v1891_v43  ;;  %v1887_v44 = vpop.f32.mrf.mxu0 }
0x160c   :  { %v3530_v41 = vpop.f32.mrf.mxu0 }
0x160e   :  { %v2004_v48 = vpop.f32.mrf.mxu0 }
0x160f   :  { %v2010_v50 = vmul.f32 0.35355338, %v2004_v48 }
0x1610   :  { %v3541_v52 = vpop.f32.mrf.mxu0 }
0x1611   :  { %v2011_v54 = vsel %vm391_vm7, %v2010_v50, -inf }
0x1612   :  { %2012 = vmax.xlane.f32.xlu0 %v2011_v54  ;;  %v2007_v55 = vpop.f32.mrf.mxu0 }
0x1614   :  { %v3542_v57 = vpop.f32.mrf.mxu0 }
0x1616   :  { %v2124_v58 = vpop.f32.mrf.mxu0 }
0x1617   :  { %v2130_v60 = vmul.f32 0.35355338, %v2124_v58 }
0x1618   :  { %v3553_v22 = vpop.f32.mrf.mxu0 }
0x1619   :  { %v2131_v61 = vsel %vm391_vm7, %v2130_v60, -inf }
0x161a   :  { %2132 = vmax.xlane.f32.xlu0 %v2131_v61  ;;  %v2127_v62 = vpop.f32.mrf.mxu0 }
0x161c   :  { %v3554_v0 = vpop.f32.mrf.mxu0 }
0x161e   :  { %v2244_v1 = vpop.f32.mrf.mxu0 }
0x161f   :  { %v2250_v2 = vmul.f32 0.35355338, %v2244_v1 }
0x1620   :  { %v3565_v4 = vpop.f32.mrf.mxu0 }
0x1621   :  { %v2251_v46 = vsel %vm391_vm7, %v2250_v2, -inf }
0x1622   :  { %2252 = vmax.xlane.f32.xlu0 %v2251_v46  ;;  %v2247_v6 = vpop.f32.mrf.mxu0 }
0x1624   :  { %v3566_v8 = vpop.f32.mrf.mxu0 }
0x1626   :  { %v2359_v10 = vpop.f32.mrf.mxu0 }
0x1627   :  { %v2365_v11 = vmul.f32 0.35355338, %v2359_v10 }
0x1628   :  { %v3577_v12 = vpop.f32.mrf.mxu0 }
0x1629   :  { %v2366_v13 = vsel %vm391_vm7, %v2365_v11, -inf }
0x162a   :  { %2367 = vmax.xlane.f32.xlu1 %v2366_v13  ;;  %v2362_v14 = vpop.f32.mrf.mxu0 }
0x162c   :  { %v3578_v15 = vpop.f32.mrf.mxu0 }
0x162e   :  { %v2479_v18 = vpop.f32.mrf.mxu0 }
0x162f   :  { %v2485_v20 = vmul.f32 0.35355338, %v2479_v18 }
0x1630   :  { %v3589_v21 = vpop.f32.mrf.mxu0 }
0x1631   :  { %v2486_v23 = vsel %vm391_vm7, %v2485_v20, -inf }
0x1632   :  { %2487 = vmax.xlane.f32.xlu0 %v2486_v23  ;;  %v2482_v24 = vpop.f32.mrf.mxu0 }
0x1634   :  { %v3590_v25 = vpop.f32.mrf.mxu0 }
0x1636   :  { %v2599_v26 = vpop.f32.mrf.mxu0 }
0x1637   :  { %v2605_v27 = vmul.f32 0.35355338, %v2599_v26 }
0x1638   :  { %v3601_v28 = vpop.f32.mrf.mxu0 }
0x1639   :  { %v2606_v29 = vsel %vm391_vm7, %v2605_v27, -inf }
0x163a   :  { %2607 = vmax.xlane.f32.xlu1 %v2606_v29  ;;  %v2602_v30 = vpop.f32.mrf.mxu0 }
0x163c   :  { %v3602_v31 = vpop.f32.mrf.mxu0 }
0x1648   :  { %1903 = vrot.lane.b32.xlu0 %v4320_v56, %s4684_s21 }
0x1693   :  { %v1893_v32 = vpop.xlane.xlu1 %1892 }
0x1694   :  { %v1894_v33 = vsub.f32 %v1890_v42, %v1893_v32 }
0x1696   :  { %v1895_v34 = vmul.f32 1.442695, %v1894_v33 }
0x1698   :  { %3768 = vpow2.f32 %v1895_v34 }
0x169b   :  { %v2013_v36 = vpop.xlane.xlu0 %2012 }
0x169c   :  { %v2014_v37 = vsub.f32 %v2010_v50, %v2013_v36 }
0x169e   :  { %v2015_v38 = vmul.f32 1.442695, %v2014_v37 }
0x16a0   :  { %3770 = vpow2.f32 %v2015_v38 }
0x16a3   :  { %v2133_v3 = vpop.xlane.xlu0 %2132 }
0x16a4   :  { %v2134_v41 = vsub.f32 %v2130_v60, %v2133_v3 }
0x16a5   :  { %v3769_v39 = vpop.eup %3768 }
0x16a6   :  { %v1897_v40 = vsel %vm391_vm7, %v3769_v39, 0.0  ;;  %v2135_v50 = vmul.f32 1.442695, %v2134_v41 }
0x16a7   :  { %1898 = vadd.xlane.f32.xlu0 %v1897_v40 }
0x16a8   :  { %3772 = vpow2.f32 %v2135_v50 }
0x16ab   :  { %v2253_v56 = vpop.xlane.xlu0 %2252 }
0x16ac   :  { %v2254_v54 = vsub.f32 %v2250_v2, %v2253_v56 }
0x16ad   :  { %v4424_v16 = vpop.eup %3770 }
0x16ae   :  { %v2017_v5 = vsel %vm391_vm7, %v4424_v16, 0.0  ;;  %v2255_v57 = vmul.f32 1.442695, %v2254_v54 }
0x16af   :  { %2018 = vadd.xlane.f32.xlu1 %v2017_v5 }
0x16b3   :  { %v2368_v43 = vpop.xlane.xlu1 %2367 }
0x16b4   :  { %v2369_v58 = vsub.f32 %v2365_v11, %v2368_v43 }
0x16b5   :  { %v3773_v62 = vpop.eup %3772 }
0x16bb   :  { %v2488_v7 = vpop.xlane.xlu0 %2487 }
0x16bc   :  { %v2489_v22 = vsub.f32 %v2485_v20, %v2488_v7 }
0x16bd   :  { %2143 = vrot.lane.b32.xlu0 %v4328_v47, %s4685_s25  ;;  %v2370_v47 = vmul.f32 1.442695, %v2369_v58 }
0x16be   :  { %v2490_v61 = vmul.f32 1.442695, %v2489_v22 }
0x16bf   :  { %v1904_v42 = vpop.permute.xlu0 %1903 }
0x16c0   :  { %v1909_v44 = vand.u32 %v1904_v42, %v4034_v19  ;;  %2023 = vrot.lane.b32.xlu1 %v4324_v45, %s4686_s5  ;;  %v2137_v45 = vsel %vm391_vm7, %v3773_v62, 0.0 }
0x16c2   :  { %3532 = vmatpush3.bf16.msra.mxu1 %v1909_v44 }
0x16c3   :  { %3543 = vmatprep.subr.bf16.mxu1 %v3809_v35  ;;  %v2608_v48 = vpop.xlane.xlu1 %2607 }
0x16c4   :  { %v2609_v52 = vsub.f32 %v2605_v27, %v2608_v48 }
0x16c6   :  { %v2610_v55 = vmul.f32 1.442695, %v2609_v52 }
0x16c8   :  { %3774 = vpow2.f32 %v2610_v55 }
0x16c9   :  { %3776 = vpow2.f32 %v2255_v57 }
0x16ca   :  { %3778 = vpow2.f32 %v2370_v47 }
0x16cb   :  { %3780 = vpow2.f32 %v2490_v61 }
0x16d5   :  { %v4435_v60 = vpop.eup %3774 }
0x16d6   :  { %v2612_v0 = vsel %vm391_vm7, %v4435_v60, 0.0  ;;  %v4439_v1 = vpop.eup %3776 }
0x16d7   :  { %v2257_v2 = vsel %vm391_vm7, %v4439_v1, 0.0  ;;  %v4443_v4 = vpop.eup %3778 }
0x16d8   :  { %v2372_v46 = vsel %vm391_vm7, %v4443_v4, 0.0  ;;  %v4447_v6 = vpop.eup %3780 }
0x16d9   :  { %v2492_v8 = vsel %vm391_vm7, %v4447_v6, 0.0 }
0x16dc   :  { %2138 = vadd.xlane.f32.xlu0 %v2137_v45 }
0x16e0   :  { %2613 = vadd.xlane.f32.xlu0 %v2612_v0 }
0x16e4   :  { %2258 = vadd.xlane.f32.xlu1 %v2257_v2 }
0x16e8   :  { %2373 = vadd.xlane.f32.xlu1 %v2372_v46 }
0x16ec   :  { %2493 = vadd.xlane.f32.xlu1 %v2492_v8 }
0x16f6   :  { %2263 = vrot.lane.b32.xlu0 %v4332_v49, %s4683_s6 }
0x16fd   :  { %2378 = vrot.lane.b32.xlu1 %v4336_v9, %s4684_s21 }
0x1701   :  { %2498 = vrot.lane.b32.xlu1 %v4340_v53, %s4686_s5 }
0x1705   :  { %2618 = vrot.lane.b32.xlu1 %v4344_v17, %s4685_s25 }
0x1730   :  { %v1899_v10 = vpop.xlane.xlu0 %1898 }
0x1731   :  { %3782 = vrcp.f32 %v1899_v10 }
0x1734   :  { %v2144_v9 = vpop.permute.xlu0 %2143 }
0x1735   :  { %v2149_v20 = vand.u32 %v2144_v9, %v4034_v19  ;;  %v3703_v9 = vld [vmem:[%s4637_s7 + $0x10] sm:$0xff]  }
0x1738   :  { %v2019_v11 = vpop.xlane.xlu1 %2018 }
0x1739   :  { %3784 = vrcp.f32 %v2019_v11 }
0x173c   :  { %v2024_v13 = vpop.permute.xlu1 %2023 }
0x173d   :  { %v2029_v18 = vand.u32 %v2024_v13, %v4034_v19 }
0x173e   :  { %v3783_v12 = vpop.eup %3782 }
0x173f   :  { %v1901_v14 = vmul.f32 %v3783_v12, %v3769_v39 }
0x1741   :  { %v1902_v15 = vpack.c.bf16 %v1901_v14, %v1901_v14  ;;  %v1956_v26 = vadd.f32 %v1901_v14, %v4370_v51 }
0x1743   :  { %3534 = vmatmul.mubr.msk.bf16.vlgmr.msra.gmra.mxu1 %vm406_vm10, %v1902_v15 }
0x1744   :  { %3544 = vmatpush3.bf16.msra.mxu1 %v2029_v18  ;;  %3545 = vmatprep.mubr.msk.bf16.mxu1 %vm3810_vm3, %v3809_v35  ;;  %v3702_v18 = vld [vmem:[%s4637_s7 + $0x18] sm:$0xff]  }
0x1745   :  { %3555 = vmatprep.subr.bf16.mxu1 %v3809_v35  ;;  %3610 = vmatpush3.bf16.msra.mxu0 %v3702_v18  ;;  %v3709_v18 = vld [vmem:[%s4642_s13 + $0x60] sm:$0xff]  }
0x1746   :  { %v3785_v49 = vpop.eup %3784  ;;  %3611 = vmatprep.subr.bf16.mxu0 %v3809_v35 }
0x1747   :  { %v2021_v53 = vmul.f32 %v3785_v49, %v4424_v16 }
0x1749   :  { %v2022_v17 = vpack.c.bf16 %v2021_v53, %v2021_v53  ;;  %v2076_v28 = vadd.f32 %v2021_v53, %v1956_v26  ;;  %3612 = vmatpush3.bf16.msra.mxu0 %v3703_v9  ;;  %v3711_v9 = vld [vmem:[%s4642_s13 + $0x50] sm:$0xff]  }
0x174a   :  { %3625 = vmatprep.subr.bf16.mxu0 %v3809_v35 }
0x174b   :  { %3546 = vmatmul.mubr.msk.bf16.vlgmr.msra.gmra.mxu1 %vm406_vm10, %v2022_v17 }
0x174c   :  { %3556 = vmatpush3.bf16.msra.mxu1 %v2149_v20  ;;  %3557 = vmatprep.mubr.msk.bf16.mxu1 %vm3810_vm3, %v3809_v35 }
0x174d   :  { %3567 = vmatprep.subr.bf16.mxu1 %v3809_v35 }
0x1765   :  { %v2139_v21 = vpop.xlane.xlu0 %2138 }
0x1766   :  { %3786 = vrcp.f32 %v2139_v21 }
0x1769   :  { %v2614_v24 = vpop.xlane.xlu0 %2613 }
0x176d   :  { %v2259_v23 = vpop.xlane.xlu1 %2258  ;;  %v2264_v29 = vpop.permute.xlu0 %2263 }
0x176e   :  { %3788 = vrcp.f32 %v2259_v23  ;;  %v2269_v34 = vand.u32 %v2264_v29, %v4034_v19 }
0x1771   :  { %v2374_v25 = vpop.xlane.xlu1 %2373 }
0x1772   :  { %3790 = vrcp.f32 %v2374_v25 }
0x1773   :  { %v3787_v27 = vpop.eup %3786  ;;  %3792 = vrcp.f32 %v2614_v24 }
0x1774   :  { %v2141_v30 = vmul.f32 %v3787_v27, %v3773_v62 }
0x1775   :  { %v2494_v31 = vpop.xlane.xlu1 %2493 }
0x1776   :  { %3794 = vrcp.f32 %v2494_v31  ;;  %v2142_v32 = vpack.c.bf16 %v2141_v30, %v2141_v30  ;;  %v2196_v33 = vadd.f32 %v2141_v30, %v2076_v28 }
0x1778   :  { %3558 = vmatmul.mubr.msk.bf16.vlgmr.msra.gmra.mxu1 %vm406_vm10, %v2142_v32  ;;  %v2197_v36 = vmul.f32 0.25, %v2196_v33 }
0x1779   :  { %3568 = vmatpush3.bf16.msra.mxu1 %v2269_v34  ;;  %3569 = vmatprep.mubr.msk.bf16.mxu1 %vm3810_vm3, %v3809_v35  ;;  %v2379_v37 = vpop.permute.xlu1 %2378 }
0x177a   :  { %2198 = vst.msk [vmem:[%s4645_s20] sm:$0x1f] %vm391_vm7, %v2197_v36  ;;  %3579 = vmatprep.subr.bf16.mxu1 %v3809_v35  ;;  %v2384_v16 = vand.u32 %v2379_v37, %v4034_v19 }
0x177b   :  { %v3789_v51 = vpop.eup %3788 }
0x177c   :  { %v2261_v38 = vmul.f32 %v3789_v51, %v4439_v1  ;;  %v3213_v51 = vld [vmem:[%s4638_s8 + $0x1] ss:$0 sm:$0xff] }
0x177d   :  { %v2499_v7 = vpop.permute.xlu1 %2498 }
0x177e   :  { %v2262_v39 = vpack.c.bf16 %v2261_v38, %v2261_v38  ;;  %v2504_v50 = vand.u32 %v2499_v7, %v4034_v19 }
0x177f   :  { %v3791_v40 = vpop.eup %3790 }
0x1780   :  { %3570 = vmatmul.mubr.msk.bf16.vlgmr.msra.gmra.mxu1 %vm406_vm10, %v2262_v39  ;;  %v2376_v5 = vmul.f32 %v3791_v40, %v4443_v4  ;;  %v3793_v3 = vpop.eup %3792 }
0x1781   :  { %3580 = vmatpush3.bf16.msra.mxu1 %v2384_v16  ;;  %3581 = vmatprep.mubr.msk.bf16.mxu1 %vm3810_vm3, %v3809_v35  ;;  %v2616_v48 = vmul.f32 %v3793_v3, %v4435_v60  ;;  %v2619_v55 = vpop.permute.xlu1 %2618 }
0x1782   :  { %3591 = vmatprep.subr.bf16.mxu1 %v3809_v35  ;;  %v2431_v42 = vadd.f32 %v2376_v5, %v2261_v38  ;;  %v2377_v44 = vpack.c.bf16 %v2376_v5, %v2376_v5  ;;  %v2624_v58 = vand.u32 %v2619_v55, %v4034_v19 }
0x1783   :  { %v3795_v56 = vpop.eup %3794  ;;  %v2617_v47 = vpack.c.bf16 %v2616_v48, %v2616_v48 }
0x1784   :  { %v2496_v43 = vmul.f32 %v3795_v56, %v4447_v6 }
0x1786   :  { %v2551_v41 = vadd.f32 %v2496_v43, %v2431_v42  ;;  %v2497_v57 = vpack.c.bf16 %v2496_v43, %v2496_v43 }
0x1788   :  { %3582 = vmatmul.mubr.msk.bf16.vlgmr.msra.gmra.mxu1 %vm406_vm10, %v2377_v44  ;;  %v2671_v52 = vadd.f32 %v2616_v48, %v2551_v41 }
0x1789   :  { %3592 = vmatpush3.bf16.msra.mxu1 %v2504_v50  ;;  %3593 = vmatprep.mubr.msk.bf16.mxu1 %vm3810_vm3, %v3809_v35 }
0x178a   :  { %3603 = vmatprep.subr.bf16.mxu1 %v3809_v35  ;;  %v2672_v54 = vmul.f32 0.25, %v2671_v52 }
0x178c   :  { %3207 = vst.msk [vmem:[%s4645_s20 + $0x8] sm:$0x1f] %vm391_vm7, %v2672_v54  ;;  %s4688_s20 = smov 16  }
0x1790   :  { %3594 = vmatmul.mubr.msk.bf16.vlgmr.msra.gmra.mxu1 %vm406_vm10, %v2497_v57  ;;  %v3704_v57 = vld [vmem:[%s4639_s11 + $0x18] sm:$0xff]  }
0x1791   :  { %3604 = vmatpush3.bf16.msra.mxu1 %v2624_v58  ;;  %3605 = vmatprep.mubr.msk.bf16.mxu1 %vm3810_vm3, %v3809_v35  ;;  %v3705_v58 = vld [vmem:[%s4639_s11 + $0x10] sm:$0xff]  }
0x1792   :  { %3617 = vmatprep.subr.bf16.mxu1 %v3809_v35 }
0x1798   :  { %3606 = vmatmul.mubr.msk.bf16.vlgmr.msra.gmra.mxu1 %vm406_vm10, %v2617_v47 }
0x1799   :  { %3621 = vmatprep.mubr.msk.bf16.mxu1 %vm3810_vm3, %v3809_v35  ;;  %3618 = vmatpush3.bf16.msra.mxu1 %v3704_v57 }
0x179a   :  { %3619 = vmatprep.subr.bf16.mxu1 %v3809_v35 }
0x179d   :  { %3620 = vmatpush3.bf16.msra.mxu1 %v3705_v58 }
0x179e   :  { %3645 = vmatprep.subr.bf16.mxu1 %v3809_v35 }
0x1803   :  { %v1945_v22 = vpop.f32.mrf.mxu1 }
0x1804   :  { %1952 = vrot.lane.b32.xlu0 %v1945_v22, %s4687_s2 }
0x1805   :  { %v3535_v61 = vpop.f32.mrf.mxu1 }
0x1807   :  { %v1948_v62 = vpop.f32.mrf.mxu1 }
0x1809   :  { %v3536_v19 = vpop.f32.mrf.mxu1 }
0x180b   :  { %v2065_v45 = vpop.f32.mrf.mxu1 }
0x180c   :  { %2072 = vrot.lane.b32.xlu0 %v2065_v45, %s4688_s20 }
0x180d   :  { %v3547_v60 = vpop.f32.mrf.mxu1 }
0x180f   :  { %v2068_v0 = vpop.f32.mrf.mxu1 }
0x1811   :  { %v3548_v1 = vpop.f32.mrf.mxu1 }
0x1812   :  { %v3219_v1 = vld [vmem:[%s4640_s9 + $0x1] ss:$0 sm:$0xff] }
0x1838   :  { %v2185_v2 = vpop.f32.mrf.mxu1 }
0x1839   :  { %2192 = vrot.lane.b32.xlu0 %v2185_v2, %s4689_s1 }
0x183a   :  { %v3559_v4 = vpop.f32.mrf.mxu1 }
0x183c   :  { %v2188_v46 = vpop.f32.mrf.mxu1 }
0x183e   :  { %v3560_v6 = vpop.f32.mrf.mxu1 }
0x183f   :  { %v3220_v6 = vld [vmem:[%s4641_s10 + $0x1] ss:$0 sm:$0xff] }
0x1840   :  { %v2305_v8 = vpop.f32.mrf.mxu1 }
0x1841   :  { %2311 = vst.msk [vmem:[#allocation3 + $0x5] sm:$0x1f] %vm457_vm11, %v2305_v8 }
0x1842   :  { %v3571_v10 = vpop.f32.mrf.mxu1 }
0x1844   :  { %v2308_v11 = vpop.f32.mrf.mxu1 }
0x1846   :  { %v3572_v12 = vpop.f32.mrf.mxu1 }
0x1848   :  { %v2420_v13 = vpop.f32.mrf.mxu1 }
0x1849   :  { %2427 = vrot.lane.b32.xlu1 %v2420_v13, %s4687_s2  ;;  %v3706_v13 = vld [vmem:[%s4642_s13 + $0x78] sm:$0xff]  }
0x184a   :  { %v3583_v14 = vpop.f32.mrf.mxu1 }
0x184b   :  { %v3707_v14 = vld [vmem:[%s4642_s13 + $0x70] sm:$0xff]  }
0x184c   :  { %v2423_v15 = vpop.f32.mrf.mxu1 }
0x184d   :  { %v3708_v15 = vld [vmem:[%s4642_s13 + $0x68] sm:$0xff]  }
0x184e   :  { %v3584_v49 = vpop.f32.mrf.mxu1 }
0x184f   :  { %v3710_v49 = vld [vmem:[%s4642_s13 + $0x58] sm:$0xff]  }
0x1850   :  { %v2540_v53 = vpop.f32.mrf.mxu1 }
0x1851   :  { %2547 = vrot.lane.b32.xlu1 %v2540_v53, %s4688_s20  ;;  %v3712_v53 = vld [vmem:[%s4642_s13 + $0x48] sm:$0xff]  }
0x1852   :  { %v3595_v17 = vpop.f32.mrf.mxu1 }
0x1853   :  { %v3713_v17 = vld [vmem:[%s4642_s13 + $0x40] sm:$0xff]  }
0x1854   :  { %v2543_v20 = vpop.f32.mrf.mxu1 }
0x1855   :  { %v3226_v20 = vld [vmem:[%s4643_s12 + $0x1] ss:$0 sm:$0xff] }
0x1856   :  { %v3596_v21 = vpop.f32.mrf.mxu1 }
0x1858   :  { %v2660_v23 = vpop.f32.mrf.mxu1 }
0x1859   :  { %2667 = vrot.lane.b32.xlu1 %v2660_v23, %s4689_s1 }
0x185a   :  { %v3607_v24 = vpop.f32.mrf.mxu1 }
0x185c   :  { %v2663_v25 = vpop.f32.mrf.mxu1 }
0x185e   :  { %v3608_v26 = vpop.f32.mrf.mxu1 }
0x1876   :  { %v1953_v27 = vpop.permute.xlu0 %1952 }
0x1877   :  { %1955 = vst.msk [vmem:[#allocation3] sm:$0x1f] %vm577_vm12, %v1953_v27 }
0x187e   :  { %v2073_v28 = vpop.permute.xlu0 %2072 }
0x187f   :  { %2075 = vst.msk [vmem:[#allocation3] sm:$0x1f] %vm697_vm13, %v2073_v28 }
0x18ab   :  { %v2193_v29 = vpop.permute.xlu0 %2192 }
0x18ac   :  { %2195 = vst.msk [vmem:[#allocation3] sm:$0x1f] %vm817_vm14, %v2193_v29 }
0x18bb   :  { %v2428_v30 = vpop.permute.xlu1 %2427 }
0x18bc   :  { %2430 = vst.msk [vmem:[#allocation3 + $0x5] sm:$0x1f] %vm577_vm12, %v2428_v30 }
0x18c3   :  { %v2548_v31 = vpop.permute.xlu1 %2547 }
0x18c4   :  { %2550 = vst.msk [vmem:[#allocation3 + $0x5] sm:$0x1f] %vm697_vm13, %v2548_v31 }
0x18cb   :  { %v2668_v32 = vpop.permute.xlu1 %2667 }
0x18cc   :  { %2670 = vst.msk [vmem:[#allocation3 + $0x5] sm:$0x1f] %vm817_vm14, %v2668_v32 }
0x18d3   :  { %v2675_v33 = vld [vmem:[#allocation3] sm:$0xff]  ;;  %v2676_v34 = vld [vmem:[#allocation3 + $0x8] sm:$0x3] }
0x18d4   :  { %v2677_v36 = vpack.c.bf16 %v2676_v34, %v2675_v33 }
0x18d6   :  { %3614 = vmatmul.mubr.msk.bf16.vlgmr.msra.gmra.mxu0 %vm221_vm1, %v2677_v36 }
0x18d7   :  { %3641 = vmatprep.mubr.msk.bf16.mxu0 %vm3810_vm3, %v3809_v35  ;;  %3626 = vmatpush3.bf16.msra.mxu0 %v3706_v13 }
0x18d8   :  { %3627 = vmatprep.subr.bf16.mxu0 %v3809_v35 }
0x18db   :  { %3628 = vmatpush3.bf16.msra.mxu0 %v3707_v14 }
0x18dc   :  { %3629 = vmatprep.subr.bf16.mxu0 %v3809_v35 }
0x18df   :  { %3630 = vmatpush3.bf16.msra.mxu0 %v3708_v15  ;;  %v3256_v15 = vld [vmem:[%s4647_s15] ss:$0 sm:$0xff] }
0x18e0   :  { %3631 = vmatprep.subr.bf16.mxu0 %v3809_v35 }
0x18e3   :  { %3632 = vmatpush3.bf16.msra.mxu0 %v3709_v18 }
0x18e4   :  { %3633 = vmatprep.subr.bf16.mxu0 %v3809_v35 }
0x18e7   :  { %3634 = vmatpush3.bf16.msra.mxu0 %v3710_v49 }
0x18e8   :  { %3635 = vmatprep.subr.bf16.mxu0 %v3809_v35 }
0x18eb   :  { %3636 = vmatpush3.bf16.msra.mxu0 %v3711_v9 }
0x18ec   :  { %3637 = vmatprep.subr.bf16.mxu0 %v3809_v35 }
0x18ef   :  { %3638 = vmatpush3.bf16.msra.mxu0 %v3712_v53 }
0x18f0   :  { %3639 = vmatprep.subr.bf16.mxu0 %v3809_v35 }
0x18f3   :  { %3640 = vmatpush3.bf16.msra.mxu0 %v3713_v17 }
0x1996   :  { %v2740_v37 = vpop.f32.mrf.mxu0 }
0x1997   :  { %v2741_v38 = vadd.f32 %v3213_v51, %v2740_v37 }
0x1998   :  { %v3615_v39 = vpop.f32.mrf.mxu0 }
0x1999   :  { %v4534_v40 = vadd.f32 %v2741_v38, %v4284_v59 }
0x199a   :  { %v2743_v16 = vpop.f32.mrf.mxu0 }
0x199b   :  { %v2744_v5 = vadd.f32 %v3213_v51, %v2743_v16  ;;  %v2753_v3 = vsel %vm221_vm1, %v4534_v40, 0.0 }
0x199c   :  { %2754 = vadd.xlane.f32.xlu0 %v2753_v3  ;;  %v3616_v56 = vpop.f32.mrf.mxu0 }
0x199d   :  { %v4539_v7 = vadd.f32 %v2744_v5, %v4289_v63 }
0x199f   :  { %v2756_v42 = vsel %vm225_vm2, %v4539_v7, 0.0 }
0x19a0   :  { %2757 = vadd.xlane.f32.xlu1 %v2756_v42 }
0x1a25   :  { %v2755_v43 = vpop.xlane.xlu0 %2754 }
0x1a26   :  { %v2759_v44 = vmul.f32 0.03125, %v2755_v43 }
0x1a28   :  { %v2761_v41 = vsub.f32 %v4534_v40, %v2759_v44 }
0x1a29   :  { %v2758_v59 = vpop.xlane.xlu1 %2757 }
0x1a2a   :  { %v2760_v48 = vmul.f32 0.03125, %v2758_v59  ;;  %v2763_v50 = vmul.f32 %v2761_v41, %v2761_v41 }
0x1a2c   :  { %v2762_v52 = vsub.f32 %v4539_v7, %v2760_v48  ;;  %v2765_v54 = vsel %vm221_vm1, %v2763_v50, 0.0 }
0x1a2d   :  { %2766 = vadd.xlane.f32.xlu0 %v2765_v54 }
0x1a2e   :  { %v2764_v55 = vmul.f32 %v2762_v52, %v2762_v52 }
0x1a30   :  { %v2768_v63 = vsel %vm225_vm2, %v2764_v55, 0.0 }
0x1a31   :  { %2769 = vadd.xlane.f32.xlu0 %v2768_v63 }
0x1ab6   :  { %v2767_v47 = vpop.xlane.xlu0 %2766 }
0x1ab7   :  { %v2771_v22 = vmul.f32 0.03125, %v2767_v47 }
0x1ab9   :  { %v2773_v61 = vadd.f32 1e-06, %v2771_v22 }
0x1aba   :  { %v2770_v62 = vpop.xlane.xlu0 %2769 }
0x1abb   :  { %3796 = vrsqrt.f32 %v2773_v61  ;;  %v2772_v19 = vmul.f32 0.03125, %v2770_v62 }
0x1abd   :  { %v2774_v45 = vadd.f32 1e-06, %v2772_v19 }
0x1abf   :  { %3798 = vrsqrt.f32 %v2774_v45 }
0x1ac8   :  { %v3797_v60 = vpop.eup %3796 }
0x1ac9   :  { %v2777_v0 = vmul.f32 %v3797_v60, %v2761_v41  ;;  %v3247_v41 = vld [vmem:[%s4644_s14 + $0x1] ss:$0 sm:$0xff] }
0x1acb   :  { %v2785_v46 = vmul.f32 %v3219_v1, %v2777_v0 }
0x1acc   :  { %v3799_v2 = vpop.eup %3798 }
0x1acd   :  { %v2778_v4 = vmul.f32 %v3799_v2, %v2762_v52  ;;  %v2793_v10 = vadd.f32 %v3220_v6, %v2785_v46 }
0x1acf   :  { %v2786_v8 = vmul.f32 %v3219_v1, %v2778_v4  ;;  %v3715_v4 = vld [vmem:[%s4646_s17] sm:$0xff]  }
0x1ad1   :  { %v2794_v11 = vadd.f32 %v3220_v6, %v2786_v8 }
0x1ad3   :  { %v2795_v12 = vpack.c.bf16 %v2794_v11, %v2793_v10 }
0x1ad5   :  { %3622 = vmatmul.mubr.msk.bf16.vlgmr.msra.gmra.mxu1 %vm221_vm1, %v2795_v12 }
0x1ad6   :  { %3649 = vmatprep.mubr.msk.bf16.mxu1 %vm3810_vm3, %v3809_v35 }
0x1b95   :  { %v2858_v21 = vpop.f32.mrf.mxu1 }
0x1b96   :  { %v2859_v23 = vadd.f32 %v3226_v20, %v2858_v21 }
0x1b97   :  { %v3623_v24 = vpop.f32.mrf.mxu1 }
0x1b98   :  { %v2865_v25 = vmul.f32 %v2859_v23, %v2859_v23 }
0x1b99   :  { %v2861_v26 = vpop.f32.mrf.mxu1 }
0x1b9a   :  { %v2867_v27 = vmul.f32 %v2865_v25, %v2859_v23  ;;  %v2862_v28 = vadd.f32 %v3226_v20, %v2861_v26 }
0x1b9b   :  { %v3624_v29 = vpop.f32.mrf.mxu1 }
0x1b9c   :  { %v2869_v30 = vmul.f32 0.044715, %v2867_v27  ;;  %v2866_v31 = vmul.f32 %v2862_v28, %v2862_v28 }
0x1b9e   :  { %v2871_v32 = vadd.f32 %v2869_v30, %v2859_v23  ;;  %v2868_v33 = vmul.f32 %v2866_v31, %v2862_v28 }
0x1ba0   :  { %v2873_v34 = vmul.f32 0.7978846, %v2871_v32  ;;  %v2870_v36 = vmul.f32 0.044715, %v2868_v33 }
0x1ba2   :  { %3800 = vtanh.f32 %v2873_v34  ;;  %v2872_v51 = vadd.f32 %v2870_v36, %v2862_v28 }
0x1ba4   :  { %v2874_v37 = vmul.f32 0.7978846, %v2872_v51 }
0x1ba6   :  { %3802 = vtanh.f32 %v2874_v37 }
0x1baf   :  { %v3801_v38 = vpop.eup %3800 }
0x1bb0   :  { %v2877_v39 = vadd.f32 1.0, %v3801_v38 }
0x1bb2   :  { %v2879_v5 = vmul.f32 0.5, %v2877_v39 }
0x1bb3   :  { %v3803_v16 = vpop.eup %3802 }
0x1bb4   :  { %v2878_v3 = vadd.f32 1.0, %v3803_v16  ;;  %v2881_v42 = vmul.f32 %v2879_v5, %v2859_v23  ;;  %v3258_v23 = vld [vmem:[%s4649_s18] ss:$0 sm:$0xff] }
0x1bb6   :  { %v2880_v56 = vmul.f32 0.5, %v2878_v3 }
0x1bb8   :  { %v2882_v43 = vmul.f32 %v2880_v56, %v2862_v28 }
0x1bba   :  { %v2883_v44 = vpack.c.bf16 %v2882_v43, %v2881_v42 }
0x1bbc   :  { %3642 = vmatmul.mubr.bf16.vlgmr.msra.gmra.mxu0 %v2883_v44 }
0x1c7c   :  { %v2991_v59 = vpop.f32.mrf.mxu0 }
0x1c7d   :  { %v2992_v48 = vadd.f32 %v3247_v41, %v2991_v59 }
0x1c7e   :  { %v3643_v50 = vpop.f32.mrf.mxu0 }
0x1c7f   :  { %v2998_v52 = vadd.f32 %v2992_v48, %v4534_v40 }
0x1c80   :  { %v2994_v54 = vpop.f32.mrf.mxu0 }
0x1c81   :  { %v2995_v55 = vadd.f32 %v3247_v41, %v2994_v54  ;;  %v3002_v63 = vsel %vm221_vm1, %v2998_v52, 0.0 }
0x1c82   :  { %3003 = vadd.xlane.f32.xlu0 %v3002_v63  ;;  %v3644_v57 = vpop.f32.mrf.mxu0 }
0x1c83   :  { %v2999_v58 = vadd.f32 %v2995_v55, %v4539_v7  ;;  %v3714_v7 = vld [vmem:[%s4646_s17 + $0x8] sm:$0xff]  }
0x1c84   :  { %3646 = vmatpush3.bf16.msra.mxu1 %v3714_v7 }
0x1c85   :  { %v3005_v47 = vsel %vm225_vm2, %v2999_v58, 0.0  ;;  %3647 = vmatprep.subr.bf16.mxu1 %v3809_v35  ;;  %v3257_v35 = vld [vmem:[%s4648_s16] ss:$0 sm:$0xff] }
0x1c86   :  { %3006 = vadd.xlane.f32.xlu1 %v3005_v47 }
0x1c88   :  { %3648 = vmatpush3.bf16.msra.mxu1 %v3715_v4 }
0x1d0b   :  { %v3004_v22 = vpop.xlane.xlu0 %3003 }
0x1d0c   :  { %v3008_v61 = vmul.f32 0.03125, %v3004_v22 }
0x1d0e   :  { %v3010_v62 = vsub.f32 %v2998_v52, %v3008_v61 }
0x1d0f   :  { %v3007_v19 = vpop.xlane.xlu1 %3006 }
0x1d10   :  { %v3009_v45 = vmul.f32 0.03125, %v3007_v19  ;;  %v3012_v60 = vmul.f32 %v3010_v62, %v3010_v62 }
0x1d12   :  { %v3011_v0 = vsub.f32 %v2999_v58, %v3009_v45  ;;  %v3014_v40 = vsel %vm221_vm1, %v3012_v60, 0.0 }
0x1d13   :  { %3015 = vadd.xlane.f32.xlu0 %v3014_v40 }
0x1d14   :  { %v3013_v1 = vmul.f32 %v3011_v0, %v3011_v0 }
0x1d16   :  { %v3017_v2 = vsel %vm225_vm2, %v3013_v1, 0.0 }
0x1d17   :  { %3018 = vadd.xlane.f32.xlu1 %v3017_v2 }
0x1d9c   :  { %v3016_v46 = vpop.xlane.xlu0 %3015 }
0x1d9d   :  { %v3020_v6 = vmul.f32 0.03125, %v3016_v46 }
0x1d9f   :  { %v3022_v8 = vadd.f32 1e-06, %v3020_v6 }
0x1da0   :  { %v3019_v10 = vpop.xlane.xlu1 %3018 }
0x1da1   :  { %3804 = vrsqrt.f32 %v3022_v8  ;;  %v3021_v11 = vmul.f32 0.03125, %v3019_v10 }
0x1da3   :  { %v3023_v12 = vadd.f32 1e-06, %v3021_v11 }
0x1da5   :  { %3806 = vrsqrt.f32 %v3023_v12 }
0x1dae   :  { %v3805_v13 = vpop.eup %3804 }
0x1daf   :  { %v3026_v14 = vmul.f32 %v3805_v13, %v3010_v62 }
0x1db1   :  { %v3034_v9 = vmul.f32 %v3256_v15, %v3026_v14 }
0x1db2   :  { %v3807_v18 = vpop.eup %3806 }
0x1db3   :  { %v3027_v49 = vmul.f32 %v3807_v18, %v3011_v0  ;;  %v3042_v17 = vadd.f32 %v3257_v35, %v3034_v9 }
0x1db5   :  { %v3035_v53 = vmul.f32 %v3256_v15, %v3027_v49 }
0x1db7   :  { %v3043_v20 = vadd.f32 %v3257_v35, %v3035_v53 }
0x1db9   :  { %v3044_v21 = vpack.c.bf16 %v3043_v20, %v3042_v17 }
0x1dbb   :  { %3650 = vmatmul.mubr.msk.bf16.vlgmr.msra.gmra.mxu1 %vm221_vm1, %v3044_v21 }
0x1e7b   :  { %v3105_v24 = vpop.f32.mrf.mxu1 }
0x1e7c   :  { %v3106_v25 = vadd.f32 %v3258_v23, %v3105_v24 }
0x1e7d   :  { %v3651_v26 = vpop.f32.mrf.mxu1 }
0x1e7e   :  { %3112 = vst [vmem:[%s4650_s19] sm:$0xff] %v3106_v25 }
0x1e7f   :  { %v3108_v27 = vpop.f32.mrf.mxu1 }
0x1e80   :  { %v3109_v28 = vadd.f32 %v3258_v23, %v3108_v27 }
0x1e81   :  { %v3652_v29 = vpop.f32.mrf.mxu1 }
0x1e82   :  { %3113 = vst [vmem:[%s4650_s19 + $0x8] sm:$0x3] %v3109_v28 }

</bundles_post_ra>
